<compile_context>
chip_gen: v6e
topology: v6e:2x2x1
jax: 0.10.0
libtpu: 0.0.40
codegen_flags: <defaults>
</compile_context>

<pallas_src>
import math
import numpy as np

import jax
import jax.numpy as jnp
from jax import lax
from jax.experimental import pallas as pl
from jax.experimental.pallas import tpu as pltpu

# ----------------------- small synthetic configuration -----------------------
IMG = 32            # img_size
PATCH = 8           # patch_size
STRIDE = 8          # stride_size (== patch -> non-overlapping patch embed)
IN_CHANS = 3
EMBED_DIM = 64      # bb.embed_dim
NUM_CLS = 4         # num_cls_tokens
CLS_REDUCE = 4
DEPTH = 4           # (DEPTH-2) shared layers + 2 branch-0 layers
NUM_BRANCHES = 1
D_STATE = 16
D_CONV = 4
EXPAND = 2
D_INNER = EXPAND * EMBED_DIM
DT_RANK = max(1, math.ceil(EMBED_DIM / 16))
EPS = 1e-5

NUM_Y = (IMG - PATCH) // STRIDE + 1
NUM_X = (IMG - PATCH) // STRIDE + 1
NUM_PATCHES = NUM_Y * NUM_X
SEQ_LEN = NUM_PATCHES + NUM_CLS
D_REDUCE = EMBED_DIM // CLS_REDUCE
FEAT_DIM = D_REDUCE * NUM_CLS * NUM_BRANCHES


# --------------------------- token index utilities ---------------------------
def get_cls_idx(H, W, num_cls):
    """Evenly interleave `num_cls` register/cls tokens into the H*W patch sequence."""
    L = H * W
    step = L // num_cls
    token_idx, cls_pos = [], []
    p = 0
    for i in range(num_cls):
        token_idx.extend(range(p, p + step))
        token_idx.append(L + i)
        cls_pos.append(len(token_idx) - 1)
        p += step
    token_idx.extend(range(p, L))
    return np.asarray(token_idx, np.int32), np.asarray(cls_pos, np.int32)


def get_oth_pos(num_patches, cls_pos):
    """Positions in the interleaved sequence that are NOT cls tokens (port of ref)."""
    ori = np.arange(num_patches + len(cls_pos))
    pre, parts = 0, []
    for i in cls_pos:
        parts.append(ori[pre:i])
        pre = i + 1
    parts.append(ori[pre:])
    return np.concatenate(parts)


TOKEN_IDX_NP, CLS_IDX_NP = get_cls_idx(NUM_Y, NUM_X, NUM_CLS)
OTH_IDX_NP = get_oth_pos(NUM_PATCHES, CLS_IDX_NP)   # only needed when num_branches > 1
TOKEN_IDX = jnp.asarray(TOKEN_IDX_NP)
CLS_ROWS = tuple(int(i) for i in CLS_IDX_NP)        # static cls-token row positions


# ------------------------------- Pallas kernels -------------------------------
def _matmul_bias_kernel(a_ref, w_ref, b_ref, o_ref):
    """Single-block matmul with fused bias (patch-embedding conv as im2col)."""
    o_ref[...] = jnp.dot(a_ref[...], w_ref[...],
                         preferred_element_type=jnp.float32) + b_ref[...]


def _fused_layers_kernel(h0_ref, nw_ref, inw_ref, cw_ref, cb_ref,
                         xw_ref, dtb_ref, at_ref, dvec_ref, ow_ref,
                         nf_ref, neckw_ref, nneck_ref,
                         o_ref,
                         hid_scr, res_scr, dA_scr, dBu_scr):
    """All DEPTH Mamba blocks + head for one batch element.

    Grid = (batch "parallel", layer "arbitrary").  hid_scr / res_scr carry the
    hidden / residual streams across the layer axis; the weight refs are the
    current layer's (squeezed) slice of the stacked (DEPTH, ...) arrays.
    """
    layer = pl.program_id(1)
    n_layers = pl.num_programs(1)
    L = h0_ref.shape[0]

    # ---- layer-carry init (first layer of each batch element) ----------------
    @pl.when(layer == 0)
    def _():
        hid_scr[...] = h0_ref[...]
        res_scr[...] = jnp.zeros_like(res_scr)       # residual=None in torch

    # ---- fused residual add + RMSNorm (prenorm, residual_in_fp32) ------------
    res = hid_scr[...] + res_scr[...]
    res_scr[...] = res
    var = jnp.mean(res * res, axis=-1, keepdims=True)
    normed = res * lax.rsqrt(var + EPS) * nw_ref[...]                  # (L, D)

    # ---- in_proj: one lane-dense (2*d_inner)-wide bf16 MXU matmul ------------
    xz = jnp.dot(normed.astype(jnp.bfloat16), inw_ref[...],
                 preferred_element_type=jnp.float32)                   # (L, 2*d_inner)
    xin = xz[:, :D_INNER]
    z = xz[:, D_INNER:]

    # ---- causal depthwise conv1d (D_CONV taps), in vregs, + SiLU --------------
    cw = cw_ref[...]                                                   # (K, d_inner)
    xc = cb_ref[...] + xin * cw[D_CONV - 1:D_CONV, :]
    for j in range(1, D_CONV):                       # j = sublane shift (zero-fill at top)
        shifted = jnp.concatenate(
            [jnp.zeros((j, D_INNER), jnp.float32), xin[:L - j, :]], axis=0)
        xc = xc + shifted * cw[D_CONV - 1 - j:D_CONV - j, :]
    xc = xc * (1.0 / (1.0 + jnp.exp(-xc)))                             # SiLU

    # ---- fused x_proj + dt_proj (f32: feeds softplus -> exp -> scan) ----------
    xdbl = jnp.dot(xc, xw_ref[...],
                   preferred_element_type=jnp.float32)                 # (L, d_inner+2*d_state)
    dt_raw = xdbl[:, :D_INNER] + dtb_ref[...]                          # dt_proj bias fused here
    bc = xdbl[:, D_INNER:]                                             # (L, 2*d_state) = [B | C]

    # ---- element-wise precompute, hoisted out of the scan ---------------------
    # softplus; exp(-|x|) <= 1 so log(1 + .) is well conditioned here.
    dt = jnp.maximum(dt_raw, 0.0) + jnp.log(1.0 + jnp.exp(-jnp.abs(dt_raw)))
    dtu = dt * xc
    gate = z * (1.0 / (1.0 + jnp.exp(-z)))                             # SiLU(z)
    A_T = at_ref[...]                                                  # (d_state, d_inner), < 0
    eye2s = (lax.broadcasted_iota(jnp.int32, (2 * D_STATE, 2 * D_STATE), 0) ==
             lax.broadcasted_iota(jnp.int32, (2 * D_STATE, 2 * D_STATE), 1)
             ).astype(jnp.float32)

    # Precompute dA = exp(dt*A) and dt*u*B for ALL timesteps into VMEM scratch
    # (kept out of vregs to avoid spilling); the B/C row->column relayouts also
    # happen here, off the scan's serial dependency chain.
    c_cols = []
    for t in range(L):
        bc_col = jnp.sum(bc[t:t + 1, :] * eye2s, axis=1, keepdims=True)   # (2*d_state, 1)
        dA_scr[t] = jnp.exp(dt[t:t + 1, :] * A_T)                         # (d_state, d_inner)
        dBu_scr[t] = bc_col[:D_STATE, :] * dtu[t:t + 1, :]                # (d_state, d_inner)
        c_cols.append(bc_col[D_STATE:, :])
    Ct = jnp.concatenate(c_cols, axis=1)                                  # (d_state, L)

    # ---- selective scan: pure mul/add recurrence; y rows kept in vregs --------
    h = jnp.zeros((D_STATE, D_INNER), jnp.float32)
    ys = []
    for t in range(L):
        h = dA_scr[t] * h + dBu_scr[t]
        ys.append(jnp.sum(h * Ct[:, t:t + 1], axis=0, keepdims=True))     # (1, d_inner)
    y = jnp.concatenate(ys, axis=0)                                       # (L, d_inner)

    # ---- D skip + SiLU(z) gate + out_proj --------------------------------------
    y = (y + xc * dvec_ref[...]) * gate
    hid_new = jnp.dot(y.astype(jnp.bfloat16), ow_ref[...],
                      preferred_element_type=jnp.float32)                 # (L, D)
    hid_scr[...] = hid_new

    # ---- head, fused into the last layer iteration ----------------------------
    @pl.when(layer == n_layers - 1)
    def _():
        resf = hid_new + res                                              # rms_norm_fn(prenorm=False) input
        cls = jnp.concatenate([resf[i:i + 1, :] for i in CLS_ROWS], axis=0)  # (NUM_CLS, D)
        v = jnp.mean(cls * cls, axis=-1, keepdims=True)
        nrm = cls * lax.rsqrt(v + EPS) * nf_ref[...]                      # RMSNorm(norm_f)
        yv = jnp.dot(nrm.astype(jnp.bfloat16), neckw_ref[...],
                     preferred_element_type=jnp.float32)                  # (NUM_CLS, D//r)
        # RMSNorm over the flattened (NUM_CLS * D//r) feature
        ssq = jnp.sum(jnp.sum(yv * yv, axis=1, keepdims=True), axis=0, keepdims=True)
        yn = yv * lax.rsqrt(ssq * (1.0 / float(NUM_CLS * D_REDUCE)) + EPS) * nneck_ref[...]
        # L2 normalize over the flattened feature (F.normalize, eps=1e-12)
        n2 = jnp.sum(jnp.sum(yn * yn, axis=1, keepdims=True), axis=0, keepdims=True)
        o_ref[...] = yn / jnp.maximum(jnp.sqrt(n2), 1e-12)


# ------------------------------ Pallas wrappers --------------------------------
def patch_embed_call(x, w_t, b_row):
    """Conv2d(in_chans, embed_dim, kernel=PATCH, stride=STRIDE) with stride==kernel
       as a single-block im2col matmul (+ fused bias).  x: NCHW."""
    B_, C, _, _ = x.shape
    xp = x.reshape(B_, C, NUM_Y, PATCH, NUM_X, PATCH)
    xp = xp.transpose(0, 2, 4, 1, 3, 5).reshape(B_ * NUM_PATCHES, C * PATCH * PATCH)
    y = pl.pallas_call(
        _matmul_bias_kernel,
        out_shape=jax.ShapeDtypeStruct((B_ * NUM_PATCHES, EMBED_DIM), jnp.float32),
    )(xp.astype(jnp.bfloat16), w_t, b_row)
    return y.reshape(B_, NUM_PATCHES, EMBED_DIM)


def fused_layers_head(hidden0, params):
    """All DEPTH Mamba layers + head in ONE pallas_call.  Grid: (batch, layer)."""
    B_, L, D = hidden0.shape
    stk = params["stk"]

    def per_layer(arr):               # current layer's slice of a stacked weight
        return pl.BlockSpec((None,) + arr.shape[1:], lambda b, l: (l, 0, 0))

    def fixed(arr):                   # layer-invariant 2-D weight (stays VMEM-resident)
        return pl.BlockSpec(arr.shape, lambda b, l: (0, 0))

    feat = pl.pallas_call(
        _fused_layers_kernel,
        out_shape=jax.ShapeDtypeStruct((B_, NUM_CLS, D_REDUCE), jnp.float32),
        grid=(B_, DEPTH),
        in_specs=[
            pl.BlockSpec((None, L, D), lambda b, l: (b, 0, 0)),           # initial hidden
            per_layer(stk["norm_w"]), per_layer(stk["in_w"]),
            per_layer(stk["conv_w"]), per_layer(stk["conv_b"]),
            per_layer(stk["xdbl_w"]), per_layer(stk["dt_b"]),
            per_layer(stk["a_t"]), per_layer(stk["d_vec"]),
            per_layer(stk["out_w"]),
            fixed(params["norm_f_w"]), fixed(params["neck_w_t"]),
            fixed(params["norm_neck_w"]),
        ],
        out_specs=pl.BlockSpec((None, NUM_CLS, D_REDUCE), lambda b, l: (b, 0, 0)),
        scratch_shapes=[
            pltpu.VMEM((L, D), jnp.float32),                 # hidden carry (across layers)
            pltpu.VMEM((L, D), jnp.float32),                 # residual carry
            pltpu.VMEM((L, D_STATE, D_INNER), jnp.float32),  # exp(dt*A) per timestep
            pltpu.VMEM((L, D_STATE, D_INNER), jnp.float32),  # dt*u*B   per timestep
        ],
        # Per-step VMEM residency is well under 1 MiB (weights ~140 KiB double-
        # buffered + ~330 KiB scratch), safe for v7x's smaller VMEM as well.
        compiler_params=pltpu.CompilerParams(
            # TODO(synk): on v7x use CORE_PARALLEL / core_map on the batch axis to
            # guarantee both TensorCores are used when B > 1.
            dimension_semantics=("parallel", "arbitrary")),
    )(hidden0, stk["norm_w"], stk["in_w"], stk["conv_w"], stk["conv_b"],
      stk["xdbl_w"], stk["dt_b"], stk["a_t"], stk["d_vec"], stk["out_w"],
      params["norm_f_w"], params["neck_w_t"], params["norm_neck_w"])
    return feat.reshape(B_, -1)


# ---------------------------------- forward ------------------------------------
def reid_mamba_forward(params, x):
    """Eval-mode forward: concat of L2-normalized branch features (B, FEAT_DIM)."""
    B_ = x.shape[0]
    h = patch_embed_call(x, params["patch_w_t"], params["patch_b"])      # (B, P, D)
    h = h + params["pos_embed"]
    cls = params["cls_token"] + params["pos_embed_cls"]                  # (1, NUM_CLS, D)
    cls = jnp.broadcast_to(cls, (B_, NUM_CLS, EMBED_DIM))
    h = jnp.concatenate([h, cls], axis=1)[:, TOKEN_IDX]                  # interleave registers
    # use_cid=False -> no SIE embedding
    return fused_layers_head(h, params)
    # TODO(synk): BNNeck classifier / triplet heads are training-only and not exercised.
    # TODO(synk): with larger batches, block several batch elements per grid step so the
    # projection matmuls run with M ~ 128-256 and independent scan recurrences interleave.


# ------------------------------- parameter init --------------------------------
def init_params(key):
    """Parameters in PyTorch layout (same as the reference module's tensors)."""
    keys = iter(jax.random.split(key, 64))

    def tn(shape, std=0.02):
        return std * jax.random.normal(next(keys), shape, jnp.float32)

    params = {
        "patch_w": tn((EMBED_DIM, IN_CHANS, PATCH, PATCH)),
        "patch_b": jnp.zeros((EMBED_DIM,), jnp.float32),
        "pos_embed": tn((1, NUM_PATCHES, EMBED_DIM)),
        "cls_token": tn((1, NUM_CLS, EMBED_DIM)),
        "pos_embed_cls": tn((1, NUM_CLS, EMBED_DIM)),
        "norm_f_w": jnp.ones((EMBED_DIM,), jnp.float32),
        "neck_w": tn((D_REDUCE, EMBED_DIM)),
        "norm_neck_w": jnp.ones((D_REDUCE * NUM_CLS,), jnp.float32),
        "layers": [],
    }
    A_init = jnp.tile(jnp.arange(1, D_STATE + 1, dtype=jnp.float32)[None, :], (D_INNER, 1))
    dt_bias = float(math.log(math.expm1(0.01)))
    for _ in range(DEPTH):
        params["layers"].append({
            "norm_w": jnp.ones((EMBED_DIM,), jnp.float32),
            "in_proj_w": tn((2 * D_INNER, EMBED_DIM)),
            "conv_w": tn((D_INNER, D_CONV)),
            "conv_b": jnp.zeros((D_INNER,), jnp.float32),
            "x_proj_w": tn((DT_RANK + 2 * D_STATE, D_INNER)),
            "dt_proj_w": tn((D_INNER, DT_RANK)),
            "dt_proj_b": jnp.full((D_INNER,), dt_bias, jnp.float32),
            "A_log": jnp.log(A_init),
            "D": jnp.ones((D_INNER,), jnp.float32),
            "out_proj_w": tn((EMBED_DIM, D_INNER)),
        })
    return params
    # TODO(synk): unidirectional Mamba mixer only; the A_b_log/D_b bidirectional
    # variant of the checkpointed backbone is not reproduced here.


def pack_params(p):
    """One-time weight packing: transpose to (in, out), fuse x_proj+dt_proj, stack
       per-layer weights along a leading DEPTH axis, cast MXU operands to bf16
       (the dt/B/C projection and all element-wise weights stay f32)."""
    bf = jnp.bfloat16
    stack = lambda f: jnp.stack([f(lp) for lp in p["layers"]], axis=0)
    stk = {
        "norm_w": stack(lambda lp: lp["norm_w"].reshape(1, EMBED_DIM)),
        "in_w":   stack(lambda lp: lp["in_proj_w"].T).astype(bf),        # (DEPTH, D, 2*d_inner)
        "conv_w": stack(lambda lp: lp["conv_w"].T),                      # (DEPTH, K, d_inner) f32
        "conv_b": stack(lambda lp: lp["conv_b"].reshape(1, D_INNER)),
        # dt_raw = x @ (x_proj[:rank].T @ dt_proj.T) + dt_bias, fused with the
        # B/C projection into one lane-dense (d_inner + 2*d_state) matmul.
        # Kept in f32: dt feeds softplus -> exp(dt*A) -> the scan recurrence.
        "xdbl_w": stack(lambda lp: jnp.concatenate(
            [lp["x_proj_w"][:DT_RANK].T @ lp["dt_proj_w"].T,
             lp["x_proj_w"][DT_RANK:].T], axis=1)),                      # (DEPTH, d_inner, d_inner+2*d_state)
        "dt_b":   stack(lambda lp: lp["dt_proj_b"].reshape(1, D_INNER)),
        "a_t":    stack(lambda lp: (-jnp.exp(lp["A_log"])).T),           # (DEPTH, d_state, d_inner)
        "d_vec":  stack(lambda lp: lp["D"].reshape(1, D_INNER)),
        "out_w":  stack(lambda lp: lp["out_proj_w"].T).astype(bf),       # (DEPTH, d_inner, D)
    }
    return {
        "patch_w_t": p["patch_w"].reshape(EMBED_DIM, -1).T.astype(bf),   # (C*P*P, D)
        "patch_b": p["patch_b"].reshape(1, EMBED_DIM),
        "pos_embed": p["pos_embed"],
        "cls_token": p["cls_token"],
        "pos_embed_cls": p["pos_embed_cls"],
        "norm_f_w": p["norm_f_w"].reshape(1, EMBED_DIM),
        "neck_w_t": p["neck_w"].T.astype(bf),                            # (D, D//r)
        "norm_neck_w": p["norm_neck_w"].reshape(NUM_CLS, D_REDUCE),
        "stk": stk,
    }


# ------------------------------------ main --------------------------------------
if __name__ == "__main__":
    key = jax.random.PRNGKey(0)
    pkey, xkey = jax.random.split(key)
    params = pack_params(init_params(pkey))            # pack weights once, outside jit
    x = jax.random.normal(xkey, (2, IN_CHANS, IMG, IMG), jnp.float32)   # NCHW

    fwd = jax.jit(reid_mamba_forward)
    out = jax.block_until_ready(fwd(params, x))

    assert out.shape == (2, FEAT_DIM), out.shape
    assert bool(jnp.all(jnp.isfinite(out)))
    print("KERNEL_OK")
</pallas_src>

<mosaic_0001>
module attributes {stable_mosaic.version = 11 : i64} {
  func.func @_matmul_bias_kernel(%arg0: memref<32x192xbf16, #tpu.memory_space<vmem>>, %arg1: memref<192x64xbf16, #tpu.memory_space<vmem>>, %arg2: memref<1x64xf32, #tpu.memory_space<vmem>>, %arg3: memref<32x64xf32, #tpu.memory_space<vmem>>) attributes {dimension_semantics = [], scalar_prefetch = 0 : i64, scratch_operands = 0 : i64, tpu.core_type = #tpu.core_type<tc>} {
    %c0 = arith.constant 0 : index
    %c0_0 = arith.constant 0 : index
    %0 = vector.load %arg0[%c0, %c0_0] : memref<32x192xbf16, #tpu.memory_space<vmem>>, vector<32x192xbf16>
    %c0_1 = arith.constant 0 : index
    %c0_2 = arith.constant 0 : index
    %1 = vector.load %arg1[%c0_1, %c0_2] : memref<192x64xbf16, #tpu.memory_space<vmem>>, vector<192x64xbf16>
    %cst = arith.constant dense<0.000000e+00> : vector<32x64xf32>
    %2 = tpu.matmul %0, %1, %cst {dimension_numbers = #tpu.dot_dimension_numbers<[1], [0], [0], [1], [0, 0, 1, 1], [], []>} : vector<32x192xbf16>, vector<192x64xbf16>, vector<32x64xf32> -> vector<32x64xf32>
    %c0_3 = arith.constant 0 : index
    %c0_4 = arith.constant 0 : index
    %3 = vector.load %arg2[%c0_3, %c0_4] : memref<1x64xf32, #tpu.memory_space<vmem>>, vector<1x64xf32>
    %4 = vector.broadcast %3 : vector<1x64xf32> to vector<32x64xf32>
    %5 = arith.addf %2, %4 : vector<32x64xf32>
    %c0_5 = arith.constant 0 : index
    %c0_6 = arith.constant 0 : index
    %6 = vector.load %arg3[%c0_5, %c0_6] : memref<32x64xf32, #tpu.memory_space<vmem>>, vector<32x64xf32>
    tpu.vector_store %arg3[%c0_5, %c0_6], %5 {strides = array<i32>} : memref<32x64xf32, #tpu.memory_space<vmem>>, vector<32x64xf32>,
    return
  }
}

module attributes {stable_mosaic.version = 11 : i64} {
  func.func @_fused_layers_kernel(%arg0: i32, %arg1: i32, %arg2: memref<1x20x64xf32, #tpu.memory_space<vmem>>, %arg3: memref<1x1x64xf32, #tpu.memory_space<vmem>>, %arg4: memref<1x64x256xbf16, #tpu.memory_space<vmem>>, %arg5: memref<1x4x128xf32, #tpu.memory_space<vmem>>, %arg6: memref<1x1x128xf32, #tpu.memory_space<vmem>>, %arg7: memref<1x128x160xf32, #tpu.memory_space<vmem>>, %arg8: memref<1x1x128xf32, #tpu.memory_space<vmem>>, %arg9: memref<1x16x128xf32, #tpu.memory_space<vmem>>, %arg10: memref<1x1x128xf32, #tpu.memory_space<vmem>>, %arg11: memref<1x128x64xbf16, #tpu.memory_space<vmem>>, %arg12: memref<1x64xf32, #tpu.memory_space<vmem>>, %arg13: memref<64x16xbf16, #tpu.memory_space<vmem>>, %arg14: memref<4x16xf32, #tpu.memory_space<vmem>>, %arg15: memref<1x4x16xf32, #tpu.memory_space<vmem>>, %arg16: memref<20x64xf32, #tpu.memory_space<vmem>>, %arg17: memref<20x64xf32, #tpu.memory_space<vmem>>, %arg18: memref<20x16x128xf32, #tpu.memory_space<vmem>>, %arg19: memref<20x16x128xf32, #tpu.memory_space<vmem>>) attributes {dimension_semantics = [#tpu.dimension_semantics<parallel>, #tpu.dimension_semantics<arbitrary>], iteration_bounds = array<i64: 2, 4>, scalar_prefetch = 0 : i64, scratch_operands = 4 : i64, tpu.core_type = #tpu.core_type<tc>, window_params = [{transform_indices = @transform_0, window_bounds = array<i64: 1, 20, 64>}, {transform_indices = @transform_1, window_bounds = array<i64: 1, 1, 64>}, {transform_indices = @transform_2, window_bounds = array<i64: 1, 64, 256>}, {transform_indices = @transform_3, window_bounds = array<i64: 1, 4, 128>}, {transform_indices = @transform_4, window_bounds = array<i64: 1, 1, 128>}, {transform_indices = @transform_5, window_bounds = array<i64: 1, 128, 160>}, {transform_indices = @transform_6, window_bounds = array<i64: 1, 1, 128>}, {transform_indices = @transform_7, window_bounds = array<i64: 1, 16, 128>}, {transform_indices = @transform_8, window_bounds = array<i64: 1, 1, 128>}, {transform_indices = @transform_9, window_bounds = array<i64: 1, 128, 64>}, {pipeline_mode = #tpu.pipeline_mode<synchronous>, transform_indices = @transform_10, window_bounds = array<i64: 1, 64>}, {pipeline_mode = #tpu.pipeline_mode<synchronous>, transform_indices = @transform_11, window_bounds = array<i64: 64, 16>}, {pipeline_mode = #tpu.pipeline_mode<synchronous>, transform_indices = @transform_12, window_bounds = array<i64: 4, 16>}, {transform_indices = @transform_13, window_bounds = array<i64: 1, 4, 16>}]} {
    %c0_i32 = arith.constant 0 : i32
    %0 = arith.cmpi eq, %arg1, %c0_i32 : i32
    %1 = arith.extui %0 : i1 to i32
    %c0_i32_0 = arith.constant 0 : i32
    %2 = arith.cmpi ne, %1, %c0_i32_0 : i32
    scf.if %2 {
      %c0_315 = arith.constant 0 : index
      %c0_316 = arith.constant 0 : index
      %c0_317 = arith.constant 0 : index
      %761 = vector.load %arg2[%c0_315, %c0_316, %c0_317] : memref<1x20x64xf32, #tpu.memory_space<vmem>>, vector<1x20x64xf32>
      %762 = vector.shape_cast %761 : vector<1x20x64xf32> to vector<20x64xf32>
      %c0_318 = arith.constant 0 : index
      %c0_319 = arith.constant 0 : index
      %763 = vector.load %arg16[%c0_318, %c0_319] : memref<20x64xf32, #tpu.memory_space<vmem>>, vector<20x64xf32>
      tpu.vector_store %arg16[%c0_318, %c0_319], %762 {strides = array<i32>} : memref<20x64xf32, #tpu.memory_space<vmem>>, vector<20x64xf32>,
      %cst_320 = arith.constant 0.000000e+00 : f32
      %764 = vector.broadcast %cst_320 : f32 to vector<20x64xf32>
      %c0_321 = arith.constant 0 : index
      %c0_322 = arith.constant 0 : index
      %765 = vector.load %arg17[%c0_321, %c0_322] : memref<20x64xf32, #tpu.memory_space<vmem>>, vector<20x64xf32>
      tpu.vector_store %arg17[%c0_321, %c0_322], %764 {strides = array<i32>} : memref<20x64xf32, #tpu.memory_space<vmem>>, vector<20x64xf32>,
    } else {
    }
    %c0 = arith.constant 0 : index
    %c0_1 = arith.constant 0 : index
    %3 = vector.load %arg16[%c0, %c0_1] : memref<20x64xf32, #tpu.memory_space<vmem>>, vector<20x64xf32>
    %c0_2 = arith.constant 0 : index
    %c0_3 = arith.constant 0 : index
    %4 = vector.load %arg17[%c0_2, %c0_3] : memref<20x64xf32, #tpu.memory_space<vmem>>, vector<20x64xf32>
    %5 = arith.addf %3, %4 : vector<20x64xf32>
    %c0_4 = arith.constant 0 : index
    %c0_5 = arith.constant 0 : index
    %6 = vector.load %arg17[%c0_4, %c0_5] : memref<20x64xf32, #tpu.memory_space<vmem>>, vector<20x64xf32>
    tpu.vector_store %arg17[%c0_4, %c0_5], %5 {strides = array<i32>} : memref<20x64xf32, #tpu.memory_space<vmem>>, vector<20x64xf32>,
    %7 = arith.mulf %5, %5 : vector<20x64xf32>
    %cst = arith.constant dense<0.000000e+00> : vector<20xf32>
    %8 = vector.multi_reduction <add>, %7, %cst [1] : vector<20x64xf32> to vector<20xf32>
    %9 = vector.shape_cast %8 : vector<20xf32> to vector<20x1xf32>
    %cst_6 = arith.constant 6.400000e+01 : f32
    %10 = vector.broadcast %cst_6 : f32 to vector<20x1xf32>
    %11 = arith.divf %9, %10 : vector<20x1xf32>
    %cst_7 = arith.constant 9.99999974E-6 : f32
    %12 = vector.broadcast %cst_7 : f32 to vector<20x1xf32>
    %13 = arith.addf %11, %12 : vector<20x1xf32>
    %14 = math.rsqrt %13 : vector<20x1xf32>
    %15 = vector.broadcast %14 : vector<20x1xf32> to vector<20x64xf32>
    %16 = arith.mulf %5, %15 : vector<20x64xf32>
    %c0_8 = arith.constant 0 : index
    %c0_9 = arith.constant 0 : index
    %c0_10 = arith.constant 0 : index
    %17 = vector.load %arg3[%c0_8, %c0_9, %c0_10] : memref<1x1x64xf32, #tpu.memory_space<vmem>>, vector<1x1x64xf32>
    %18 = vector.shape_cast %17 : vector<1x1x64xf32> to vector<1x64xf32>
    %19 = vector.broadcast %18 : vector<1x64xf32> to vector<20x64xf32>
    %20 = arith.mulf %16, %19 : vector<20x64xf32>
    %21 = arith.truncf %20 : vector<20x64xf32> to vector<20x64xbf16>
    %c0_11 = arith.constant 0 : index
    %c0_12 = arith.constant 0 : index
    %c0_13 = arith.constant 0 : index
    %22 = vector.load %arg4[%c0_11, %c0_12, %c0_13] : memref<1x64x256xbf16, #tpu.memory_space<vmem>>, vector<1x64x256xbf16>
    %23 = vector.shape_cast %22 : vector<1x64x256xbf16> to vector<64x256xbf16>
    %cst_14 = arith.constant dense<0.000000e+00> : vector<20x256xf32>
    %24 = tpu.matmul %21, %23, %cst_14 {dimension_numbers = #tpu.dot_dimension_numbers<[1], [0], [0], [1], [0, 0, 1, 1], [], []>} : vector<20x64xbf16>, vector<64x256xbf16>, vector<20x256xf32> -> vector<20x256xf32>
    %25 = vector.extract_strided_slice %24 {offsets = [0, 0], sizes = [20, 128], strides = [1, 1]} : vector<20x256xf32> to vector<20x128xf32>
    %26 = vector.extract_strided_slice %24 {offsets = [0, 128], sizes = [20, 128], strides = [1, 1]} : vector<20x256xf32> to vector<20x128xf32>
    %c0_15 = arith.constant 0 : index
    %c0_16 = arith.constant 0 : index
    %c0_17 = arith.constant 0 : index
    %27 = vector.load %arg5[%c0_15, %c0_16, %c0_17] : memref<1x4x128xf32, #tpu.memory_space<vmem>>, vector<1x4x128xf32>
    %28 = vector.shape_cast %27 : vector<1x4x128xf32> to vector<4x128xf32>
    %c0_18 = arith.constant 0 : index
    %c0_19 = arith.constant 0 : index
    %c0_20 = arith.constant 0 : index
    %29 = vector.load %arg6[%c0_18, %c0_19, %c0_20] : memref<1x1x128xf32, #tpu.memory_space<vmem>>, vector<1x1x128xf32>
    %30 = vector.shape_cast %29 : vector<1x1x128xf32> to vector<1x128xf32>
    %31 = vector.extract_strided_slice %28 {offsets = [3, 0], sizes = [1, 128], strides = [1, 1]} : vector<4x128xf32> to vector<1x128xf32>
    %32 = vector.broadcast %31 : vector<1x128xf32> to vector<20x128xf32>
    %33 = arith.mulf %25, %32 : vector<20x128xf32>
    %34 = vector.broadcast %30 : vector<1x128xf32> to vector<20x128xf32>
    %35 = arith.addf %34, %33 : vector<20x128xf32>
    %cst_21 = arith.constant 0.000000e+00 : f32
    %36 = vector.broadcast %cst_21 : f32 to vector<1x128xf32>
    %37 = vector.extract_strided_slice %25 {offsets = [0, 0], sizes = [19, 128], strides = [1, 1]} : vector<20x128xf32> to vector<19x128xf32>
    %38 = tpu.concatenate %36, %37 in 0 : vector<1x128xf32>, vector<19x128xf32> -> vector<20x128xf32>
    %39 = vector.extract_strided_slice %28 {offsets = [2, 0], sizes = [1, 128], strides = [1, 1]} : vector<4x128xf32> to vector<1x128xf32>
    %40 = vector.broadcast %39 : vector<1x128xf32> to vector<20x128xf32>
    %41 = arith.mulf %38, %40 : vector<20x128xf32>
    %42 = arith.addf %35, %41 : vector<20x128xf32>
    %cst_22 = arith.constant 0.000000e+00 : f32
    %43 = vector.broadcast %cst_22 : f32 to vector<2x128xf32>
    %44 = vector.extract_strided_slice %25 {offsets = [0, 0], sizes = [18, 128], strides = [1, 1]} : vector<20x128xf32> to vector<18x128xf32>
    %45 = tpu.concatenate %43, %44 in 0 : vector<2x128xf32>, vector<18x128xf32> -> vector<20x128xf32>
    %46 = vector.extract_strided_slice %28 {offsets = [1, 0], sizes = [1, 128], strides = [1, 1]} : vector<4x128xf32> to vector<1x128xf32>
    %47 = vector.broadcast %46 : vector<1x128xf32> to vector<20x128xf32>
    %48 = arith.mulf %45, %47 : vector<20x128xf32>
    %49 = arith.addf %42, %48 : vector<20x128xf32>
    %cst_23 = arith.constant 0.000000e+00 : f32
    %50 = vector.broadcast %cst_23 : f32 to vector<3x128xf32>
    %51 = vector.extract_strided_slice %25 {offsets = [0, 0], sizes = [17, 128], strides = [1, 1]} : vector<20x128xf32> to vector<17x128xf32>
    %52 = tpu.concatenate %50, %51 in 0 : vector<3x128xf32>, vector<17x128xf32> -> vector<20x128xf32>
    %53 = vector.extract_strided_slice %28 {offsets = [0, 0], sizes = [1, 128], strides = [1, 1]} : vector<4x128xf32> to vector<1x128xf32>
    %54 = vector.broadcast %53 : vector<1x128xf32> to vector<20x128xf32>
    %55 = arith.mulf %52, %54 : vector<20x128xf32>
    %56 = arith.addf %49, %55 : vector<20x128xf32>
    %cst_24 = arith.constant 0.000000e+00 : f32
    %57 = vector.broadcast %cst_24 : f32 to vector<20x128xf32>
    %58 = arith.subf %57, %56 : vector<20x128xf32>
    %59 = math.exp %58 : vector<20x128xf32>
    %cst_25 = arith.constant 1.000000e+00 : f32
    %60 = vector.broadcast %cst_25 : f32 to vector<20x128xf32>
    %61 = arith.addf %60, %59 : vector<20x128xf32>
    %cst_26 = arith.constant 1.000000e+00 : f32
    %62 = vector.broadcast %cst_26 : f32 to vector<20x128xf32>
    %63 = arith.divf %62, %61 : vector<20x128xf32>
    %64 = arith.mulf %56, %63 : vector<20x128xf32>
    %c0_27 = arith.constant 0 : index
    %c0_28 = arith.constant 0 : index
    %c0_29 = arith.constant 0 : index
    %65 = vector.load %arg7[%c0_27, %c0_28, %c0_29] : memref<1x128x160xf32, #tpu.memory_space<vmem>>, vector<1x128x160xf32>
    %66 = vector.shape_cast %65 : vector<1x128x160xf32> to vector<128x160xf32>
    %cst_30 = arith.constant dense<0.000000e+00> : vector<20x160xf32>
    %67 = tpu.matmul %64, %66, %cst_30 {dimension_numbers = #tpu.dot_dimension_numbers<[1], [0], [0], [1], [0, 0, 1, 1], [], []>} : vector<20x128xf32>, vector<128x160xf32>, vector<20x160xf32> -> vector<20x160xf32>
    %68 = vector.extract_strided_slice %67 {offsets = [0, 0], sizes = [20, 128], strides = [1, 1]} : vector<20x160xf32> to vector<20x128xf32>
    %c0_31 = arith.constant 0 : index
    %c0_32 = arith.constant 0 : index
    %c0_33 = arith.constant 0 : index
    %69 = vector.load %arg8[%c0_31, %c0_32, %c0_33] : memref<1x1x128xf32, #tpu.memory_space<vmem>>, vector<1x1x128xf32>
    %70 = vector.shape_cast %69 : vector<1x1x128xf32> to vector<1x128xf32>
    %71 = vector.broadcast %70 : vector<1x128xf32> to vector<20x128xf32>
    %72 = arith.addf %68, %71 : vector<20x128xf32>
    %73 = vector.extract_strided_slice %67 {offsets = [0, 128], sizes = [20, 32], strides = [1, 1]} : vector<20x160xf32> to vector<20x32xf32>
    %cst_34 = arith.constant 0.000000e+00 : f32
    %74 = vector.broadcast %cst_34 : f32 to vector<20x128xf32>
    %75 = arith.maximumf %72, %74 : vector<20x128xf32>
    %76 = math.absf %72 : vector<20x128xf32>
    %cst_35 = arith.constant 0.000000e+00 : f32
    %77 = vector.broadcast %cst_35 : f32 to vector<20x128xf32>
    %78 = arith.subf %77, %76 : vector<20x128xf32>
    %79 = math.exp %78 : vector<20x128xf32>
    %cst_36 = arith.constant 1.000000e+00 : f32
    %80 = vector.broadcast %cst_36 : f32 to vector<20x128xf32>
    %81 = arith.addf %80, %79 : vector<20x128xf32>
    %82 = math.log %81 : vector<20x128xf32>
    %83 = arith.addf %75, %82 : vector<20x128xf32>
    %84 = arith.mulf %83, %64 : vector<20x128xf32>
    %cst_37 = arith.constant 0.000000e+00 : f32
    %85 = vector.broadcast %cst_37 : f32 to vector<20x128xf32>
    %86 = arith.subf %85, %26 : vector<20x128xf32>
    %87 = math.exp %86 : vector<20x128xf32>
    %cst_38 = arith.constant 1.000000e+00 : f32
    %88 = vector.broadcast %cst_38 : f32 to vector<20x128xf32>
    %89 = arith.addf %88, %87 : vector<20x128xf32>
    %cst_39 = arith.constant 1.000000e+00 : f32
    %90 = vector.broadcast %cst_39 : f32 to vector<20x128xf32>
    %91 = arith.divf %90, %89 : vector<20x128xf32>
    %92 = arith.mulf %26, %91 : vector<20x128xf32>
    %c0_40 = arith.constant 0 : index
    %c0_41 = arith.constant 0 : index
    %c0_42 = arith.constant 0 : index
    %93 = vector.load %arg9[%c0_40, %c0_41, %c0_42] : memref<1x16x128xf32, #tpu.memory_space<vmem>>, vector<1x16x128xf32>
    %94 = vector.shape_cast %93 : vector<1x16x128xf32> to vector<16x128xf32>
    %95 = tpu.iota {dimensions = array<i32: 0>} : vector<32x32xi32>
    %96 = tpu.iota {dimensions = array<i32: 1>} : vector<32x32xi32>
    %97 = arith.cmpi eq, %95, %96 : vector<32x32xi32>
    %98 = arith.extui %97 : vector<32x32xi1> to vector<32x32xi32>
    %99 = arith.sitofp %98 : vector<32x32xi32> to vector<32x32xf32>
    %100 = vector.extract_strided_slice %73 {offsets = [0, 0], sizes = [1, 32], strides = [1, 1]} : vector<20x32xf32> to vector<1x32xf32>
    %101 = vector.broadcast %100 : vector<1x32xf32> to vector<32x32xf32>
    %102 = arith.mulf %101, %99 : vector<32x32xf32>
    %cst_43 = arith.constant dense<0.000000e+00> : vector<32xf32>
    %103 = vector.multi_reduction <add>, %102, %cst_43 [1] : vector<32x32xf32> to vector<32xf32>
    %104 = vector.shape_cast %103 : vector<32xf32> to vector<32x1xf32>
    %105 = vector.extract_strided_slice %83 {offsets = [0, 0], sizes = [1, 128], strides = [1, 1]} : vector<20x128xf32> to vector<1x128xf32>
    %106 = vector.broadcast %105 : vector<1x128xf32> to vector<16x128xf32>
    %107 = arith.mulf %106, %94 : vector<16x128xf32>
    %108 = math.exp %107 : vector<16x128xf32>
    %c0_44 = arith.constant 0 : index
    %c0_45 = arith.constant 0 : index
    %c0_46 = arith.constant 0 : index
    %109 = vector.load %arg18[%c0_44, %c0_45, %c0_46] : memref<20x16x128xf32, #tpu.memory_space<vmem>>, vector<1x16x128xf32>
    %110 = vector.shape_cast %109 : vector<1x16x128xf32> to vector<16x128xf32>
    %111 = vector.shape_cast %108 : vector<16x128xf32> to vector<1x16x128xf32>
    tpu.vector_store %arg18[%c0_44, %c0_45, %c0_46], %111 {strides = array<i32>} : memref<20x16x128xf32, #tpu.memory_space<vmem>>, vector<1x16x128xf32>,
    %112 = vector.extract_strided_slice %104 {offsets = [0, 0], sizes = [16, 1], strides = [1, 1]} : vector<32x1xf32> to vector<16x1xf32>
    %113 = vector.extract_strided_slice %84 {offsets = [0, 0], sizes = [1, 128], strides = [1, 1]} : vector<20x128xf32> to vector<1x128xf32>
    %114 = vector.broadcast %112 : vector<16x1xf32> to vector<16x128xf32>
    %115 = vector.broadcast %113 : vector<1x128xf32> to vector<16x128xf32>
    %116 = arith.mulf %114, %115 : vector<16x128xf32>
    %c0_47 = arith.constant 0 : index
    %c0_48 = arith.constant 0 : index
    %c0_49 = arith.constant 0 : index
    %117 = vector.load %arg19[%c0_47, %c0_48, %c0_49] : memref<20x16x128xf32, #tpu.memory_space<vmem>>, vector<1x16x128xf32>
    %118 = vector.shape_cast %117 : vector<1x16x128xf32> to vector<16x128xf32>
    %119 = vector.shape_cast %116 : vector<16x128xf32> to vector<1x16x128xf32>
    tpu.vector_store %arg19[%c0_47, %c0_48, %c0_49], %119 {strides = array<i32>} : memref<20x16x128xf32, #tpu.memory_space<vmem>>, vector<1x16x128xf32>,
    %120 = vector.extract_strided_slice %104 {offsets = [16, 0], sizes = [16, 1], strides = [1, 1]} : vector<32x1xf32> to vector<16x1xf32>
    %121 = vector.extract_strided_slice %73 {offsets = [1, 0], sizes = [1, 32], strides = [1, 1]} : vector<20x32xf32> to vector<1x32xf32>
    %122 = vector.broadcast %121 : vector<1x32xf32> to vector<32x32xf32>
    %123 = arith.mulf %122, %99 : vector<32x32xf32>
    %cst_50 = arith.constant dense<0.000000e+00> : vector<32xf32>
    %124 = vector.multi_reduction <add>, %123, %cst_50 [1] : vector<32x32xf32> to vector<32xf32>
    %125 = vector.shape_cast %124 : vector<32xf32> to vector<32x1xf32>
    %126 = vector.extract_strided_slice %83 {offsets = [1, 0], sizes = [1, 128], strides = [1, 1]} : vector<20x128xf32> to vector<1x128xf32>
    %127 = vector.broadcast %126 : vector<1x128xf32> to vector<16x128xf32>
    %128 = arith.mulf %127, %94 : vector<16x128xf32>
    %129 = math.exp %128 : vector<16x128xf32>
    %c1 = arith.constant 1 : index
    %c0_51 = arith.constant 0 : index
    %c0_52 = arith.constant 0 : index
    %130 = vector.load %arg18[%c1, %c0_51, %c0_52] : memref<20x16x128xf32, #tpu.memory_space<vmem>>, vector<1x16x128xf32>
    %131 = vector.shape_cast %130 : vector<1x16x128xf32> to vector<16x128xf32>
    %132 = vector.shape_cast %129 : vector<16x128xf32> to vector<1x16x128xf32>
    tpu.vector_store %arg18[%c1, %c0_51, %c0_52], %132 {strides = array<i32>} : memref<20x16x128xf32, #tpu.memory_space<vmem>>, vector<1x16x128xf32>,
    %133 = vector.extract_strided_slice %125 {offsets = [0, 0], sizes = [16, 1], strides = [1, 1]} : vector<32x1xf32> to vector<16x1xf32>
    %134 = vector.extract_strided_slice %84 {offsets = [1, 0], sizes = [1, 128], strides = [1, 1]} : vector<20x128xf32> to vector<1x128xf32>
    %135 = vector.broadcast %133 : vector<16x1xf32> to vector<16x128xf32>
    %136 = vector.broadcast %134 : vector<1x128xf32> to vector<16x128xf32>
    %137 = arith.mulf %135, %136 : vector<16x128xf32>
    %c1_53 = arith.constant 1 : index
    %c0_54 = arith.constant 0 : index
    %c0_55 = arith.constant 0 : index
    %138 = vector.load %arg19[%c1_53, %c0_54, %c0_55] : memref<20x16x128xf32, #tpu.memory_space<vmem>>, vector<1x16x128xf32>
    %139 = vector.shape_cast %138 : vector<1x16x128xf32> to vector<16x128xf32>
    %140 = vector.shape_cast %137 : vector<16x128xf32> to vector<1x16x128xf32>
    tpu.vector_store %arg19[%c1_53, %c0_54, %c0_55], %140 {strides = array<i32>} : memref<20x16x128xf32, #tpu.memory_space<vmem>>, vector<1x16x128xf32>,
    %141 = vector.extract_strided_slice %125 {offsets = [16, 0], sizes = [16, 1], strides = [1, 1]} : vector<32x1xf32> to vector<16x1xf32>
    %142 = vector.extract_strided_slice %73 {offsets = [2, 0], sizes = [1, 32], strides = [1, 1]} : vector<20x32xf32> to vector<1x32xf32>
    %143 = vector.broadcast %142 : vector<1x32xf32> to vector<32x32xf32>
    %144 = arith.mulf %143, %99 : vector<32x32xf32>
    %cst_56 = arith.constant dense<0.000000e+00> : vector<32xf32>
    %145 = vector.multi_reduction <add>, %144, %cst_56 [1] : vector<32x32xf32> to vector<32xf32>
    %146 = vector.shape_cast %145 : vector<32xf32> to vector<32x1xf32>
    %147 = vector.extract_strided_slice %83 {offsets = [2, 0], sizes = [1, 128], strides = [1, 1]} : vector<20x128xf32> to vector<1x128xf32>
    %148 = vector.broadcast %147 : vector<1x128xf32> to vector<16x128xf32>
    %149 = arith.mulf %148, %94 : vector<16x128xf32>
    %150 = math.exp %149 : vector<16x128xf32>
    %c2 = arith.constant 2 : index
    %c0_57 = arith.constant 0 : index
    %c0_58 = arith.constant 0 : index
    %151 = vector.load %arg18[%c2, %c0_57, %c0_58] : memref<20x16x128xf32, #tpu.memory_space<vmem>>, vector<1x16x128xf32>
    %152 = vector.shape_cast %151 : vector<1x16x128xf32> to vector<16x128xf32>
    %153 = vector.shape_cast %150 : vector<16x128xf32> to vector<1x16x128xf32>
    tpu.vector_store %arg18[%c2, %c0_57, %c0_58], %153 {strides = array<i32>} : memref<20x16x128xf32, #tpu.memory_space<vmem>>, vector<1x16x128xf32>,
    %154 = vector.extract_strided_slice %146 {offsets = [0, 0], sizes = [16, 1], strides = [1, 1]} : vector<32x1xf32> to vector<16x1xf32>
    %155 = vector.extract_strided_slice %84 {offsets = [2, 0], sizes = [1, 128], strides = [1, 1]} : vector<20x128xf32> to vector<1x128xf32>
    %156 = vector.broadcast %154 : vector<16x1xf32> to vector<16x128xf32>
    %157 = vector.broadcast %155 : vector<1x128xf32> to vector<16x128xf32>
    %158 = arith.mulf %156, %157 : vector<16x128xf32>
    %c2_59 = arith.constant 2 : index
    %c0_60 = arith.constant 0 : index
    %c0_61 = arith.constant 0 : index
    %159 = vector.load %arg19[%c2_59, %c0_60, %c0_61] : memref<20x16x128xf32, #tpu.memory_space<vmem>>, vector<1x16x128xf32>
    %160 = vector.shape_cast %159 : vector<1x16x128xf32> to vector<16x128xf32>
    %161 = vector.shape_cast %158 : vector<16x128xf32> to vector<1x16x128xf32>
    tpu.vector_store %arg19[%c2_59, %c0_60, %c0_61], %161 {strides = array<i32>} : memref<20x16x128xf32, #tpu.memory_space<vmem>>, vector<1x16x128xf32>,
    %162 = vector.extract_strided_slice %146 {offsets = [16, 0], sizes = [16, 1], strides = [1, 1]} : vector<32x1xf32> to vector<16x1xf32>
    %163 = vector.extract_strided_slice %73 {offsets = [3, 0], sizes = [1, 32], strides = [1, 1]} : vector<20x32xf32> to vector<1x32xf32>
    %164 = vector.broadcast %163 : vector<1x32xf32> to vector<32x32xf32>
    %165 = arith.mulf %164, %99 : vector<32x32xf32>
    %cst_62 = arith.constant dense<0.000000e+00> : vector<32xf32>
    %166 = vector.multi_reduction <add>, %165, %cst_62 [1] : vector<32x32xf32> to vector<32xf32>
    %167 = vector.shape_cast %166 : vector<32xf32> to vector<32x1xf32>
    %168 = vector.extract_strided_slice %83 {offsets = [3, 0], sizes = [1, 128], strides = [1, 1]} : vector<20x128xf32> to vector<1x128xf32>
    %169 = vector.broadcast %168 : vector<1x128xf32> to vector<16x128xf32>
    %170 = arith.mulf %169, %94 : vector<16x128xf32>
    %171 = math.exp %170 : vector<16x128xf32>
    %c3 = arith.constant 3 : index
    %c0_63 = arith.constant 0 : index
    %c0_64 = arith.constant 0 : index
    %172 = vector.load %arg18[%c3, %c0_63, %c0_64] : memref<20x16x128xf32, #tpu.memory_space<vmem>>, vector<1x16x128xf32>
    %173 = vector.shape_cast %172 : vector<1x16x128xf32> to vector<16x128xf32>
    %174 = vector.shape_cast %171 : vector<16x128xf32> to vector<1x16x128xf32>
    tpu.vector_store %arg18[%c3, %c0_63, %c0_64], %174 {strides = array<i32>} : memref<20x16x128xf32, #tpu.memory_space<vmem>>, vector<1x16x128xf32>,
    %175 = vector.extract_strided_slice %167 {offsets = [0, 0], sizes = [16, 1], strides = [1, 1]} : vector<32x1xf32> to vector<16x1xf32>
    %176 = vector.extract_strided_slice %84 {offsets = [3, 0], sizes = [1, 128], strides = [1, 1]} : vector<20x128xf32> to vector<1x128xf32>
    %177 = vector.broadcast %175 : vector<16x1xf32> to vector<16x128xf32>
    %178 = vector.broadcast %176 : vector<1x128xf32> to vector<16x128xf32>
    %179 = arith.mulf %177, %178 : vector<16x128xf32>
    %c3_65 = arith.constant 3 : index
    %c0_66 = arith.constant 0 : index
    %c0_67 = arith.constant 0 : index
    %180 = vector.load %arg19[%c3_65, %c0_66, %c0_67] : memref<20x16x128xf32, #tpu.memory_space<vmem>>, vector<1x16x128xf32>
    %181 = vector.shape_cast %180 : vector<1x16x128xf32> to vector<16x128xf32>
    %182 = vector.shape_cast %179 : vector<16x128xf32> to vector<1x16x128xf32>
    tpu.vector_store %arg19[%c3_65, %c0_66, %c0_67], %182 {strides = array<i32>} : memref<20x16x128xf32, #tpu.memory_space<vmem>>, vector<1x16x128xf32>,
    %183 = vector.extract_strided_slice %167 {offsets = [16, 0], sizes = [16, 1], strides = [1, 1]} : vector<32x1xf32> to vector<16x1xf32>
    %184 = vector.extract_strided_slice %73 {offsets = [4, 0], sizes = [1, 32], strides = [1, 1]} : vector<20x32xf32> to vector<1x32xf32>
    %185 = vector.broadcast %184 : vector<1x32xf32> to vector<32x32xf32>
    %186 = arith.mulf %185, %99 : vector<32x32xf32>
    %cst_68 = arith.constant dense<0.000000e+00> : vector<32xf32>
    %187 = vector.multi_reduction <add>, %186, %cst_68 [1] : vector<32x32xf32> to vector<32xf32>
    %188 = vector.shape_cast %187 : vector<32xf32> to vector<32x1xf32>
    %189 = vector.extract_strided_slice %83 {offsets = [4, 0], sizes = [1, 128], strides = [1, 1]} : vector<20x128xf32> to vector<1x128xf32>
    %190 = vector.broadcast %189 : vector<1x128xf32> to vector<16x128xf32>
    %191 = arith.mulf %190, %94 : vector<16x128xf32>
    %192 = math.exp %191 : vector<16x128xf32>
    %c4 = arith.constant 4 : index
    %c0_69 = arith.constant 0 : index
    %c0_70 = arith.constant 0 : index
    %193 = vector.load %arg18[%c4, %c0_69, %c0_70] : memref<20x16x128xf32, #tpu.memory_space<vmem>>, vector<1x16x128xf32>
    %194 = vector.shape_cast %193 : vector<1x16x128xf32> to vector<16x128xf32>
    %195 = vector.shape_cast %192 : vector<16x128xf32> to vector<1x16x128xf32>
    tpu.vector_store %arg18[%c4, %c0_69, %c0_70], %195 {strides = array<i32>} : memref<20x16x128xf32, #tpu.memory_space<vmem>>, vector<1x16x128xf32>,
    %196 = vector.extract_strided_slice %188 {offsets = [0, 0], sizes = [16, 1], strides = [1, 1]} : vector<32x1xf32> to vector<16x1xf32>
    %197 = vector.extract_strided_slice %84 {offsets = [4, 0], sizes = [1, 128], strides = [1, 1]} : vector<20x128xf32> to vector<1x128xf32>
    %198 = vector.broadcast %196 : vector<16x1xf32> to vector<16x128xf32>
    %199 = vector.broadcast %197 : vector<1x128xf32> to vector<16x128xf32>
    %200 = arith.mulf %198, %199 : vector<16x128xf32>
    %c4_71 = arith.constant 4 : index
    %c0_72 = arith.constant 0 : index
    %c0_73 = arith.constant 0 : index
    %201 = vector.load %arg19[%c4_71, %c0_72, %c0_73] : memref<20x16x128xf32, #tpu.memory_space<vmem>>, vector<1x16x128xf32>
    %202 = vector.shape_cast %201 : vector<1x16x128xf32> to vector<16x128xf32>
    %203 = vector.shape_cast %200 : vector<16x128xf32> to vector<1x16x128xf32>
    tpu.vector_store %arg19[%c4_71, %c0_72, %c0_73], %203 {strides = array<i32>} : memref<20x16x128xf32, #tpu.memory_space<vmem>>, vector<1x16x128xf32>,
    %204 = vector.extract_strided_slice %188 {offsets = [16, 0], sizes = [16, 1], strides = [1, 1]} : vector<32x1xf32> to vector<16x1xf32>
    %205 = vector.extract_strided_slice %73 {offsets = [5, 0], sizes = [1, 32], strides = [1, 1]} : vector<20x32xf32> to vector<1x32xf32>
    %206 = vector.broadcast %205 : vector<1x32xf32> to vector<32x32xf32>
    %207 = arith.mulf %206, %99 : vector<32x32xf32>
    %cst_74 = arith.constant dense<0.000000e+00> : vector<32xf32>
    %208 = vector.multi_reduction <add>, %207, %cst_74 [1] : vector<32x32xf32> to vector<32xf32>
    %209 = vector.shape_cast %208 : vector<32xf32> to vector<32x1xf32>
    %210 = vector.extract_strided_slice %83 {offsets = [5, 0], sizes = [1, 128], strides = [1, 1]} : vector<20x128xf32> to vector<1x128xf32>
    %211 = vector.broadcast %210 : vector<1x128xf32> to vector<16x128xf32>
    %212 = arith.mulf %211, %94 : vector<16x128xf32>
    %213 = math.exp %212 : vector<16x128xf32>
    %c5 = arith.constant 5 : index
    %c0_75 = arith.constant 0 : index
    %c0_76 = arith.constant 0 : index
    %214 = vector.load %arg18[%c5, %c0_75, %c0_76] : memref<20x16x128xf32, #tpu.memory_space<vmem>>, vector<1x16x128xf32>
    %215 = vector.shape_cast %214 : vector<1x16x128xf32> to vector<16x128xf32>
    %216 = vector.shape_cast %213 : vector<16x128xf32> to vector<1x16x128xf32>
    tpu.vector_store %arg18[%c5, %c0_75, %c0_76], %216 {strides = array<i32>} : memref<20x16x128xf32, #tpu.memory_space<vmem>>, vector<1x16x128xf32>,
    %217 = vector.extract_strided_slice %209 {offsets = [0, 0], sizes = [16, 1], strides = [1, 1]} : vector<32x1xf32> to vector<16x1xf32>
    %218 = vector.extract_strided_slice %84 {offsets = [5, 0], sizes = [1, 128], strides = [1, 1]} : vector<20x128xf32> to vector<1x128xf32>
    %219 = vector.broadcast %217 : vector<16x1xf32> to vector<16x128xf32>
    %220 = vector.broadcast %218 : vector<1x128xf32> to vector<16x128xf32>
    %221 = arith.mulf %219, %220 : vector<16x128xf32>
    %c5_77 = arith.constant 5 : index
    %c0_78 = arith.constant 0 : index
    %c0_79 = arith.constant 0 : index
    %222 = vector.load %arg19[%c5_77, %c0_78, %c0_79] : memref<20x16x128xf32, #tpu.memory_space<vmem>>, vector<1x16x128xf32>
    %223 = vector.shape_cast %222 : vector<1x16x128xf32> to vector<16x128xf32>
    %224 = vector.shape_cast %221 : vector<16x128xf32> to vector<1x16x128xf32>
    tpu.vector_store %arg19[%c5_77, %c0_78, %c0_79], %224 {strides = array<i32>} : memref<20x16x128xf32, #tpu.memory_space<vmem>>, vector<1x16x128xf32>,
    %225 = vector.extract_strided_slice %209 {offsets = [16, 0], sizes = [16, 1], strides = [1, 1]} : vector<32x1xf32> to vector<16x1xf32>
    %226 = vector.extract_strided_slice %73 {offsets = [6, 0], sizes = [1, 32], strides = [1, 1]} : vector<20x32xf32> to vector<1x32xf32>
    %227 = vector.broadcast %226 : vector<1x32xf32> to vector<32x32xf32>
    %228 = arith.mulf %227, %99 : vector<32x32xf32>
    %cst_80 = arith.constant dense<0.000000e+00> : vector<32xf32>
    %229 = vector.multi_reduction <add>, %228, %cst_80 [1] : vector<32x32xf32> to vector<32xf32>
    %230 = vector.shape_cast %229 : vector<32xf32> to vector<32x1xf32>
    %231 = vector.extract_strided_slice %83 {offsets = [6, 0], sizes = [1, 128], strides = [1, 1]} : vector<20x128xf32> to vector<1x128xf32>
    %232 = vector.broadcast %231 : vector<1x128xf32> to vector<16x128xf32>
    %233 = arith.mulf %232, %94 : vector<16x128xf32>
    %234 = math.exp %233 : vector<16x128xf32>
    %c6 = arith.constant 6 : index
    %c0_81 = arith.constant 0 : index
    %c0_82 = arith.constant 0 : index
    %235 = vector.load %arg18[%c6, %c0_81, %c0_82] : memref<20x16x128xf32, #tpu.memory_space<vmem>>, vector<1x16x128xf32>
    %236 = vector.shape_cast %235 : vector<1x16x128xf32> to vector<16x128xf32>
    %237 = vector.shape_cast %234 : vector<16x128xf32> to vector<1x16x128xf32>
    tpu.vector_store %arg18[%c6, %c0_81, %c0_82], %237 {strides = array<i32>} : memref<20x16x128xf32, #tpu.memory_space<vmem>>, vector<1x16x128xf32>,
    %238 = vector.extract_strided_slice %230 {offsets = [0, 0], sizes = [16, 1], strides = [1, 1]} : vector<32x1xf32> to vector<16x1xf32>
    %239 = vector.extract_strided_slice %84 {offsets = [6, 0], sizes = [1, 128], strides = [1, 1]} : vector<20x128xf32> to vector<1x128xf32>
    %240 = vector.broadcast %238 : vector<16x1xf32> to vector<16x128xf32>
    %241 = vector.broadcast %239 : vector<1x128xf32> to vector<16x128xf32>
    %242 = arith.mulf %240, %241 : vector<16x128xf32>
    %c6_83 = arith.constant 6 : index
    %c0_84 = arith.constant 0 : index
    %c0_85 = arith.constant 0 : index
    %243 = vector.load %arg19[%c6_83, %c0_84, %c0_85] : memref<20x16x128xf32, #tpu.memory_space<vmem>>, vector<1x16x128xf32>
    %244 = vector.shape_cast %243 : vector<1x16x128xf32> to vector<16x128xf32>
    %245 = vector.shape_cast %242 : vector<16x128xf32> to vector<1x16x128xf32>
    tpu.vector_store %arg19[%c6_83, %c0_84, %c0_85], %245 {strides = array<i32>} : memref<20x16x128xf32, #tpu.memory_space<vmem>>, vector<1x16x128xf32>,
    %246 = vector.extract_strided_slice %230 {offsets = [16, 0], sizes = [16, 1], strides = [1, 1]} : vector<32x1xf32> to vector<16x1xf32>
    %247 = vector.extract_strided_slice %73 {offsets = [7, 0], sizes = [1, 32], strides = [1, 1]} : vector<20x32xf32> to vector<1x32xf32>
    %248 = vector.broadcast %247 : vector<1x32xf32> to vector<32x32xf32>
    %249 = arith.mulf %248, %99 : vector<32x32xf32>
    %cst_86 = arith.constant dense<0.000000e+00> : vector<32xf32>
    %250 = vector.multi_reduction <add>, %249, %cst_86 [1] : vector<32x32xf32> to vector<32xf32>
    %251 = vector.shape_cast %250 : vector<32xf32> to vector<32x1xf32>
    %252 = vector.extract_strided_slice %83 {offsets = [7, 0], sizes = [1, 128], strides = [1, 1]} : vector<20x128xf32> to vector<1x128xf32>
    %253 = vector.broadcast %252 : vector<1x128xf32> to vector<16x128xf32>
    %254 = arith.mulf %253, %94 : vector<16x128xf32>
    %255 = math.exp %254 : vector<16x128xf32>
    %c7 = arith.constant 7 : index
    %c0_87 = arith.constant 0 : index
    %c0_88 = arith.constant 0 : index
    %256 = vector.load %arg18[%c7, %c0_87, %c0_88] : memref<20x16x128xf32, #tpu.memory_space<vmem>>, vector<1x16x128xf32>
    %257 = vector.shape_cast %256 : vector<1x16x128xf32> to vector<16x128xf32>
    %258 = vector.shape_cast %255 : vector<16x128xf32> to vector<1x16x128xf32>
    tpu.vector_store %arg18[%c7, %c0_87, %c0_88], %258 {strides = array<i32>} : memref<20x16x128xf32, #tpu.memory_space<vmem>>, vector<1x16x128xf32>,
    %259 = vector.extract_strided_slice %251 {offsets = [0, 0], sizes = [16, 1], strides = [1, 1]} : vector<32x1xf32> to vector<16x1xf32>
    %260 = vector.extract_strided_slice %84 {offsets = [7, 0], sizes = [1, 128], strides = [1, 1]} : vector<20x128xf32> to vector<1x128xf32>
    %261 = vector.broadcast %259 : vector<16x1xf32> to vector<16x128xf32>
    %262 = vector.broadcast %260 : vector<1x128xf32> to vector<16x128xf32>
    %263 = arith.mulf %261, %262 : vector<16x128xf32>
    %c7_89 = arith.constant 7 : index
    %c0_90 = arith.constant 0 : index
    %c0_91 = arith.constant 0 : index
    %264 = vector.load %arg19[%c7_89, %c0_90, %c0_91] : memref<20x16x128xf32, #tpu.memory_space<vmem>>, vector<1x16x128xf32>
    %265 = vector.shape_cast %264 : vector<1x16x128xf32> to vector<16x128xf32>
    %266 = vector.shape_cast %263 : vector<16x128xf32> to vector<1x16x128xf32>
    tpu.vector_store %arg19[%c7_89, %c0_90, %c0_91], %266 {strides = array<i32>} : memref<20x16x128xf32, #tpu.memory_space<vmem>>, vector<1x16x128xf32>,
    %267 = vector.extract_strided_slice %251 {offsets = [16, 0], sizes = [16, 1], strides = [1, 1]} : vector<32x1xf32> to vector<16x1xf32>
    %268 = vector.extract_strided_slice %73 {offsets = [8, 0], sizes = [1, 32], strides = [1, 1]} : vector<20x32xf32> to vector<1x32xf32>
    %269 = vector.broadcast %268 : vector<1x32xf32> to vector<32x32xf32>
    %270 = arith.mulf %269, %99 : vector<32x32xf32>
    %cst_92 = arith.constant dense<0.000000e+00> : vector<32xf32>
    %271 = vector.multi_reduction <add>, %270, %cst_92 [1] : vector<32x32xf32> to vector<32xf32>
    %272 = vector.shape_cast %271 : vector<32xf32> to vector<32x1xf32>
    %273 = vector.extract_strided_slice %83 {offsets = [8, 0], sizes = [1, 128], strides = [1, 1]} : vector<20x128xf32> to vector<1x128xf32>
    %274 = vector.broadcast %273 : vector<1x128xf32> to vector<16x128xf32>
    %275 = arith.mulf %274, %94 : vector<16x128xf32>
    %276 = math.exp %275 : vector<16x128xf32>
    %c8 = arith.constant 8 : index
    %c0_93 = arith.constant 0 : index
    %c0_94 = arith.constant 0 : index
    %277 = vector.load %arg18[%c8, %c0_93, %c0_94] : memref<20x16x128xf32, #tpu.memory_space<vmem>>, vector<1x16x128xf32>
    %278 = vector.shape_cast %277 : vector<1x16x128xf32> to vector<16x128xf32>
    %279 = vector.shape_cast %276 : vector<16x128xf32> to vector<1x16x128xf32>
    tpu.vector_store %arg18[%c8, %c0_93, %c0_94], %279 {strides = array<i32>} : memref<20x16x128xf32, #tpu.memory_space<vmem>>, vector<1x16x128xf32>,
    %280 = vector.extract_strided_slice %272 {offsets = [0, 0], sizes = [16, 1], strides = [1, 1]} : vector<32x1xf32> to vector<16x1xf32>
    %281 = vector.extract_strided_slice %84 {offsets = [8, 0], sizes = [1, 128], strides = [1, 1]} : vector<20x128xf32> to vector<1x128xf32>
    %282 = vector.broadcast %280 : vector<16x1xf32> to vector<16x128xf32>
    %283 = vector.broadcast %281 : vector<1x128xf32> to vector<16x128xf32>
    %284 = arith.mulf %282, %283 : vector<16x128xf32>
    %c8_95 = arith.constant 8 : index
    %c0_96 = arith.constant 0 : index
    %c0_97 = arith.constant 0 : index
    %285 = vector.load %arg19[%c8_95, %c0_96, %c0_97] : memref<20x16x128xf32, #tpu.memory_space<vmem>>, vector<1x16x128xf32>
    %286 = vector.shape_cast %285 : vector<1x16x128xf32> to vector<16x128xf32>
    %287 = vector.shape_cast %284 : vector<16x128xf32> to vector<1x16x128xf32>
    tpu.vector_store %arg19[%c8_95, %c0_96, %c0_97], %287 {strides = array<i32>} : memref<20x16x128xf32, #tpu.memory_space<vmem>>, vector<1x16x128xf32>,
    %288 = vector.extract_strided_slice %272 {offsets = [16, 0], sizes = [16, 1], strides = [1, 1]} : vector<32x1xf32> to vector<16x1xf32>
    %289 = vector.extract_strided_slice %73 {offsets = [9, 0], sizes = [1, 32], strides = [1, 1]} : vector<20x32xf32> to vector<1x32xf32>
    %290 = vector.broadcast %289 : vector<1x32xf32> to vector<32x32xf32>
    %291 = arith.mulf %290, %99 : vector<32x32xf32>
    %cst_98 = arith.constant dense<0.000000e+00> : vector<32xf32>
    %292 = vector.multi_reduction <add>, %291, %cst_98 [1] : vector<32x32xf32> to vector<32xf32>
    %293 = vector.shape_cast %292 : vector<32xf32> to vector<32x1xf32>
    %294 = vector.extract_strided_slice %83 {offsets = [9, 0], sizes = [1, 128], strides = [1, 1]} : vector<20x128xf32> to vector<1x128xf32>
    %295 = vector.broadcast %294 : vector<1x128xf32> to vector<16x128xf32>
    %296 = arith.mulf %295, %94 : vector<16x128xf32>
    %297 = math.exp %296 : vector<16x128xf32>
    %c9 = arith.constant 9 : index
    %c0_99 = arith.constant 0 : index
    %c0_100 = arith.constant 0 : index
    %298 = vector.load %arg18[%c9, %c0_99, %c0_100] : memref<20x16x128xf32, #tpu.memory_space<vmem>>, vector<1x16x128xf32>
    %299 = vector.shape_cast %298 : vector<1x16x128xf32> to vector<16x128xf32>
    %300 = vector.shape_cast %297 : vector<16x128xf32> to vector<1x16x128xf32>
    tpu.vector_store %arg18[%c9, %c0_99, %c0_100], %300 {strides = array<i32>} : memref<20x16x128xf32, #tpu.memory_space<vmem>>, vector<1x16x128xf32>,
    %301 = vector.extract_strided_slice %293 {offsets = [0, 0], sizes = [16, 1], strides = [1, 1]} : vector<32x1xf32> to vector<16x1xf32>
    %302 = vector.extract_strided_slice %84 {offsets = [9, 0], sizes = [1, 128], strides = [1, 1]} : vector<20x128xf32> to vector<1x128xf32>
    %303 = vector.broadcast %301 : vector<16x1xf32> to vector<16x128xf32>
    %304 = vector.broadcast %302 : vector<1x128xf32> to vector<16x128xf32>
    %305 = arith.mulf %303, %304 : vector<16x128xf32>
    %c9_101 = arith.constant 9 : index
    %c0_102 = arith.constant 0 : index
    %c0_103 = arith.constant 0 : index
    %306 = vector.load %arg19[%c9_101, %c0_102, %c0_103] : memref<20x16x128xf32, #tpu.memory_space<vmem>>, vector<1x16x128xf32>
    %307 = vector.shape_cast %306 : vector<1x16x128xf32> to vector<16x128xf32>
    %308 = vector.shape_cast %305 : vector<16x128xf32> to vector<1x16x128xf32>
    tpu.vector_store %arg19[%c9_101, %c0_102, %c0_103], %308 {strides = array<i32>} : memref<20x16x128xf32, #tpu.memory_space<vmem>>, vector<1x16x128xf32>,
    %309 = vector.extract_strided_slice %293 {offsets = [16, 0], sizes = [16, 1], strides = [1, 1]} : vector<32x1xf32> to vector<16x1xf32>
    %310 = vector.extract_strided_slice %73 {offsets = [10, 0], sizes = [1, 32], strides = [1, 1]} : vector<20x32xf32> to vector<1x32xf32>
    %311 = vector.broadcast %310 : vector<1x32xf32> to vector<32x32xf32>
    %312 = arith.mulf %311, %99 : vector<32x32xf32>
    %cst_104 = arith.constant dense<0.000000e+00> : vector<32xf32>
    %313 = vector.multi_reduction <add>, %312, %cst_104 [1] : vector<32x32xf32> to vector<32xf32>
    %314 = vector.shape_cast %313 : vector<32xf32> to vector<32x1xf32>
    %315 = vector.extract_strided_slice %83 {offsets = [10, 0], sizes = [1, 128], strides = [1, 1]} : vector<20x128xf32> to vector<1x128xf32>
    %316 = vector.broadcast %315 : vector<1x128xf32> to vector<16x128xf32>
    %317 = arith.mulf %316, %94 : vector<16x128xf32>
    %318 = math.exp %317 : vector<16x128xf32>
    %c10 = arith.constant 10 : index
    %c0_105 = arith.constant 0 : index
    %c0_106 = arith.constant 0 : index
    %319 = vector.load %arg18[%c10, %c0_105, %c0_106] : memref<20x16x128xf32, #tpu.memory_space<vmem>>, vector<1x16x128xf32>
    %320 = vector.shape_cast %319 : vector<1x16x128xf32> to vector<16x128xf32>
    %321 = vector.shape_cast %318 : vector<16x128xf32> to vector<1x16x128xf32>
    tpu.vector_store %arg18[%c10, %c0_105, %c0_106], %321 {strides = array<i32>} : memref<20x16x128xf32, #tpu.memory_space<vmem>>, vector<1x16x128xf32>,
    %322 = vector.extract_strided_slice %314 {offsets = [0, 0], sizes = [16, 1], strides = [1, 1]} : vector<32x1xf32> to vector<16x1xf32>
    %323 = vector.extract_strided_slice %84 {offsets = [10, 0], sizes = [1, 128], strides = [1, 1]} : vector<20x128xf32> to vector<1x128xf32>
    %324 = vector.broadcast %322 : vector<16x1xf32> to vector<16x128xf32>
    %325 = vector.broadcast %323 : vector<1x128xf32> to vector<16x128xf32>
    %326 = arith.mulf %324, %325 : vector<16x128xf32>
    %c10_107 = arith.constant 10 : index
    %c0_108 = arith.constant 0 : index
    %c0_109 = arith.constant 0 : index
    %327 = vector.load %arg19[%c10_107, %c0_108, %c0_109] : memref<20x16x128xf32, #tpu.memory_space<vmem>>, vector<1x16x128xf32>
    %328 = vector.shape_cast %327 : vector<1x16x128xf32> to vector<16x128xf32>
    %329 = vector.shape_cast %326 : vector<16x128xf32> to vector<1x16x128xf32>
    tpu.vector_store %arg19[%c10_107, %c0_108, %c0_109], %329 {strides = array<i32>} : memref<20x16x128xf32, #tpu.memory_space<vmem>>, vector<1x16x128xf32>,
    %330 = vector.extract_strided_slice %314 {offsets = [16, 0], sizes = [16, 1], strides = [1, 1]} : vector<32x1xf32> to vector<16x1xf32>
    %331 = vector.extract_strided_slice %73 {offsets = [11, 0], sizes = [1, 32], strides = [1, 1]} : vector<20x32xf32> to vector<1x32xf32>
    %332 = vector.broadcast %331 : vector<1x32xf32> to vector<32x32xf32>
    %333 = arith.mulf %332, %99 : vector<32x32xf32>
    %cst_110 = arith.constant dense<0.000000e+00> : vector<32xf32>
    %334 = vector.multi_reduction <add>, %333, %cst_110 [1] : vector<32x32xf32> to vector<32xf32>
    %335 = vector.shape_cast %334 : vector<32xf32> to vector<32x1xf32>
    %336 = vector.extract_strided_slice %83 {offsets = [11, 0], sizes = [1, 128], strides = [1, 1]} : vector<20x128xf32> to vector<1x128xf32>
    %337 = vector.broadcast %336 : vector<1x128xf32> to vector<16x128xf32>
    %338 = arith.mulf %337, %94 : vector<16x128xf32>
    %339 = math.exp %338 : vector<16x128xf32>
    %c11 = arith.constant 11 : index
    %c0_111 = arith.constant 0 : index
    %c0_112 = arith.constant 0 : index
    %340 = vector.load %arg18[%c11, %c0_111, %c0_112] : memref<20x16x128xf32, #tpu.memory_space<vmem>>, vector<1x16x128xf32>
    %341 = vector.shape_cast %340 : vector<1x16x128xf32> to vector<16x128xf32>
    %342 = vector.shape_cast %339 : vector<16x128xf32> to vector<1x16x128xf32>
    tpu.vector_store %arg18[%c11, %c0_111, %c0_112], %342 {strides = array<i32>} : memref<20x16x128xf32, #tpu.memory_space<vmem>>, vector<1x16x128xf32>,
    %343 = vector.extract_strided_slice %335 {offsets = [0, 0], sizes = [16, 1], strides = [1, 1]} : vector<32x1xf32> to vector<16x1xf32>
    %344 = vector.extract_strided_slice %84 {offsets = [11, 0], sizes = [1, 128], strides = [1, 1]} : vector<20x128xf32> to vector<1x128xf32>
    %345 = vector.broadcast %343 : vector<16x1xf32> to vector<16x128xf32>
    %346 = vector.broadcast %344 : vector<1x128xf32> to vector<16x128xf32>
    %347 = arith.mulf %345, %346 : vector<16x128xf32>
    %c11_113 = arith.constant 11 : index
    %c0_114 = arith.constant 0 : index
    %c0_115 = arith.constant 0 : index
    %348 = vector.load %arg19[%c11_113, %c0_114, %c0_115] : memref<20x16x128xf32, #tpu.memory_space<vmem>>, vector<1x16x128xf32>
    %349 = vector.shape_cast %348 : vector<1x16x128xf32> to vector<16x128xf32>
    %350 = vector.shape_cast %347 : vector<16x128xf32> to vector<1x16x128xf32>
    tpu.vector_store %arg19[%c11_113, %c0_114, %c0_115], %350 {strides = array<i32>} : memref<20x16x128xf32, #tpu.memory_space<vmem>>, vector<1x16x128xf32>,
    %351 = vector.extract_strided_slice %335 {offsets = [16, 0], sizes = [16, 1], strides = [1, 1]} : vector<32x1xf32> to vector<16x1xf32>
    %352 = vector.extract_strided_slice %73 {offsets = [12, 0], sizes = [1, 32], strides = [1, 1]} : vector<20x32xf32> to vector<1x32xf32>
    %353 = vector.broadcast %352 : vector<1x32xf32> to vector<32x32xf32>
    %354 = arith.mulf %353, %99 : vector<32x32xf32>
    %cst_116 = arith.constant dense<0.000000e+00> : vector<32xf32>
    %355 = vector.multi_reduction <add>, %354, %cst_116 [1] : vector<32x32xf32> to vector<32xf32>
    %356 = vector.shape_cast %355 : vector<32xf32> to vector<32x1xf32>
    %357 = vector.extract_strided_slice %83 {offsets = [12, 0], sizes = [1, 128], strides = [1, 1]} : vector<20x128xf32> to vector<1x128xf32>
    %358 = vector.broadcast %357 : vector<1x128xf32> to vector<16x128xf32>
    %359 = arith.mulf %358, %94 : vector<16x128xf32>
    %360 = math.exp %359 : vector<16x128xf32>
    %c12 = arith.constant 12 : index
    %c0_117 = arith.constant 0 : index
    %c0_118 = arith.constant 0 : index
    %361 = vector.load %arg18[%c12, %c0_117, %c0_118] : memref<20x16x128xf32, #tpu.memory_space<vmem>>, vector<1x16x128xf32>
    %362 = vector.shape_cast %361 : vector<1x16x128xf32> to vector<16x128xf32>
    %363 = vector.shape_cast %360 : vector<16x128xf32> to vector<1x16x128xf32>
    tpu.vector_store %arg18[%c12, %c0_117, %c0_118], %363 {strides = array<i32>} : memref<20x16x128xf32, #tpu.memory_space<vmem>>, vector<1x16x128xf32>,
    %364 = vector.extract_strided_slice %356 {offsets = [0, 0], sizes = [16, 1], strides = [1, 1]} : vector<32x1xf32> to vector<16x1xf32>
    %365 = vector.extract_strided_slice %84 {offsets = [12, 0], sizes = [1, 128], strides = [1, 1]} : vector<20x128xf32> to vector<1x128xf32>
    %366 = vector.broadcast %364 : vector<16x1xf32> to vector<16x128xf32>
    %367 = vector.broadcast %365 : vector<1x128xf32> to vector<16x128xf32>
    %368 = arith.mulf %366, %367 : vector<16x128xf32>
    %c12_119 = arith.constant 12 : index
    %c0_120 = arith.constant 0 : index
    %c0_121 = arith.constant 0 : index
    %369 = vector.load %arg19[%c12_119, %c0_120, %c0_121] : memref<20x16x128xf32, #tpu.memory_space<vmem>>, vector<1x16x128xf32>
    %370 = vector.shape_cast %369 : vector<1x16x128xf32> to vector<16x128xf32>
    %371 = vector.shape_cast %368 : vector<16x128xf32> to vector<1x16x128xf32>
    tpu.vector_store %arg19[%c12_119, %c0_120, %c0_121], %371 {strides = array<i32>} : memref<20x16x128xf32, #tpu.memory_space<vmem>>, vector<1x16x128xf32>,
    %372 = vector.extract_strided_slice %356 {offsets = [16, 0], sizes = [16, 1], strides = [1, 1]} : vector<32x1xf32> to vector<16x1xf32>
    %373 = vector.extract_strided_slice %73 {offsets = [13, 0], sizes = [1, 32], strides = [1, 1]} : vector<20x32xf32> to vector<1x32xf32>
    %374 = vector.broadcast %373 : vector<1x32xf32> to vector<32x32xf32>
    %375 = arith.mulf %374, %99 : vector<32x32xf32>
    %cst_122 = arith.constant dense<0.000000e+00> : vector<32xf32>
    %376 = vector.multi_reduction <add>, %375, %cst_122 [1] : vector<32x32xf32> to vector<32xf32>
    %377 = vector.shape_cast %376 : vector<32xf32> to vector<32x1xf32>
    %378 = vector.extract_strided_slice %83 {offsets = [13, 0], sizes = [1, 128], strides = [1, 1]} : vector<20x128xf32> to vector<1x128xf32>
    %379 = vector.broadcast %378 : vector<1x128xf32> to vector<16x128xf32>
    %380 = arith.mulf %379, %94 : vector<16x128xf32>
    %381 = math.exp %380 : vector<16x128xf32>
    %c13 = arith.constant 13 : index
    %c0_123 = arith.constant 0 : index
    %c0_124 = arith.constant 0 : index
    %382 = vector.load %arg18[%c13, %c0_123, %c0_124] : memref<20x16x128xf32, #tpu.memory_space<vmem>>, vector<1x16x128xf32>
    %383 = vector.shape_cast %382 : vector<1x16x128xf32> to vector<16x128xf32>
    %384 = vector.shape_cast %381 : vector<16x128xf32> to vector<1x16x128xf32>
    tpu.vector_store %arg18[%c13, %c0_123, %c0_124], %384 {strides = array<i32>} : memref<20x16x128xf32, #tpu.memory_space<vmem>>, vector<1x16x128xf32>,
    %385 = vector.extract_strided_slice %377 {offsets = [0, 0], sizes = [16, 1], strides = [1, 1]} : vector<32x1xf32> to vector<16x1xf32>
    %386 = vector.extract_strided_slice %84 {offsets = [13, 0], sizes = [1, 128], strides = [1, 1]} : vector<20x128xf32> to vector<1x128xf32>
    %387 = vector.broadcast %385 : vector<16x1xf32> to vector<16x128xf32>
    %388 = vector.broadcast %386 : vector<1x128xf32> to vector<16x128xf32>
    %389 = arith.mulf %387, %388 : vector<16x128xf32>
    %c13_125 = arith.constant 13 : index
    %c0_126 = arith.constant 0 : index
    %c0_127 = arith.constant 0 : index
    %390 = vector.load %arg19[%c13_125, %c0_126, %c0_127] : memref<20x16x128xf32, #tpu.memory_space<vmem>>, vector<1x16x128xf32>
    %391 = vector.shape_cast %390 : vector<1x16x128xf32> to vector<16x128xf32>
    %392 = vector.shape_cast %389 : vector<16x128xf32> to vector<1x16x128xf32>
    tpu.vector_store %arg19[%c13_125, %c0_126, %c0_127], %392 {strides = array<i32>} : memref<20x16x128xf32, #tpu.memory_space<vmem>>, vector<1x16x128xf32>,
    %393 = vector.extract_strided_slice %377 {offsets = [16, 0], sizes = [16, 1], strides = [1, 1]} : vector<32x1xf32> to vector<16x1xf32>
    %394 = vector.extract_strided_slice %73 {offsets = [14, 0], sizes = [1, 32], strides = [1, 1]} : vector<20x32xf32> to vector<1x32xf32>
    %395 = vector.broadcast %394 : vector<1x32xf32> to vector<32x32xf32>
    %396 = arith.mulf %395, %99 : vector<32x32xf32>
    %cst_128 = arith.constant dense<0.000000e+00> : vector<32xf32>
    %397 = vector.multi_reduction <add>, %396, %cst_128 [1] : vector<32x32xf32> to vector<32xf32>
    %398 = vector.shape_cast %397 : vector<32xf32> to vector<32x1xf32>
    %399 = vector.extract_strided_slice %83 {offsets = [14, 0], sizes = [1, 128], strides = [1, 1]} : vector<20x128xf32> to vector<1x128xf32>
    %400 = vector.broadcast %399 : vector<1x128xf32> to vector<16x128xf32>
    %401 = arith.mulf %400, %94 : vector<16x128xf32>
    %402 = math.exp %401 : vector<16x128xf32>
    %c14 = arith.constant 14 : index
    %c0_129 = arith.constant 0 : index
    %c0_130 = arith.constant 0 : index
    %403 = vector.load %arg18[%c14, %c0_129, %c0_130] : memref<20x16x128xf32, #tpu.memory_space<vmem>>, vector<1x16x128xf32>
    %404 = vector.shape_cast %403 : vector<1x16x128xf32> to vector<16x128xf32>
    %405 = vector.shape_cast %402 : vector<16x128xf32> to vector<1x16x128xf32>
    tpu.vector_store %arg18[%c14, %c0_129, %c0_130], %405 {strides = array<i32>} : memref<20x16x128xf32, #tpu.memory_space<vmem>>, vector<1x16x128xf32>,
    %406 = vector.extract_strided_slice %398 {offsets = [0, 0], sizes = [16, 1], strides = [1, 1]} : vector<32x1xf32> to vector<16x1xf32>
    %407 = vector.extract_strided_slice %84 {offsets = [14, 0], sizes = [1, 128], strides = [1, 1]} : vector<20x128xf32> to vector<1x128xf32>
    %408 = vector.broadcast %406 : vector<16x1xf32> to vector<16x128xf32>
    %409 = vector.broadcast %407 : vector<1x128xf32> to vector<16x128xf32>
    %410 = arith.mulf %408, %409 : vector<16x128xf32>
    %c14_131 = arith.constant 14 : index
    %c0_132 = arith.constant 0 : index
    %c0_133 = arith.constant 0 : index
    %411 = vector.load %arg19[%c14_131, %c0_132, %c0_133] : memref<20x16x128xf32, #tpu.memory_space<vmem>>, vector<1x16x128xf32>
    %412 = vector.shape_cast %411 : vector<1x16x128xf32> to vector<16x128xf32>
    %413 = vector.shape_cast %410 : vector<16x128xf32> to vector<1x16x128xf32>
    tpu.vector_store %arg19[%c14_131, %c0_132, %c0_133], %413 {strides = array<i32>} : memref<20x16x128xf32, #tpu.memory_space<vmem>>, vector<1x16x128xf32>,
    %414 = vector.extract_strided_slice %398 {offsets = [16, 0], sizes = [16, 1], strides = [1, 1]} : vector<32x1xf32> to vector<16x1xf32>
    %415 = vector.extract_strided_slice %73 {offsets = [15, 0], sizes = [1, 32], strides = [1, 1]} : vector<20x32xf32> to vector<1x32xf32>
    %416 = vector.broadcast %415 : vector<1x32xf32> to vector<32x32xf32>
    %417 = arith.mulf %416, %99 : vector<32x32xf32>
    %cst_134 = arith.constant dense<0.000000e+00> : vector<32xf32>
    %418 = vector.multi_reduction <add>, %417, %cst_134 [1] : vector<32x32xf32> to vector<32xf32>
    %419 = vector.shape_cast %418 : vector<32xf32> to vector<32x1xf32>
    %420 = vector.extract_strided_slice %83 {offsets = [15, 0], sizes = [1, 128], strides = [1, 1]} : vector<20x128xf32> to vector<1x128xf32>
    %421 = vector.broadcast %420 : vector<1x128xf32> to vector<16x128xf32>
    %422 = arith.mulf %421, %94 : vector<16x128xf32>
    %423 = math.exp %422 : vector<16x128xf32>
    %c15 = arith.constant 15 : index
    %c0_135 = arith.constant 0 : index
    %c0_136 = arith.constant 0 : index
    %424 = vector.load %arg18[%c15, %c0_135, %c0_136] : memref<20x16x128xf32, #tpu.memory_space<vmem>>, vector<1x16x128xf32>
    %425 = vector.shape_cast %424 : vector<1x16x128xf32> to vector<16x128xf32>
    %426 = vector.shape_cast %423 : vector<16x128xf32> to vector<1x16x128xf32>
    tpu.vector_store %arg18[%c15, %c0_135, %c0_136], %426 {strides = array<i32>} : memref<20x16x128xf32, #tpu.memory_space<vmem>>, vector<1x16x128xf32>,
    %427 = vector.extract_strided_slice %419 {offsets = [0, 0], sizes = [16, 1], strides = [1, 1]} : vector<32x1xf32> to vector<16x1xf32>
    %428 = vector.extract_strided_slice %84 {offsets = [15, 0], sizes = [1, 128], strides = [1, 1]} : vector<20x128xf32> to vector<1x128xf32>
    %429 = vector.broadcast %427 : vector<16x1xf32> to vector<16x128xf32>
    %430 = vector.broadcast %428 : vector<1x128xf32> to vector<16x128xf32>
    %431 = arith.mulf %429, %430 : vector<16x128xf32>
    %c15_137 = arith.constant 15 : index
    %c0_138 = arith.constant 0 : index
    %c0_139 = arith.constant 0 : index
    %432 = vector.load %arg19[%c15_137, %c0_138, %c0_139] : memref<20x16x128xf32, #tpu.memory_space<vmem>>, vector<1x16x128xf32>
    %433 = vector.shape_cast %432 : vector<1x16x128xf32> to vector<16x128xf32>
    %434 = vector.shape_cast %431 : vector<16x128xf32> to vector<1x16x128xf32>
    tpu.vector_store %arg19[%c15_137, %c0_138, %c0_139], %434 {strides = array<i32>} : memref<20x16x128xf32, #tpu.memory_space<vmem>>, vector<1x16x128xf32>,
    %435 = vector.extract_strided_slice %419 {offsets = [16, 0], sizes = [16, 1], strides = [1, 1]} : vector<32x1xf32> to vector<16x1xf32>
    %436 = vector.extract_strided_slice %73 {offsets = [16, 0], sizes = [1, 32], strides = [1, 1]} : vector<20x32xf32> to vector<1x32xf32>
    %437 = vector.broadcast %436 : vector<1x32xf32> to vector<32x32xf32>
    %438 = arith.mulf %437, %99 : vector<32x32xf32>
    %cst_140 = arith.constant dense<0.000000e+00> : vector<32xf32>
    %439 = vector.multi_reduction <add>, %438, %cst_140 [1] : vector<32x32xf32> to vector<32xf32>
    %440 = vector.shape_cast %439 : vector<32xf32> to vector<32x1xf32>
    %441 = vector.extract_strided_slice %83 {offsets = [16, 0], sizes = [1, 128], strides = [1, 1]} : vector<20x128xf32> to vector<1x128xf32>
    %442 = vector.broadcast %441 : vector<1x128xf32> to vector<16x128xf32>
    %443 = arith.mulf %442, %94 : vector<16x128xf32>
    %444 = math.exp %443 : vector<16x128xf32>
    %c16 = arith.constant 16 : index
    %c0_141 = arith.constant 0 : index
    %c0_142 = arith.constant 0 : index
    %445 = vector.load %arg18[%c16, %c0_141, %c0_142] : memref<20x16x128xf32, #tpu.memory_space<vmem>>, vector<1x16x128xf32>
    %446 = vector.shape_cast %445 : vector<1x16x128xf32> to vector<16x128xf32>
    %447 = vector.shape_cast %444 : vector<16x128xf32> to vector<1x16x128xf32>
    tpu.vector_store %arg18[%c16, %c0_141, %c0_142], %447 {strides = array<i32>} : memref<20x16x128xf32, #tpu.memory_space<vmem>>, vector<1x16x128xf32>,
    %448 = vector.extract_strided_slice %440 {offsets = [0, 0], sizes = [16, 1], strides = [1, 1]} : vector<32x1xf32> to vector<16x1xf32>
    %449 = vector.extract_strided_slice %84 {offsets = [16, 0], sizes = [1, 128], strides = [1, 1]} : vector<20x128xf32> to vector<1x128xf32>
    %450 = vector.broadcast %448 : vector<16x1xf32> to vector<16x128xf32>
    %451 = vector.broadcast %449 : vector<1x128xf32> to vector<16x128xf32>
    %452 = arith.mulf %450, %451 : vector<16x128xf32>
    %c16_143 = arith.constant 16 : index
    %c0_144 = arith.constant 0 : index
    %c0_145 = arith.constant 0 : index
    %453 = vector.load %arg19[%c16_143, %c0_144, %c0_145] : memref<20x16x128xf32, #tpu.memory_space<vmem>>, vector<1x16x128xf32>
    %454 = vector.shape_cast %453 : vector<1x16x128xf32> to vector<16x128xf32>
    %455 = vector.shape_cast %452 : vector<16x128xf32> to vector<1x16x128xf32>
    tpu.vector_store %arg19[%c16_143, %c0_144, %c0_145], %455 {strides = array<i32>} : memref<20x16x128xf32, #tpu.memory_space<vmem>>, vector<1x16x128xf32>,
    %456 = vector.extract_strided_slice %440 {offsets = [16, 0], sizes = [16, 1], strides = [1, 1]} : vector<32x1xf32> to vector<16x1xf32>
    %457 = vector.extract_strided_slice %73 {offsets = [17, 0], sizes = [1, 32], strides = [1, 1]} : vector<20x32xf32> to vector<1x32xf32>
    %458 = vector.broadcast %457 : vector<1x32xf32> to vector<32x32xf32>
    %459 = arith.mulf %458, %99 : vector<32x32xf32>
    %cst_146 = arith.constant dense<0.000000e+00> : vector<32xf32>
    %460 = vector.multi_reduction <add>, %459, %cst_146 [1] : vector<32x32xf32> to vector<32xf32>
    %461 = vector.shape_cast %460 : vector<32xf32> to vector<32x1xf32>
    %462 = vector.extract_strided_slice %83 {offsets = [17, 0], sizes = [1, 128], strides = [1, 1]} : vector<20x128xf32> to vector<1x128xf32>
    %463 = vector.broadcast %462 : vector<1x128xf32> to vector<16x128xf32>
    %464 = arith.mulf %463, %94 : vector<16x128xf32>
    %465 = math.exp %464 : vector<16x128xf32>
    %c17 = arith.constant 17 : index
    %c0_147 = arith.constant 0 : index
    %c0_148 = arith.constant 0 : index
    %466 = vector.load %arg18[%c17, %c0_147, %c0_148] : memref<20x16x128xf32, #tpu.memory_space<vmem>>, vector<1x16x128xf32>
    %467 = vector.shape_cast %466 : vector<1x16x128xf32> to vector<16x128xf32>
    %468 = vector.shape_cast %465 : vector<16x128xf32> to vector<1x16x128xf32>
    tpu.vector_store %arg18[%c17, %c0_147, %c0_148], %468 {strides = array<i32>} : memref<20x16x128xf32, #tpu.memory_space<vmem>>, vector<1x16x128xf32>,
    %469 = vector.extract_strided_slice %461 {offsets = [0, 0], sizes = [16, 1], strides = [1, 1]} : vector<32x1xf32> to vector<16x1xf32>
    %470 = vector.extract_strided_slice %84 {offsets = [17, 0], sizes = [1, 128], strides = [1, 1]} : vector<20x128xf32> to vector<1x128xf32>
    %471 = vector.broadcast %469 : vector<16x1xf32> to vector<16x128xf32>
    %472 = vector.broadcast %470 : vector<1x128xf32> to vector<16x128xf32>
    %473 = arith.mulf %471, %472 : vector<16x128xf32>
    %c17_149 = arith.constant 17 : index
    %c0_150 = arith.constant 0 : index
    %c0_151 = arith.constant 0 : index
    %474 = vector.load %arg19[%c17_149, %c0_150, %c0_151] : memref<20x16x128xf32, #tpu.memory_space<vmem>>, vector<1x16x128xf32>
    %475 = vector.shape_cast %474 : vector<1x16x128xf32> to vector<16x128xf32>
    %476 = vector.shape_cast %473 : vector<16x128xf32> to vector<1x16x128xf32>
    tpu.vector_store %arg19[%c17_149, %c0_150, %c0_151], %476 {strides = array<i32>} : memref<20x16x128xf32, #tpu.memory_space<vmem>>, vector<1x16x128xf32>,
    %477 = vector.extract_strided_slice %461 {offsets = [16, 0], sizes = [16, 1], strides = [1, 1]} : vector<32x1xf32> to vector<16x1xf32>
    %478 = vector.extract_strided_slice %73 {offsets = [18, 0], sizes = [1, 32], strides = [1, 1]} : vector<20x32xf32> to vector<1x32xf32>
    %479 = vector.broadcast %478 : vector<1x32xf32> to vector<32x32xf32>
    %480 = arith.mulf %479, %99 : vector<32x32xf32>
    %cst_152 = arith.constant dense<0.000000e+00> : vector<32xf32>
    %481 = vector.multi_reduction <add>, %480, %cst_152 [1] : vector<32x32xf32> to vector<32xf32>
    %482 = vector.shape_cast %481 : vector<32xf32> to vector<32x1xf32>
    %483 = vector.extract_strided_slice %83 {offsets = [18, 0], sizes = [1, 128], strides = [1, 1]} : vector<20x128xf32> to vector<1x128xf32>
    %484 = vector.broadcast %483 : vector<1x128xf32> to vector<16x128xf32>
    %485 = arith.mulf %484, %94 : vector<16x128xf32>
    %486 = math.exp %485 : vector<16x128xf32>
    %c18 = arith.constant 18 : index
    %c0_153 = arith.constant 0 : index
    %c0_154 = arith.constant 0 : index
    %487 = vector.load %arg18[%c18, %c0_153, %c0_154] : memref<20x16x128xf32, #tpu.memory_space<vmem>>, vector<1x16x128xf32>
    %488 = vector.shape_cast %487 : vector<1x16x128xf32> to vector<16x128xf32>
    %489 = vector.shape_cast %486 : vector<16x128xf32> to vector<1x16x128xf32>
    tpu.vector_store %arg18[%c18, %c0_153, %c0_154], %489 {strides = array<i32>} : memref<20x16x128xf32, #tpu.memory_space<vmem>>, vector<1x16x128xf32>,
    %490 = vector.extract_strided_slice %482 {offsets = [0, 0], sizes = [16, 1], strides = [1, 1]} : vector<32x1xf32> to vector<16x1xf32>
    %491 = vector.extract_strided_slice %84 {offsets = [18, 0], sizes = [1, 128], strides = [1, 1]} : vector<20x128xf32> to vector<1x128xf32>
    %492 = vector.broadcast %490 : vector<16x1xf32> to vector<16x128xf32>
    %493 = vector.broadcast %491 : vector<1x128xf32> to vector<16x128xf32>
    %494 = arith.mulf %492, %493 : vector<16x128xf32>
    %c18_155 = arith.constant 18 : index
    %c0_156 = arith.constant 0 : index
    %c0_157 = arith.constant 0 : index
    %495 = vector.load %arg19[%c18_155, %c0_156, %c0_157] : memref<20x16x128xf32, #tpu.memory_space<vmem>>, vector<1x16x128xf32>
    %496 = vector.shape_cast %495 : vector<1x16x128xf32> to vector<16x128xf32>
    %497 = vector.shape_cast %494 : vector<16x128xf32> to vector<1x16x128xf32>
    tpu.vector_store %arg19[%c18_155, %c0_156, %c0_157], %497 {strides = array<i32>} : memref<20x16x128xf32, #tpu.memory_space<vmem>>, vector<1x16x128xf32>,
    %498 = vector.extract_strided_slice %482 {offsets = [16, 0], sizes = [16, 1], strides = [1, 1]} : vector<32x1xf32> to vector<16x1xf32>
    %499 = vector.extract_strided_slice %73 {offsets = [19, 0], sizes = [1, 32], strides = [1, 1]} : vector<20x32xf32> to vector<1x32xf32>
    %500 = vector.broadcast %499 : vector<1x32xf32> to vector<32x32xf32>
    %501 = arith.mulf %500, %99 : vector<32x32xf32>
    %cst_158 = arith.constant dense<0.000000e+00> : vector<32xf32>
    %502 = vector.multi_reduction <add>, %501, %cst_158 [1] : vector<32x32xf32> to vector<32xf32>
    %503 = vector.shape_cast %502 : vector<32xf32> to vector<32x1xf32>
    %504 = vector.extract_strided_slice %83 {offsets = [19, 0], sizes = [1, 128], strides = [1, 1]} : vector<20x128xf32> to vector<1x128xf32>
    %505 = vector.broadcast %504 : vector<1x128xf32> to vector<16x128xf32>
    %506 = arith.mulf %505, %94 : vector<16x128xf32>
    %507 = math.exp %506 : vector<16x128xf32>
    %c19 = arith.constant 19 : index
    %c0_159 = arith.constant 0 : index
    %c0_160 = arith.constant 0 : index
    %508 = vector.load %arg18[%c19, %c0_159, %c0_160] : memref<20x16x128xf32, #tpu.memory_space<vmem>>, vector<1x16x128xf32>
    %509 = vector.shape_cast %508 : vector<1x16x128xf32> to vector<16x128xf32>
    %510 = vector.shape_cast %507 : vector<16x128xf32> to vector<1x16x128xf32>
    tpu.vector_store %arg18[%c19, %c0_159, %c0_160], %510 {strides = array<i32>} : memref<20x16x128xf32, #tpu.memory_space<vmem>>, vector<1x16x128xf32>,
    %511 = vector.extract_strided_slice %503 {offsets = [0, 0], sizes = [16, 1], strides = [1, 1]} : vector<32x1xf32> to vector<16x1xf32>
    %512 = vector.extract_strided_slice %84 {offsets = [19, 0], sizes = [1, 128], strides = [1, 1]} : vector<20x128xf32> to vector<1x128xf32>
    %513 = vector.broadcast %511 : vector<16x1xf32> to vector<16x128xf32>
    %514 = vector.broadcast %512 : vector<1x128xf32> to vector<16x128xf32>
    %515 = arith.mulf %513, %514 : vector<16x128xf32>
    %c19_161 = arith.constant 19 : index
    %c0_162 = arith.constant 0 : index
    %c0_163 = arith.constant 0 : index
    %516 = vector.load %arg19[%c19_161, %c0_162, %c0_163] : memref<20x16x128xf32, #tpu.memory_space<vmem>>, vector<1x16x128xf32>
    %517 = vector.shape_cast %516 : vector<1x16x128xf32> to vector<16x128xf32>
    %518 = vector.shape_cast %515 : vector<16x128xf32> to vector<1x16x128xf32>
    tpu.vector_store %arg19[%c19_161, %c0_162, %c0_163], %518 {strides = array<i32>} : memref<20x16x128xf32, #tpu.memory_space<vmem>>, vector<1x16x128xf32>,
    %519 = vector.extract_strided_slice %503 {offsets = [16, 0], sizes = [16, 1], strides = [1, 1]} : vector<32x1xf32> to vector<16x1xf32>
    %520 = tpu.concatenate %120, %141, %162, %183, %204, %225, %246, %267, %288, %309, %330, %351, %372, %393, %414, %435 in 1 : vector<16x1xf32>, vector<16x1xf32>, vector<16x1xf32>, vector<16x1xf32>, vector<16x1xf32>, vector<16x1xf32>, vector<16x1xf32>, vector<16x1xf32>, vector<16x1xf32>, vector<16x1xf32>, vector<16x1xf32>, vector<16x1xf32>, vector<16x1xf32>, vector<16x1xf32>, vector<16x1xf32>, vector<16x1xf32> -> vector<16x16xf32>
    %521 = tpu.concatenate %456, %477, %498, %519 in 1 : vector<16x1xf32>, vector<16x1xf32>, vector<16x1xf32>, vector<16x1xf32> -> vector<16x4xf32>
    %522 = tpu.concatenate %520, %521 in 1 : vector<16x16xf32>, vector<16x4xf32> -> vector<16x20xf32>
    %cst_164 = arith.constant 0.000000e+00 : f32
    %523 = vector.broadcast %cst_164 : f32 to vector<16x128xf32>
    %c0_165 = arith.constant 0 : index
    %c0_166 = arith.constant 0 : index
    %c0_167 = arith.constant 0 : index
    %524 = vector.load %arg18[%c0_165, %c0_166, %c0_167] : memref<20x16x128xf32, #tpu.memory_space<vmem>>, vector<1x16x128xf32>
    %525 = vector.shape_cast %524 : vector<1x16x128xf32> to vector<16x128xf32>
    %526 = arith.mulf %525, %523 : vector<16x128xf32>
    %c0_168 = arith.constant 0 : index
    %c0_169 = arith.constant 0 : index
    %c0_170 = arith.constant 0 : index
    %527 = vector.load %arg19[%c0_168, %c0_169, %c0_170] : memref<20x16x128xf32, #tpu.memory_space<vmem>>, vector<1x16x128xf32>
    %528 = vector.shape_cast %527 : vector<1x16x128xf32> to vector<16x128xf32>
    %529 = arith.addf %526, %528 : vector<16x128xf32>
    %530 = vector.extract_strided_slice %522 {offsets = [0, 0], sizes = [16, 1], strides = [1, 1]} : vector<16x20xf32> to vector<16x1xf32>
    %531 = vector.broadcast %530 : vector<16x1xf32> to vector<16x128xf32>
    %532 = arith.mulf %529, %531 : vector<16x128xf32>
    %cst_171 = arith.constant dense<0.000000e+00> : vector<128xf32>
    %533 = vector.multi_reduction <add>, %532, %cst_171 [0] : vector<16x128xf32> to vector<128xf32>
    %534 = vector.shape_cast %533 : vector<128xf32> to vector<1x128xf32>
    %c1_172 = arith.constant 1 : index
    %c0_173 = arith.constant 0 : index
    %c0_174 = arith.constant 0 : index
    %535 = vector.load %arg18[%c1_172, %c0_173, %c0_174] : memref<20x16x128xf32, #tpu.memory_space<vmem>>, vector<1x16x128xf32>
    %536 = vector.shape_cast %535 : vector<1x16x128xf32> to vector<16x128xf32>
    %537 = arith.mulf %536, %529 : vector<16x128xf32>
    %c1_175 = arith.constant 1 : index
    %c0_176 = arith.constant 0 : index
    %c0_177 = arith.constant 0 : index
    %538 = vector.load %arg19[%c1_175, %c0_176, %c0_177] : memref<20x16x128xf32, #tpu.memory_space<vmem>>, vector<1x16x128xf32>
    %539 = vector.shape_cast %538 : vector<1x16x128xf32> to vector<16x128xf32>
    %540 = arith.addf %537, %539 : vector<16x128xf32>
    %541 = vector.extract_strided_slice %522 {offsets = [0, 1], sizes = [16, 1], strides = [1, 1]} : vector<16x20xf32> to vector<16x1xf32>
    %542 = vector.broadcast %541 : vector<16x1xf32> to vector<16x128xf32>
    %543 = arith.mulf %540, %542 : vector<16x128xf32>
    %cst_178 = arith.constant dense<0.000000e+00> : vector<128xf32>
    %544 = vector.multi_reduction <add>, %543, %cst_178 [0] : vector<16x128xf32> to vector<128xf32>
    %545 = vector.shape_cast %544 : vector<128xf32> to vector<1x128xf32>
    %c2_179 = arith.constant 2 : index
    %c0_180 = arith.constant 0 : index
    %c0_181 = arith.constant 0 : index
    %546 = vector.load %arg18[%c2_179, %c0_180, %c0_181] : memref<20x16x128xf32, #tpu.memory_space<vmem>>, vector<1x16x128xf32>
    %547 = vector.shape_cast %546 : vector<1x16x128xf32> to vector<16x128xf32>
    %548 = arith.mulf %547, %540 : vector<16x128xf32>
    %c2_182 = arith.constant 2 : index
    %c0_183 = arith.constant 0 : index
    %c0_184 = arith.constant 0 : index
    %549 = vector.load %arg19[%c2_182, %c0_183, %c0_184] : memref<20x16x128xf32, #tpu.memory_space<vmem>>, vector<1x16x128xf32>
    %550 = vector.shape_cast %549 : vector<1x16x128xf32> to vector<16x128xf32>
    %551 = arith.addf %548, %550 : vector<16x128xf32>
    %552 = vector.extract_strided_slice %522 {offsets = [0, 2], sizes = [16, 1], strides = [1, 1]} : vector<16x20xf32> to vector<16x1xf32>
    %553 = vector.broadcast %552 : vector<16x1xf32> to vector<16x128xf32>
    %554 = arith.mulf %551, %553 : vector<16x128xf32>
    %cst_185 = arith.constant dense<0.000000e+00> : vector<128xf32>
    %555 = vector.multi_reduction <add>, %554, %cst_185 [0] : vector<16x128xf32> to vector<128xf32>
    %556 = vector.shape_cast %555 : vector<128xf32> to vector<1x128xf32>
    %c3_186 = arith.constant 3 : index
    %c0_187 = arith.constant 0 : index
    %c0_188 = arith.constant 0 : index
    %557 = vector.load %arg18[%c3_186, %c0_187, %c0_188] : memref<20x16x128xf32, #tpu.memory_space<vmem>>, vector<1x16x128xf32>
    %558 = vector.shape_cast %557 : vector<1x16x128xf32> to vector<16x128xf32>
    %559 = arith.mulf %558, %551 : vector<16x128xf32>
    %c3_189 = arith.constant 3 : index
    %c0_190 = arith.constant 0 : index
    %c0_191 = arith.constant 0 : index
    %560 = vector.load %arg19[%c3_189, %c0_190, %c0_191] : memref<20x16x128xf32, #tpu.memory_space<vmem>>, vector<1x16x128xf32>
    %561 = vector.shape_cast %560 : vector<1x16x128xf32> to vector<16x128xf32>
    %562 = arith.addf %559, %561 : vector<16x128xf32>
    %563 = vector.extract_strided_slice %522 {offsets = [0, 3], sizes = [16, 1], strides = [1, 1]} : vector<16x20xf32> to vector<16x1xf32>
    %564 = vector.broadcast %563 : vector<16x1xf32> to vector<16x128xf32>
    %565 = arith.mulf %562, %564 : vector<16x128xf32>
    %cst_192 = arith.constant dense<0.000000e+00> : vector<128xf32>
    %566 = vector.multi_reduction <add>, %565, %cst_192 [0] : vector<16x128xf32> to vector<128xf32>
    %567 = vector.shape_cast %566 : vector<128xf32> to vector<1x128xf32>
    %c4_193 = arith.constant 4 : index
    %c0_194 = arith.constant 0 : index
    %c0_195 = arith.constant 0 : index
    %568 = vector.load %arg18[%c4_193, %c0_194, %c0_195] : memref<20x16x128xf32, #tpu.memory_space<vmem>>, vector<1x16x128xf32>
    %569 = vector.shape_cast %568 : vector<1x16x128xf32> to vector<16x128xf32>
    %570 = arith.mulf %569, %562 : vector<16x128xf32>
    %c4_196 = arith.constant 4 : index
    %c0_197 = arith.constant 0 : index
    %c0_198 = arith.constant 0 : index
    %571 = vector.load %arg19[%c4_196, %c0_197, %c0_198] : memref<20x16x128xf32, #tpu.memory_space<vmem>>, vector<1x16x128xf32>
    %572 = vector.shape_cast %571 : vector<1x16x128xf32> to vector<16x128xf32>
    %573 = arith.addf %570, %572 : vector<16x128xf32>
    %574 = vector.extract_strided_slice %522 {offsets = [0, 4], sizes = [16, 1], strides = [1, 1]} : vector<16x20xf32> to vector<16x1xf32>
    %575 = vector.broadcast %574 : vector<16x1xf32> to vector<16x128xf32>
    %576 = arith.mulf %573, %575 : vector<16x128xf32>
    %cst_199 = arith.constant dense<0.000000e+00> : vector<128xf32>
    %577 = vector.multi_reduction <add>, %576, %cst_199 [0] : vector<16x128xf32> to vector<128xf32>
    %578 = vector.shape_cast %577 : vector<128xf32> to vector<1x128xf32>
    %c5_200 = arith.constant 5 : index
    %c0_201 = arith.constant 0 : index
    %c0_202 = arith.constant 0 : index
    %579 = vector.load %arg18[%c5_200, %c0_201, %c0_202] : memref<20x16x128xf32, #tpu.memory_space<vmem>>, vector<1x16x128xf32>
    %580 = vector.shape_cast %579 : vector<1x16x128xf32> to vector<16x128xf32>
    %581 = arith.mulf %580, %573 : vector<16x128xf32>
    %c5_203 = arith.constant 5 : index
    %c0_204 = arith.constant 0 : index
    %c0_205 = arith.constant 0 : index
    %582 = vector.load %arg19[%c5_203, %c0_204, %c0_205] : memref<20x16x128xf32, #tpu.memory_space<vmem>>, vector<1x16x128xf32>
    %583 = vector.shape_cast %582 : vector<1x16x128xf32> to vector<16x128xf32>
    %584 = arith.addf %581, %583 : vector<16x128xf32>
    %585 = vector.extract_strided_slice %522 {offsets = [0, 5], sizes = [16, 1], strides = [1, 1]} : vector<16x20xf32> to vector<16x1xf32>
    %586 = vector.broadcast %585 : vector<16x1xf32> to vector<16x128xf32>
    %587 = arith.mulf %584, %586 : vector<16x128xf32>
    %cst_206 = arith.constant dense<0.000000e+00> : vector<128xf32>
    %588 = vector.multi_reduction <add>, %587, %cst_206 [0] : vector<16x128xf32> to vector<128xf32>
    %589 = vector.shape_cast %588 : vector<128xf32> to vector<1x128xf32>
    %c6_207 = arith.constant 6 : index
    %c0_208 = arith.constant 0 : index
    %c0_209 = arith.constant 0 : index
    %590 = vector.load %arg18[%c6_207, %c0_208, %c0_209] : memref<20x16x128xf32, #tpu.memory_space<vmem>>, vector<1x16x128xf32>
    %591 = vector.shape_cast %590 : vector<1x16x128xf32> to vector<16x128xf32>
    %592 = arith.mulf %591, %584 : vector<16x128xf32>
    %c6_210 = arith.constant 6 : index
    %c0_211 = arith.constant 0 : index
    %c0_212 = arith.constant 0 : index
    %593 = vector.load %arg19[%c6_210, %c0_211, %c0_212] : memref<20x16x128xf32, #tpu.memory_space<vmem>>, vector<1x16x128xf32>
    %594 = vector.shape_cast %593 : vector<1x16x128xf32> to vector<16x128xf32>
    %595 = arith.addf %592, %594 : vector<16x128xf32>
    %596 = vector.extract_strided_slice %522 {offsets = [0, 6], sizes = [16, 1], strides = [1, 1]} : vector<16x20xf32> to vector<16x1xf32>
    %597 = vector.broadcast %596 : vector<16x1xf32> to vector<16x128xf32>
    %598 = arith.mulf %595, %597 : vector<16x128xf32>
    %cst_213 = arith.constant dense<0.000000e+00> : vector<128xf32>
    %599 = vector.multi_reduction <add>, %598, %cst_213 [0] : vector<16x128xf32> to vector<128xf32>
    %600 = vector.shape_cast %599 : vector<128xf32> to vector<1x128xf32>
    %c7_214 = arith.constant 7 : index
    %c0_215 = arith.constant 0 : index
    %c0_216 = arith.constant 0 : index
    %601 = vector.load %arg18[%c7_214, %c0_215, %c0_216] : memref<20x16x128xf32, #tpu.memory_space<vmem>>, vector<1x16x128xf32>
    %602 = vector.shape_cast %601 : vector<1x16x128xf32> to vector<16x128xf32>
    %603 = arith.mulf %602, %595 : vector<16x128xf32>
    %c7_217 = arith.constant 7 : index
    %c0_218 = arith.constant 0 : index
    %c0_219 = arith.constant 0 : index
    %604 = vector.load %arg19[%c7_217, %c0_218, %c0_219] : memref<20x16x128xf32, #tpu.memory_space<vmem>>, vector<1x16x128xf32>
    %605 = vector.shape_cast %604 : vector<1x16x128xf32> to vector<16x128xf32>
    %606 = arith.addf %603, %605 : vector<16x128xf32>
    %607 = vector.extract_strided_slice %522 {offsets = [0, 7], sizes = [16, 1], strides = [1, 1]} : vector<16x20xf32> to vector<16x1xf32>
    %608 = vector.broadcast %607 : vector<16x1xf32> to vector<16x128xf32>
    %609 = arith.mulf %606, %608 : vector<16x128xf32>
    %cst_220 = arith.constant dense<0.000000e+00> : vector<128xf32>
    %610 = vector.multi_reduction <add>, %609, %cst_220 [0] : vector<16x128xf32> to vector<128xf32>
    %611 = vector.shape_cast %610 : vector<128xf32> to vector<1x128xf32>
    %c8_221 = arith.constant 8 : index
    %c0_222 = arith.constant 0 : index
    %c0_223 = arith.constant 0 : index
    %612 = vector.load %arg18[%c8_221, %c0_222, %c0_223] : memref<20x16x128xf32, #tpu.memory_space<vmem>>, vector<1x16x128xf32>
    %613 = vector.shape_cast %612 : vector<1x16x128xf32> to vector<16x128xf32>
    %614 = arith.mulf %613, %606 : vector<16x128xf32>
    %c8_224 = arith.constant 8 : index
    %c0_225 = arith.constant 0 : index
    %c0_226 = arith.constant 0 : index
    %615 = vector.load %arg19[%c8_224, %c0_225, %c0_226] : memref<20x16x128xf32, #tpu.memory_space<vmem>>, vector<1x16x128xf32>
    %616 = vector.shape_cast %615 : vector<1x16x128xf32> to vector<16x128xf32>
    %617 = arith.addf %614, %616 : vector<16x128xf32>
    %618 = vector.extract_strided_slice %522 {offsets = [0, 8], sizes = [16, 1], strides = [1, 1]} : vector<16x20xf32> to vector<16x1xf32>
    %619 = vector.broadcast %618 : vector<16x1xf32> to vector<16x128xf32>
    %620 = arith.mulf %617, %619 : vector<16x128xf32>
    %cst_227 = arith.constant dense<0.000000e+00> : vector<128xf32>
    %621 = vector.multi_reduction <add>, %620, %cst_227 [0] : vector<16x128xf32> to vector<128xf32>
    %622 = vector.shape_cast %621 : vector<128xf32> to vector<1x128xf32>
    %c9_228 = arith.constant 9 : index
    %c0_229 = arith.constant 0 : index
    %c0_230 = arith.constant 0 : index
    %623 = vector.load %arg18[%c9_228, %c0_229, %c0_230] : memref<20x16x128xf32, #tpu.memory_space<vmem>>, vector<1x16x128xf32>
    %624 = vector.shape_cast %623 : vector<1x16x128xf32> to vector<16x128xf32>
    %625 = arith.mulf %624, %617 : vector<16x128xf32>
    %c9_231 = arith.constant 9 : index
    %c0_232 = arith.constant 0 : index
    %c0_233 = arith.constant 0 : index
    %626 = vector.load %arg19[%c9_231, %c0_232, %c0_233] : memref<20x16x128xf32, #tpu.memory_space<vmem>>, vector<1x16x128xf32>
    %627 = vector.shape_cast %626 : vector<1x16x128xf32> to vector<16x128xf32>
    %628 = arith.addf %625, %627 : vector<16x128xf32>
    %629 = vector.extract_strided_slice %522 {offsets = [0, 9], sizes = [16, 1], strides = [1, 1]} : vector<16x20xf32> to vector<16x1xf32>
    %630 = vector.broadcast %629 : vector<16x1xf32> to vector<16x128xf32>
    %631 = arith.mulf %628, %630 : vector<16x128xf32>
    %cst_234 = arith.constant dense<0.000000e+00> : vector<128xf32>
    %632 = vector.multi_reduction <add>, %631, %cst_234 [0] : vector<16x128xf32> to vector<128xf32>
    %633 = vector.shape_cast %632 : vector<128xf32> to vector<1x128xf32>
    %c10_235 = arith.constant 10 : index
    %c0_236 = arith.constant 0 : index
    %c0_237 = arith.constant 0 : index
    %634 = vector.load %arg18[%c10_235, %c0_236, %c0_237] : memref<20x16x128xf32, #tpu.memory_space<vmem>>, vector<1x16x128xf32>
    %635 = vector.shape_cast %634 : vector<1x16x128xf32> to vector<16x128xf32>
    %636 = arith.mulf %635, %628 : vector<16x128xf32>
    %c10_238 = arith.constant 10 : index
    %c0_239 = arith.constant 0 : index
    %c0_240 = arith.constant 0 : index
    %637 = vector.load %arg19[%c10_238, %c0_239, %c0_240] : memref<20x16x128xf32, #tpu.memory_space<vmem>>, vector<1x16x128xf32>
    %638 = vector.shape_cast %637 : vector<1x16x128xf32> to vector<16x128xf32>
    %639 = arith.addf %636, %638 : vector<16x128xf32>
    %640 = vector.extract_strided_slice %522 {offsets = [0, 10], sizes = [16, 1], strides = [1, 1]} : vector<16x20xf32> to vector<16x1xf32>
    %641 = vector.broadcast %640 : vector<16x1xf32> to vector<16x128xf32>
    %642 = arith.mulf %639, %641 : vector<16x128xf32>
    %cst_241 = arith.constant dense<0.000000e+00> : vector<128xf32>
    %643 = vector.multi_reduction <add>, %642, %cst_241 [0] : vector<16x128xf32> to vector<128xf32>
    %644 = vector.shape_cast %643 : vector<128xf32> to vector<1x128xf32>
    %c11_242 = arith.constant 11 : index
    %c0_243 = arith.constant 0 : index
    %c0_244 = arith.constant 0 : index
    %645 = vector.load %arg18[%c11_242, %c0_243, %c0_244] : memref<20x16x128xf32, #tpu.memory_space<vmem>>, vector<1x16x128xf32>
    %646 = vector.shape_cast %645 : vector<1x16x128xf32> to vector<16x128xf32>
    %647 = arith.mulf %646, %639 : vector<16x128xf32>
    %c11_245 = arith.constant 11 : index
    %c0_246 = arith.constant 0 : index
    %c0_247 = arith.constant 0 : index
    %648 = vector.load %arg19[%c11_245, %c0_246, %c0_247] : memref<20x16x128xf32, #tpu.memory_space<vmem>>, vector<1x16x128xf32>
    %649 = vector.shape_cast %648 : vector<1x16x128xf32> to vector<16x128xf32>
    %650 = arith.addf %647, %649 : vector<16x128xf32>
    %651 = vector.extract_strided_slice %522 {offsets = [0, 11], sizes = [16, 1], strides = [1, 1]} : vector<16x20xf32> to vector<16x1xf32>
    %652 = vector.broadcast %651 : vector<16x1xf32> to vector<16x128xf32>
    %653 = arith.mulf %650, %652 : vector<16x128xf32>
    %cst_248 = arith.constant dense<0.000000e+00> : vector<128xf32>
    %654 = vector.multi_reduction <add>, %653, %cst_248 [0] : vector<16x128xf32> to vector<128xf32>
    %655 = vector.shape_cast %654 : vector<128xf32> to vector<1x128xf32>
    %c12_249 = arith.constant 12 : index
    %c0_250 = arith.constant 0 : index
    %c0_251 = arith.constant 0 : index
    %656 = vector.load %arg18[%c12_249, %c0_250, %c0_251] : memref<20x16x128xf32, #tpu.memory_space<vmem>>, vector<1x16x128xf32>
    %657 = vector.shape_cast %656 : vector<1x16x128xf32> to vector<16x128xf32>
    %658 = arith.mulf %657, %650 : vector<16x128xf32>
    %c12_252 = arith.constant 12 : index
    %c0_253 = arith.constant 0 : index
    %c0_254 = arith.constant 0 : index
    %659 = vector.load %arg19[%c12_252, %c0_253, %c0_254] : memref<20x16x128xf32, #tpu.memory_space<vmem>>, vector<1x16x128xf32>
    %660 = vector.shape_cast %659 : vector<1x16x128xf32> to vector<16x128xf32>
    %661 = arith.addf %658, %660 : vector<16x128xf32>
    %662 = vector.extract_strided_slice %522 {offsets = [0, 12], sizes = [16, 1], strides = [1, 1]} : vector<16x20xf32> to vector<16x1xf32>
    %663 = vector.broadcast %662 : vector<16x1xf32> to vector<16x128xf32>
    %664 = arith.mulf %661, %663 : vector<16x128xf32>
    %cst_255 = arith.constant dense<0.000000e+00> : vector<128xf32>
    %665 = vector.multi_reduction <add>, %664, %cst_255 [0] : vector<16x128xf32> to vector<128xf32>
    %666 = vector.shape_cast %665 : vector<128xf32> to vector<1x128xf32>
    %c13_256 = arith.constant 13 : index
    %c0_257 = arith.constant 0 : index
    %c0_258 = arith.constant 0 : index
    %667 = vector.load %arg18[%c13_256, %c0_257, %c0_258] : memref<20x16x128xf32, #tpu.memory_space<vmem>>, vector<1x16x128xf32>
    %668 = vector.shape_cast %667 : vector<1x16x128xf32> to vector<16x128xf32>
    %669 = arith.mulf %668, %661 : vector<16x128xf32>
    %c13_259 = arith.constant 13 : index
    %c0_260 = arith.constant 0 : index
    %c0_261 = arith.constant 0 : index
    %670 = vector.load %arg19[%c13_259, %c0_260, %c0_261] : memref<20x16x128xf32, #tpu.memory_space<vmem>>, vector<1x16x128xf32>
    %671 = vector.shape_cast %670 : vector<1x16x128xf32> to vector<16x128xf32>
    %672 = arith.addf %669, %671 : vector<16x128xf32>
    %673 = vector.extract_strided_slice %522 {offsets = [0, 13], sizes = [16, 1], strides = [1, 1]} : vector<16x20xf32> to vector<16x1xf32>
    %674 = vector.broadcast %673 : vector<16x1xf32> to vector<16x128xf32>
    %675 = arith.mulf %672, %674 : vector<16x128xf32>
    %cst_262 = arith.constant dense<0.000000e+00> : vector<128xf32>
    %676 = vector.multi_reduction <add>, %675, %cst_262 [0] : vector<16x128xf32> to vector<128xf32>
    %677 = vector.shape_cast %676 : vector<128xf32> to vector<1x128xf32>
    %c14_263 = arith.constant 14 : index
    %c0_264 = arith.constant 0 : index
    %c0_265 = arith.constant 0 : index
    %678 = vector.load %arg18[%c14_263, %c0_264, %c0_265] : memref<20x16x128xf32, #tpu.memory_space<vmem>>, vector<1x16x128xf32>
    %679 = vector.shape_cast %678 : vector<1x16x128xf32> to vector<16x128xf32>
    %680 = arith.mulf %679, %672 : vector<16x128xf32>
    %c14_266 = arith.constant 14 : index
    %c0_267 = arith.constant 0 : index
    %c0_268 = arith.constant 0 : index
    %681 = vector.load %arg19[%c14_266, %c0_267, %c0_268] : memref<20x16x128xf32, #tpu.memory_space<vmem>>, vector<1x16x128xf32>
    %682 = vector.shape_cast %681 : vector<1x16x128xf32> to vector<16x128xf32>
    %683 = arith.addf %680, %682 : vector<16x128xf32>
    %684 = vector.extract_strided_slice %522 {offsets = [0, 14], sizes = [16, 1], strides = [1, 1]} : vector<16x20xf32> to vector<16x1xf32>
    %685 = vector.broadcast %684 : vector<16x1xf32> to vector<16x128xf32>
    %686 = arith.mulf %683, %685 : vector<16x128xf32>
    %cst_269 = arith.constant dense<0.000000e+00> : vector<128xf32>
    %687 = vector.multi_reduction <add>, %686, %cst_269 [0] : vector<16x128xf32> to vector<128xf32>
    %688 = vector.shape_cast %687 : vector<128xf32> to vector<1x128xf32>
    %c15_270 = arith.constant 15 : index
    %c0_271 = arith.constant 0 : index
    %c0_272 = arith.constant 0 : index
    %689 = vector.load %arg18[%c15_270, %c0_271, %c0_272] : memref<20x16x128xf32, #tpu.memory_space<vmem>>, vector<1x16x128xf32>
    %690 = vector.shape_cast %689 : vector<1x16x128xf32> to vector<16x128xf32>
    %691 = arith.mulf %690, %683 : vector<16x128xf32>
    %c15_273 = arith.constant 15 : index
    %c0_274 = arith.constant 0 : index
    %c0_275 = arith.constant 0 : index
    %692 = vector.load %arg19[%c15_273, %c0_274, %c0_275] : memref<20x16x128xf32, #tpu.memory_space<vmem>>, vector<1x16x128xf32>
    %693 = vector.shape_cast %692 : vector<1x16x128xf32> to vector<16x128xf32>
    %694 = arith.addf %691, %693 : vector<16x128xf32>
    %695 = vector.extract_strided_slice %522 {offsets = [0, 15], sizes = [16, 1], strides = [1, 1]} : vector<16x20xf32> to vector<16x1xf32>
    %696 = vector.broadcast %695 : vector<16x1xf32> to vector<16x128xf32>
    %697 = arith.mulf %694, %696 : vector<16x128xf32>
    %cst_276 = arith.constant dense<0.000000e+00> : vector<128xf32>
    %698 = vector.multi_reduction <add>, %697, %cst_276 [0] : vector<16x128xf32> to vector<128xf32>
    %699 = vector.shape_cast %698 : vector<128xf32> to vector<1x128xf32>
    %c16_277 = arith.constant 16 : index
    %c0_278 = arith.constant 0 : index
    %c0_279 = arith.constant 0 : index
    %700 = vector.load %arg18[%c16_277, %c0_278, %c0_279] : memref<20x16x128xf32, #tpu.memory_space<vmem>>, vector<1x16x128xf32>
    %701 = vector.shape_cast %700 : vector<1x16x128xf32> to vector<16x128xf32>
    %702 = arith.mulf %701, %694 : vector<16x128xf32>
    %c16_280 = arith.constant 16 : index
    %c0_281 = arith.constant 0 : index
    %c0_282 = arith.constant 0 : index
    %703 = vector.load %arg19[%c16_280, %c0_281, %c0_282] : memref<20x16x128xf32, #tpu.memory_space<vmem>>, vector<1x16x128xf32>
    %704 = vector.shape_cast %703 : vector<1x16x128xf32> to vector<16x128xf32>
    %705 = arith.addf %702, %704 : vector<16x128xf32>
    %706 = vector.extract_strided_slice %522 {offsets = [0, 16], sizes = [16, 1], strides = [1, 1]} : vector<16x20xf32> to vector<16x1xf32>
    %707 = vector.broadcast %706 : vector<16x1xf32> to vector<16x128xf32>
    %708 = arith.mulf %705, %707 : vector<16x128xf32>
    %cst_283 = arith.constant dense<0.000000e+00> : vector<128xf32>
    %709 = vector.multi_reduction <add>, %708, %cst_283 [0] : vector<16x128xf32> to vector<128xf32>
    %710 = vector.shape_cast %709 : vector<128xf32> to vector<1x128xf32>
    %c17_284 = arith.constant 17 : index
    %c0_285 = arith.constant 0 : index
    %c0_286 = arith.constant 0 : index
    %711 = vector.load %arg18[%c17_284, %c0_285, %c0_286] : memref<20x16x128xf32, #tpu.memory_space<vmem>>, vector<1x16x128xf32>
    %712 = vector.shape_cast %711 : vector<1x16x128xf32> to vector<16x128xf32>
    %713 = arith.mulf %712, %705 : vector<16x128xf32>
    %c17_287 = arith.constant 17 : index
    %c0_288 = arith.constant 0 : index
    %c0_289 = arith.constant 0 : index
    %714 = vector.load %arg19[%c17_287, %c0_288, %c0_289] : memref<20x16x128xf32, #tpu.memory_space<vmem>>, vector<1x16x128xf32>
    %715 = vector.shape_cast %714 : vector<1x16x128xf32> to vector<16x128xf32>
    %716 = arith.addf %713, %715 : vector<16x128xf32>
    %717 = vector.extract_strided_slice %522 {offsets = [0, 17], sizes = [16, 1], strides = [1, 1]} : vector<16x20xf32> to vector<16x1xf32>
    %718 = vector.broadcast %717 : vector<16x1xf32> to vector<16x128xf32>
    %719 = arith.mulf %716, %718 : vector<16x128xf32>
    %cst_290 = arith.constant dense<0.000000e+00> : vector<128xf32>
    %720 = vector.multi_reduction <add>, %719, %cst_290 [0] : vector<16x128xf32> to vector<128xf32>
    %721 = vector.shape_cast %720 : vector<128xf32> to vector<1x128xf32>
    %c18_291 = arith.constant 18 : index
    %c0_292 = arith.constant 0 : index
    %c0_293 = arith.constant 0 : index
    %722 = vector.load %arg18[%c18_291, %c0_292, %c0_293] : memref<20x16x128xf32, #tpu.memory_space<vmem>>, vector<1x16x128xf32>
    %723 = vector.shape_cast %722 : vector<1x16x128xf32> to vector<16x128xf32>
    %724 = arith.mulf %723, %716 : vector<16x128xf32>
    %c18_294 = arith.constant 18 : index
    %c0_295 = arith.constant 0 : index
    %c0_296 = arith.constant 0 : index
    %725 = vector.load %arg19[%c18_294, %c0_295, %c0_296] : memref<20x16x128xf32, #tpu.memory_space<vmem>>, vector<1x16x128xf32>
    %726 = vector.shape_cast %725 : vector<1x16x128xf32> to vector<16x128xf32>
    %727 = arith.addf %724, %726 : vector<16x128xf32>
    %728 = vector.extract_strided_slice %522 {offsets = [0, 18], sizes = [16, 1], strides = [1, 1]} : vector<16x20xf32> to vector<16x1xf32>
    %729 = vector.broadcast %728 : vector<16x1xf32> to vector<16x128xf32>
    %730 = arith.mulf %727, %729 : vector<16x128xf32>
    %cst_297 = arith.constant dense<0.000000e+00> : vector<128xf32>
    %731 = vector.multi_reduction <add>, %730, %cst_297 [0] : vector<16x128xf32> to vector<128xf32>
    %732 = vector.shape_cast %731 : vector<128xf32> to vector<1x128xf32>
    %c19_298 = arith.constant 19 : index
    %c0_299 = arith.constant 0 : index
    %c0_300 = arith.constant 0 : index
    %733 = vector.load %arg18[%c19_298, %c0_299, %c0_300] : memref<20x16x128xf32, #tpu.memory_space<vmem>>, vector<1x16x128xf32>
    %734 = vector.shape_cast %733 : vector<1x16x128xf32> to vector<16x128xf32>
    %735 = arith.mulf %734, %727 : vector<16x128xf32>
    %c19_301 = arith.constant 19 : index
    %c0_302 = arith.constant 0 : index
    %c0_303 = arith.constant 0 : index
    %736 = vector.load %arg19[%c19_301, %c0_302, %c0_303] : memref<20x16x128xf32, #tpu.memory_space<vmem>>, vector<1x16x128xf32>
    %737 = vector.shape_cast %736 : vector<1x16x128xf32> to vector<16x128xf32>
    %738 = arith.addf %735, %737 : vector<16x128xf32>
    %739 = vector.extract_strided_slice %522 {offsets = [0, 19], sizes = [16, 1], strides = [1, 1]} : vector<16x20xf32> to vector<16x1xf32>
    %740 = vector.broadcast %739 : vector<16x1xf32> to vector<16x128xf32>
    %741 = arith.mulf %738, %740 : vector<16x128xf32>
    %cst_304 = arith.constant dense<0.000000e+00> : vector<128xf32>
    %742 = vector.multi_reduction <add>, %741, %cst_304 [0] : vector<16x128xf32> to vector<128xf32>
    %743 = vector.shape_cast %742 : vector<128xf32> to vector<1x128xf32>
    %744 = tpu.concatenate %534, %545, %556, %567, %578, %589, %600, %611, %622, %633, %644, %655, %666, %677, %688, %699 in 0 : vector<1x128xf32>, vector<1x128xf32>, vector<1x128xf32>, vector<1x128xf32>, vector<1x128xf32>, vector<1x128xf32>, vector<1x128xf32>, vector<1x128xf32>, vector<1x128xf32>, vector<1x128xf32>, vector<1x128xf32>, vector<1x128xf32>, vector<1x128xf32>, vector<1x128xf32>, vector<1x128xf32>, vector<1x128xf32> -> vector<16x128xf32>
    %745 = tpu.concatenate %710, %721, %732, %743 in 0 : vector<1x128xf32>, vector<1x128xf32>, vector<1x128xf32>, vector<1x128xf32> -> vector<4x128xf32>
    %746 = tpu.concatenate %744, %745 in 0 : vector<16x128xf32>, vector<4x128xf32> -> vector<20x128xf32>
    %c0_305 = arith.constant 0 : index
    %c0_306 = arith.constant 0 : index
    %c0_307 = arith.constant 0 : index
    %747 = vector.load %arg10[%c0_305, %c0_306, %c0_307] : memref<1x1x128xf32, #tpu.memory_space<vmem>>, vector<1x1x128xf32>
    %748 = vector.shape_cast %747 : vector<1x1x128xf32> to vector<1x128xf32>
    %749 = vector.broadcast %748 : vector<1x128xf32> to vector<20x128xf32>
    %750 = arith.mulf %64, %749 : vector<20x128xf32>
    %751 = arith.addf %746, %750 : vector<20x128xf32>
    %752 = arith.mulf %751, %92 : vector<20x128xf32>
    %753 = arith.truncf %752 : vector<20x128xf32> to vector<20x128xbf16>
    %c0_308 = arith.constant 0 : index
    %c0_309 = arith.constant 0 : index
    %c0_310 = arith.constant 0 : index
    %754 = vector.load %arg11[%c0_308, %c0_309, %c0_310] : memref<1x128x64xbf16, #tpu.memory_space<vmem>>, vector<1x128x64xbf16>
    %755 = vector.shape_cast %754 : vector<1x128x64xbf16> to vector<128x64xbf16>
    %cst_311 = arith.constant dense<0.000000e+00> : vector<20x64xf32>
    %756 = tpu.matmul %753, %755, %cst_311 {dimension_numbers = #tpu.dot_dimension_numbers<[1], [0], [0], [1], [0, 0, 1, 1], [], []>} : vector<20x128xbf16>, vector<128x64xbf16>, vector<20x64xf32> -> vector<20x64xf32>
    %c0_312 = arith.constant 0 : index
    %c0_313 = arith.constant 0 : index
    %757 = vector.load %arg16[%c0_312, %c0_313] : memref<20x64xf32, #tpu.memory_space<vmem>>, vector<20x64xf32>
    tpu.vector_store %arg16[%c0_312, %c0_313], %756 {strides = array<i32>} : memref<20x64xf32, #tpu.memory_space<vmem>>, vector<20x64xf32>,
    %c3_i32 = arith.constant 3 : i32
    %758 = arith.cmpi eq, %arg1, %c3_i32 : i32
    %759 = arith.extui %758 : i1 to i32
    %c0_i32_314 = arith.constant 0 : i32
    %760 = arith.cmpi ne, %759, %c0_i32_314 : i32
    scf.if %760 {
      %761 = arith.addf %756, %5 : vector<20x64xf32>
      %762 = vector.extract_strided_slice %761 {offsets = [4, 0], sizes = [1, 64], strides = [1, 1]} : vector<20x64xf32> to vector<1x64xf32>
      %763 = vector.extract_strided_slice %761 {offsets = [9, 0], sizes = [1, 64], strides = [1, 1]} : vector<20x64xf32> to vector<1x64xf32>
      %764 = vector.extract_strided_slice %761 {offsets = [14, 0], sizes = [1, 64], strides = [1, 1]} : vector<20x64xf32> to vector<1x64xf32>
      %765 = vector.extract_strided_slice %761 {offsets = [19, 0], sizes = [1, 64], strides = [1, 1]} : vector<20x64xf32> to vector<1x64xf32>
      %766 = tpu.concatenate %762, %763, %764, %765 in 0 : vector<1x64xf32>, vector<1x64xf32>, vector<1x64xf32>, vector<1x64xf32> -> vector<4x64xf32>
      %767 = arith.mulf %766, %766 : vector<4x64xf32>
      %cst_315 = arith.constant dense<0.000000e+00> : vector<4xf32>
      %768 = vector.multi_reduction <add>, %767, %cst_315 [1] : vector<4x64xf32> to vector<4xf32>
      %769 = vector.shape_cast %768 : vector<4xf32> to vector<4x1xf32>
      %cst_316 = arith.constant 6.400000e+01 : f32
      %770 = vector.broadcast %cst_316 : f32 to vector<4x1xf32>
      %771 = arith.divf %769, %770 : vector<4x1xf32>
      %cst_317 = arith.constant 9.99999974E-6 : f32
      %772 = vector.broadcast %cst_317 : f32 to vector<4x1xf32>
      %773 = arith.addf %771, %772 : vector<4x1xf32>
      %774 = math.rsqrt %773 : vector<4x1xf32>
      %775 = vector.broadcast %774 : vector<4x1xf32> to vector<4x64xf32>
      %776 = arith.mulf %766, %775 : vector<4x64xf32>
      %c0_318 = arith.constant 0 : index
      %c0_319 = arith.constant 0 : index
      %777 = vector.load %arg12[%c0_318, %c0_319] : memref<1x64xf32, #tpu.memory_space<vmem>>, vector<1x64xf32>
      %778 = vector.broadcast %777 : vector<1x64xf32> to vector<4x64xf32>
      %779 = arith.mulf %776, %778 : vector<4x64xf32>
      %780 = arith.truncf %779 : vector<4x64xf32> to vector<4x64xbf16>
      %c0_320 = arith.constant 0 : index
      %c0_321 = arith.constant 0 : index
      %781 = vector.load %arg13[%c0_320, %c0_321] : memref<64x16xbf16, #tpu.memory_space<vmem>>, vector<64x16xbf16>
      %cst_322 = arith.constant dense<0.000000e+00> : vector<4x16xf32>
      %782 = tpu.matmul %780, %781, %cst_322 {dimension_numbers = #tpu.dot_dimension_numbers<[1], [0], [0], [1], [0, 0, 1, 1], [], []>} : vector<4x64xbf16>, vector<64x16xbf16>, vector<4x16xf32> -> vector<4x16xf32>
      %783 = arith.mulf %782, %782 : vector<4x16xf32>
      %cst_323 = arith.constant dense<0.000000e+00> : vector<4xf32>
      %784 = vector.multi_reduction <add>, %783, %cst_323 [1] : vector<4x16xf32> to vector<4xf32>
      %785 = vector.shape_cast %784 : vector<4xf32> to vector<4x1xf32>
      %cst_324 = arith.constant dense<0.000000e+00> : vector<1xf32>
      %786 = vector.multi_reduction <add>, %785, %cst_324 [0] : vector<4x1xf32> to vector<1xf32>
      %787 = vector.shape_cast %786 : vector<1xf32> to vector<1x1xf32>
      %cst_325 = arith.constant 1.562500e-02 : f32
      %788 = vector.broadcast %cst_325 : f32 to vector<1x1xf32>
      %789 = arith.mulf %787, %788 : vector<1x1xf32>
      %cst_326 = arith.constant 9.99999974E-6 : f32
      %790 = vector.broadcast %cst_326 : f32 to vector<1x1xf32>
      %791 = arith.addf %789, %790 : vector<1x1xf32>
      %792 = math.rsqrt %791 : vector<1x1xf32>
      %793 = vector.broadcast %792 : vector<1x1xf32> to vector<4x16xf32>
      %794 = arith.mulf %782, %793 : vector<4x16xf32>
      %c0_327 = arith.constant 0 : index
      %c0_328 = arith.constant 0 : index
      %795 = vector.load %arg14[%c0_327, %c0_328] : memref<4x16xf32, #tpu.memory_space<vmem>>, vector<4x16xf32>
      %796 = arith.mulf %794, %795 : vector<4x16xf32>
      %797 = arith.mulf %796, %796 : vector<4x16xf32>
      %cst_329 = arith.constant dense<0.000000e+00> : vector<4xf32>
      %798 = vector.multi_reduction <add>, %797, %cst_329 [1] : vector<4x16xf32> to vector<4xf32>
      %799 = vector.shape_cast %798 : vector<4xf32> to vector<4x1xf32>
      %cst_330 = arith.constant dense<0.000000e+00> : vector<1xf32>
      %800 = vector.multi_reduction <add>, %799, %cst_330 [0] : vector<4x1xf32> to vector<1xf32>
      %801 = vector.shape_cast %800 : vector<1xf32> to vector<1x1xf32>
      %802 = math.sqrt %801 : vector<1x1xf32>
      %cst_331 = arith.constant 9.99999996E-13 : f32
      %803 = vector.broadcast %cst_331 : f32 to vector<1x1xf32>
      %804 = arith.maximumf %802, %803 : vector<1x1xf32>
      %805 = vector.broadcast %804 : vector<1x1xf32> to vector<4x16xf32>
      %806 = arith.divf %796, %805 : vector<4x16xf32>
      %c0_332 = arith.constant 0 : index
      %c0_333 = arith.constant 0 : index
      %c0_334 = arith.constant 0 : index
      %807 = vector.load %arg15[%c0_332, %c0_333, %c0_334] : memref<1x4x16xf32, #tpu.memory_space<vmem>>, vector<1x4x16xf32>
      %808 = vector.shape_cast %807 : vector<1x4x16xf32> to vector<4x16xf32>
      %809 = vector.shape_cast %806 : vector<4x16xf32> to vector<1x4x16xf32>
      tpu.vector_store %arg15[%c0_332, %c0_333, %c0_334], %809 {strides = array<i32>} : memref<1x4x16xf32, #tpu.memory_space<vmem>>, vector<1x4x16xf32>,
    } else {
    }
    return
  }
  func.func @transform_0(%arg0: i32, %arg1: i32) -> (i32, i32, i32) {
    %c0_i32 = arith.constant 0 : i32
    %c0_i32_0 = arith.constant 0 : i32
    %c0_i32_1 = arith.constant 0 : i32
    return %arg0, %c0_i32, %c0_i32_0 : i32, i32, i32
  }
  func.func @transform_1(%arg0: i32, %arg1: i32) -> (i32, i32, i32) {
    %c0_i32 = arith.constant 0 : i32
    %c0_i32_0 = arith.constant 0 : i32
    %c0_i32_1 = arith.constant 0 : i32
    return %arg1, %c0_i32, %c0_i32_0 : i32, i32, i32
  }
  func.func @transform_2(%arg0: i32, %arg1: i32) -> (i32, i32, i32) {
    %c0_i32 = arith.constant 0 : i32
    %c0_i32_0 = arith.constant 0 : i32
    %c0_i32_1 = arith.constant 0 : i32
    return %arg1, %c0_i32, %c0_i32_0 : i32, i32, i32
  }
  func.func @transform_3(%arg0: i32, %arg1: i32) -> (i32, i32, i32) {
    %c0_i32 = arith.constant 0 : i32
    %c0_i32_0 = arith.constant 0 : i32
    %c0_i32_1 = arith.constant 0 : i32
    return %arg1, %c0_i32, %c0_i32_0 : i32, i32, i32
  }
  func.func @transform_4(%arg0: i32, %arg1: i32) -> (i32, i32, i32) {
    %c0_i32 = arith.constant 0 : i32
    %c0_i32_0 = arith.constant 0 : i32
    %c0_i32_1 = arith.constant 0 : i32
    return %arg1, %c0_i32, %c0_i32_0 : i32, i32, i32
  }
  func.func @transform_5(%arg0: i32, %arg1: i32) -> (i32, i32, i32) {
    %c0_i32 = arith.constant 0 : i32
    %c0_i32_0 = arith.constant 0 : i32
    %c0_i32_1 = arith.constant 0 : i32
    return %arg1, %c0_i32, %c0_i32_0 : i32, i32, i32
  }
  func.func @transform_6(%arg0: i32, %arg1: i32) -> (i32, i32, i32) {
    %c0_i32 = arith.constant 0 : i32
    %c0_i32_0 = arith.constant 0 : i32
    %c0_i32_1 = arith.constant 0 : i32
    return %arg1, %c0_i32, %c0_i32_0 : i32, i32, i32
  }
  func.func @transform_7(%arg0: i32, %arg1: i32) -> (i32, i32, i32) {
    %c0_i32 = arith.constant 0 : i32
    %c0_i32_0 = arith.constant 0 : i32
    %c0_i32_1 = arith.constant 0 : i32
    return %arg1, %c0_i32, %c0_i32_0 : i32, i32, i32
  }
  func.func @transform_8(%arg0: i32, %arg1: i32) -> (i32, i32, i32) {
    %c0_i32 = arith.constant 0 : i32
    %c0_i32_0 = arith.constant 0 : i32
    %c0_i32_1 = arith.constant 0 : i32
    return %arg1, %c0_i32, %c0_i32_0 : i32, i32, i32
  }
  func.func @transform_9(%arg0: i32, %arg1: i32) -> (i32, i32, i32) {
    %c0_i32 = arith.constant 0 : i32
    %c0_i32_0 = arith.constant 0 : i32
    %c0_i32_1 = arith.constant 0 : i32
    return %arg1, %c0_i32, %c0_i32_0 : i32, i32, i32
  }
  func.func @transform_10(%arg0: i32, %arg1: i32) -> (i32, i32) {
    %c0_i32 = arith.constant 0 : i32
    %c0_i32_0 = arith.constant 0 : i32
    %c0_i32_1 = arith.constant 0 : i32
    return %c0_i32, %c0_i32_0 : i32, i32
  }
  func.func @transform_11(%arg0: i32, %arg1: i32) -> (i32, i32) {
    %c0_i32 = arith.constant 0 : i32
    %c0_i32_0 = arith.constant 0 : i32
    %c0_i32_1 = arith.constant 0 : i32
    return %c0_i32, %c0_i32_0 : i32, i32
  }
  func.func @transform_12(%arg0: i32, %arg1: i32) -> (i32, i32) {
    %c0_i32 = arith.constant 0 : i32
    %c0_i32_0 = arith.constant 0 : i32
    %c0_i32_1 = arith.constant 0 : i32
    return %c0_i32, %c0_i32_0 : i32, i32
  }
  func.func @transform_13(%arg0: i32, %arg1: i32) -> (i32, i32, i32) {
    %c0_i32 = arith.constant 0 : i32
    %c0_i32_0 = arith.constant 0 : i32
    %c0_i32_1 = arith.constant 0 : i32
    return %arg0, %c0_i32, %c0_i32_0 : i32, i32, i32
  }
}

</mosaic_0001>

<bundles_post_ra>
// kernel: reid_mamba_forward.2
= control target key start
LH: loop header
LB: loop body
LE: loop exit
PB: predicated region body
PF: predicated region fallthrough
CT: control target
= control target key end

     0   :  { %v266_v0 = vmov 0   ;;  %vm140_vm0 = vcmask 523264   ;;  %s380_s1 = inlined_call_operand.vmem [shape: bf16[192,64], index: 1, kind: input, shape index: {}]   ;;  %s381_s0 = inlined_call_operand.vmem [shape: bf16[32,192], index: 0, kind: input, shape index: {}]   ;;  %s382_s2 = inlined_call_operand.vmem [shape: f32[1,64], index: 2, kind: input, shape index: {}]   ;;  %s383_s3 = inlined_call_operand.vmem [shape: f32[32,64], index: 3, kind: output, shape index: {}]  }
   0x1   :  { %147 = vmatprep.subr.bf16.mxu0 %v266_v0  ;;  %223 = vmatprep.subr.bf16.mxu1 %v266_v0  ;;  %v248_v1 = vld [vmem:[%s380_s1 + $0x38] sm:$0xff]   ;;  %v249_v2 = vld [vmem:[%s380_s1 + $0x30] sm:$0xff]   ;;  %v250_v3 = vld [vmem:[%s380_s1 + $0x28] sm:$0xff]  }
   0x2   :  { %148 = vmatpush1.bf16.msra.mxu0 %v248_v1  ;;  %235 = vmatpush1.bf16.msra.mxu1 %v248_v1  ;;  %v251_v4 = vld [vmem:[%s380_s1 + $0x20] sm:$0xff]   ;;  %v252_v6 = vld [vmem:[%s380_s1 + $0x18] sm:$0xff]   ;;  %v253_v8 = vld [vmem:[%s380_s1 + $0x10] sm:$0xff]  }
   0x3   :  { %149 = vmatprep.subr.bf16.mxu0 %v266_v0  ;;  %224 = vmatprep.subr.bf16.mxu1 %v266_v0  ;;  %v262_v5 = vld [vmem:[%s381_s0 + $0x4] ss:$8 sps:$4 sm:$0xff]   ;;  %v265_v7 = vld [vmem:[%s381_s0 + $0x14] ss:$8 sps:$4 sm:$0xff]   ;;  %v260_v15 = vld [vmem:[%s381_s0] ss:$8 sps:$4 sm:$0xff]  }
   0x4   :  { %221 = vmatprep.mubr.msk.bf16.mxu0 %vm140_vm0, %v262_v5  ;;  %222 = vmatprep.mubr.msk.bf16.mxu1 %vm140_vm0, %v265_v7  ;;  %v254_v9 = vld [vmem:[%s380_s1 + $0x8] sm:$0xff]   ;;  %v255_v10 = vld [vmem:[%s380_s1] sm:$0xff]   ;;  %v256_v11 = vld [vmem:[%s380_s1 + $0x58] sm:$0xff]  }
   0x5   :  { %v257_v12 = vld [vmem:[%s380_s1 + $0x50] sm:$0xff]   ;;  %v258_v13 = vld [vmem:[%s380_s1 + $0x48] sm:$0xff]   ;;  %v259_v14 = vld [vmem:[%s380_s1 + $0x40] sm:$0xff]  }
   0x6   :  { %150 = vmatpush1.bf16.msra.mxu0 %v249_v2  ;;  %236 = vmatpush1.bf16.msra.mxu1 %v249_v2  ;;  %v263_v16 = vld [vmem:[%s381_s0 + $0x10] ss:$8 sps:$4 sm:$0xff]   ;;  %v204_v17 = vld [vmem:[%s382_s2] ss:$0 sm:$0xff] }
   0x7   :  { %151 = vmatprep.subr.bf16.mxu0 %v266_v0  ;;  %225 = vmatprep.subr.bf16.mxu1 %v266_v0 }
   0xa   :  { %152 = vmatpush1.bf16.msra.mxu0 %v250_v3  ;;  %237 = vmatpush1.bf16.msra.mxu1 %v250_v3 }
   0xb   :  { %153 = vmatprep.subr.bf16.mxu0 %v266_v0  ;;  %226 = vmatprep.subr.bf16.mxu1 %v266_v0 }
   0xe   :  { %154 = vmatpush1.bf16.msra.mxu0 %v251_v4  ;;  %238 = vmatpush1.bf16.msra.mxu1 %v251_v4 }
   0xf   :  { %155 = vmatprep.subr.bf16.mxu0 %v266_v0  ;;  %227 = vmatprep.subr.bf16.mxu1 %v266_v0 }
  0x12   :  { %156 = vmatpush1.bf16.msra.mxu0 %v252_v6  ;;  %239 = vmatpush1.bf16.msra.mxu1 %v252_v6 }
  0x13   :  { %157 = vmatprep.subr.bf16.mxu0 %v266_v0  ;;  %228 = vmatprep.subr.bf16.mxu1 %v266_v0 }
  0x16   :  { %158 = vmatpush1.bf16.msra.mxu0 %v253_v8  ;;  %240 = vmatpush1.bf16.msra.mxu1 %v253_v8 }
  0x17   :  { %159 = vmatprep.subr.bf16.mxu0 %v266_v0  ;;  %229 = vmatprep.subr.bf16.mxu1 %v266_v0 }
  0x1a   :  { %160 = vmatpush1.bf16.msra.mxu0 %v254_v9  ;;  %241 = vmatpush1.bf16.msra.mxu1 %v254_v9 }
  0x1b   :  { %161 = vmatprep.subr.bf16.mxu0 %v266_v0  ;;  %230 = vmatprep.subr.bf16.mxu1 %v266_v0 }
  0x1e   :  { %162 = vmatpush1.bf16.msra.mxu0 %v255_v10  ;;  %242 = vmatpush1.bf16.msra.mxu1 %v255_v10 }
  0x1f   :  { %171 = vmatprep.subr.bf16.mxu0 %v266_v0  ;;  %231 = vmatprep.subr.bf16.mxu1 %v266_v0 }
  0x22   :  { %172 = vmatpush2.bf16.msra.mxu0 %v256_v11  ;;  %243 = vmatpush2.bf16.msra.mxu1 %v256_v11 }
  0x23   :  { %173 = vmatprep.subr.bf16.mxu0 %v266_v0  ;;  %232 = vmatprep.subr.bf16.mxu1 %v266_v0 }
  0x26   :  { %174 = vmatpush2.bf16.msra.mxu0 %v257_v12  ;;  %244 = vmatpush2.bf16.msra.mxu1 %v257_v12 }
  0x27   :  { %175 = vmatprep.subr.bf16.mxu0 %v266_v0  ;;  %233 = vmatprep.subr.bf16.mxu1 %v266_v0 }
  0x2a   :  { %176 = vmatpush2.bf16.msra.mxu0 %v258_v13  ;;  %245 = vmatpush2.bf16.msra.mxu1 %v258_v13 }
  0x2b   :  { %177 = vmatprep.subr.bf16.mxu0 %v266_v0  ;;  %234 = vmatprep.subr.bf16.mxu1 %v266_v0 }
  0x2e   :  { %178 = vmatpush2.bf16.msra.mxu0 %v259_v14  ;;  %246 = vmatpush2.bf16.msra.mxu1 %v259_v14 }
  0x31   :  { %180 = vmatmul.mubr.bf16.vlgmr.msra.gmra.mxu0 %v260_v15  ;;  %188 = vmatmul.mubr.bf16.vlgmr.msra.gmra.mxu1 %v263_v16 }
  0xf1   :  { %v181_v18 = vpop.f32.mrf.mxu0  ;;  %v189_v19 = vpop.f32.mrf.mxu1 }
  0xf2   :  { %v182_v20 = vadd.f32 %v204_v17, %v181_v18  ;;  %v190_v21 = vadd.f32 %v204_v17, %v189_v19 }
  0xf3   :  { %v183_v22 = vpop.f32.mrf.mxu0  ;;  %v191_v23 = vpop.f32.mrf.mxu1 }
  0xf4   :  { %196 = vst.msk [vmem:[%s383_s3] sm:$0xff] %vm140_vm0, %v182_v20  ;;  %198 = vst.msk [vmem:[%s383_s3 + $0x10] sm:$0xff] %vm140_vm0, %v190_v21 }
  0xf5   :  { %v184_v24 = vpop.f32.mrf.mxu0  ;;  %v192_v25 = vpop.f32.mrf.mxu1 }
  0xf6   :  { %v185_v26 = vadd.f32 %v204_v17, %v184_v24  ;;  %v193_v27 = vadd.f32 %v204_v17, %v192_v25 }
  0xf7   :  { %v186_v28 = vpop.f32.mrf.mxu0  ;;  %v194_v29 = vpop.f32.mrf.mxu1 }
  0xf8   :  { %197 = vst.msk [vmem:[%s383_s3 + $0x8] sm:$0xff] %vm140_vm0, %v185_v26  ;;  %199 = vst.msk [vmem:[%s383_s3 + $0x18] sm:$0xff] %vm140_vm0, %v193_v27 }

// kernel: reid_mamba_forward.3
= control target key start
LH: loop header
LB: loop body
LE: loop exit
PB: predicated region body
PF: predicated region fallthrough
CT: control target
= control target key end

     0   :  { %s3430_s25 = smov 0   ;;  %s3432_s26 = smov 0   ;;  %s4671_s0 = inlined_call_operand.vmem [shape: f32[2,20,64], index: 0, kind: input, shape index: {}]   ;;  %s4672_s1 = inlined_call_operand.vmem [shape: f32[4,1,64], index: 1, kind: input, shape index: {}]   ;;  %s4673_s2 = inlined_call_operand.vmem [shape: bf16[4,64,256], index: 2, kind: input, shape index: {}]   ;;  %s4674_s3 = inlined_call_operand.vmem [shape: f32[4,4,128], index: 3, kind: input, shape index: {}]   ;;  %s4675_s4 = inlined_call_operand.vmem [shape: f32[4,1,128], index: 4, kind: input, shape index: {}]   ;;  %s4676_s5 = inlined_call_operand.vmem [shape: f32[4,128,160], index: 5, kind: input, shape index: {}]   ;;  %s4677_s6 = inlined_call_operand.vmem [shape: f32[4,1,128], index: 6, kind: input, shape index: {}]   ;;  %s4678_s7 = inlined_call_operand.vmem [shape: f32[4,16,128], index: 7, kind: input, shape index: {}]   ;;  %s4679_s8 = inlined_call_operand.vmem [shape: f32[4,1,128], index: 8, kind: input, shape index: {}]   ;;  %s4680_s9 = inlined_call_operand.vmem [shape: bf16[4,128,64], index: 9, kind: input, shape index: {}]   ;;  %s4681_s10 = inlined_call_operand.vmem [shape: f32[1,64], index: 10, kind: input, shape index: {}]   ;;  %s4682_s11 = inlined_call_operand.vmem [shape: bf16[64,16], index: 11, kind: input, shape index: {}]   ;;  %s4683_s12 = inlined_call_operand.vmem [shape: f32[4,16], index: 12, kind: input, shape index: {}]   ;;  %s4684_s13 = inlined_call_operand.vmem [shape: f32[2,4,16], index: 13, kind: output, shape index: {}]  }
   0x1   :  { %4718 = sst [smem:[#allocation39_spill]] %s4671_s0  ;;  %s3434_s27 = smov 0  }
   0x2   :  { %4719 = sst [smem:[#allocation40_spill]] %s4672_s1  ;;  %s3436_s28 = smov 0  }
   0x3   :  { %4720 = sst [smem:[#allocation41_spill]] %s4673_s2  ;;  %s3438_s29 = smov 0  }
   0x4   :  { %4721 = sst [smem:[#allocation42_spill]] %s4681_s10 }
   0x5   :  { %4722 = sst [smem:[#allocation43_spill]] %s4682_s11 }
   0x6   :  { %4723 = sst [smem:[#allocation44_spill]] %s4683_s12 }
   0x7 LB: > { %4724 = sst [smem:[#allocation6_spill]] %s3325_s27  ;;  %s32_s30 = sadd.s32 1, %s3325_s27  ;;  %s3333_s29 = sphi %s3438_s29, %s23_s29   ;;  %s3329_s28 = sphi %s3436_s28, %s4804_s28   ;;  %s3325_s27 = sphi %s3434_s27, %s4803_s27   ;;  %s3321_s26 = sphi %s3432_s26, %s4802_s26   ;;  %s3317_s25 = sphi %s3430_s25, %s4801_s25  }
   0x8   : > { %4725 = sst [smem:[#allocation7_spill]] %s3329_s28  ;;  %s35_s14 = sadd.s32 1, %s3329_s28 }
   0x9   : > { %4726 = sst [smem:[#allocation8_spill]] %s3333_s29  ;;  %p33_p0 = scmp.ge.s32.totalorder %s32_s30, 4 }
   0xa   : > { %p2944_p1 = scmp.ge.s32.totalorder %s3333_s29, 1  ;;  %p480_p2 = scmp.lt.s32.totalorder %s3333_s29, 9 }
   0xb   : > { %s4806_s30 = smov (%p33_p0, %s32_s30), 0  ;;  %s4808_s14 = smov (!%p33_p0, %s35_s14), %s3329_s28 }
   0xc   : > { %4727 = sst [smem:[#allocation9_spill]] %s4806_s30  ;;  %p481_p3 = pnand %p2944_p1, %p480_p2 }
   0xd   : > { %p37_p4 = scmp.ge.s32.totalorder %s4808_s14, 2 }
   0xe   : > { %484 = sbr.rel (%p481_p3) target bundleno = 2259 (0x8d3), region = 72 }
   0xf   : > { %s4810_s14 = smov (%p37_p4, %s4808_s14), 0 }
  0x10   : > { %4728 = sst [smem:[#allocation10_spill]] %s4810_s14 }
  0x13   : > { %p559_p5 = scmp.lt.s32.totalorder %s3321_s26, 1  ;;  %p564_p6 = scmp.lt.s32.totalorder %s3317_s25, 3 }
  0x14   : > { %s4730_s0 = sld [smem:[#allocation39_spill]]  ;;  %p2956_p7 = scmp.ne.s32.totalorder %s3317_s25, 0 }
  0x15   : > { %s4812_s26 = smov (!%p559_p5, %s3321_s26), 1  ;;  %s4731_s2 = sld [smem:[#allocation41_spill]] }
  0x16   : > { %s3464_s15 = scalar_select %p564_p6, %s3317_s25, 3 }
  0x17   : > { %s3043_s16 = smul.u32 24, %s4812_s26  ;;  %s2955_s17 = sshll.u32 %s4812_s26, 2 }
  0x18   : > { %s2992_s21 = sshll.u32 %s3464_s15, 6  ;;  %s2948_s27 = sshll.u32 %s3464_s15, 2 }
  0x19   : > { %s3487_s18 = scalar_lea.vmem %s4674_s3, %s2948_s27  ;;  %s2993_s19 = sshll.u32 %s3464_s15, 8 }
  0x1a   : > { %s563_s24 = scalar_lea.vmem %s4730_s0, %s3043_s16  ;;  %s3493_s16 = scalar_lea.vmem %s4676_s5, %s2993_s19 }
  0x1b   : > { %s3477_s28 = scalar_lea.vmem %s4731_s2, %s2992_s21  ;;  %s586_s14 = scalar_lea.vmem %s4677_s6, %s3464_s15 }
  0x1c   : > { %s2994_s23 = sshll.u32 %s3464_s15, 4  ;;  %s594_s12 = scalar_lea.vmem %s4679_s8, %s3464_s15 }
  0x1d   : > { %s3507_s11 = scalar_lea.vmem %s4678_s7, %s2994_s23  ;;  %s3512_s1 = scalar_lea.vmem %s4680_s9, %s2992_s21 }
  0x1e   : > { %s3517_s22 = scalar_lea.vmem %s4684_s13, %s2955_s17  ;;  %608 = sbr.rel (%p2956_p7) target bundleno = 39 (0x27), region = 76 }
  0x23   : > { %v609_v0 = vld [vmem:[%s563_s24] sm:$0xff]  ;;  %vm612_vm0 = vcmask 523264   ;;  %v610_v1 = vld [vmem:[%s563_s24 + $0x8] sm:$0xff]  ;;  %v611_v2 = vld [vmem:[%s563_s24 + $0x10] sm:$0xf]  ;;  %vm615_vm1 = vcmask 519168  }
  0x24   : > { %613 = vst.msk [vmem:[#allocation2] sm:$0xff] %vm612_vm0, %v609_v0  ;;  %614 = vst.msk [vmem:[#allocation2 + $0x8] sm:$0xff] %vm612_vm0, %v610_v1  ;;  %v3335_v3 = vmov 0.0  }
  0x25   : > { %616 = vst.msk [vmem:[#allocation2 + $0x10] sm:$0xf] %vm615_vm1, %v611_v2  ;;  %619 = vst.msk [vmem:[#allocation3 + $0x10] sm:$0xf] %vm615_vm1, %v3335_v3 }
  0x26   : > { %617 = vst.msk [vmem:[#allocation3] sm:$0xff] %vm612_vm0, %v3335_v3  ;;  %618 = vst.msk [vmem:[#allocation3 + $0x8] sm:$0xff] %vm612_vm0, %v3335_v3 }
  0x27 PF: > { %vm4716_vm2 = vcmask 523264   ;;  %vm4717_vm3 = vcmask 519168   ;;  %v3141_v19 = vld [vmem:[%s3477_s28 + $0x34] ss:$8 sps:$4 sm:$0xff]   ;;  %v3143_v20 = vld [vmem:[%s3477_s28 + $0x30] ss:$8 sps:$4 sm:$0xff]   ;;  %s4740_s24 = scalar_lea.vmem %s4675_s4, %s3464_s15 }
  0x28   : > { %v3144_v21 = vld [vmem:[%s3477_s28 + $0x24] ss:$8 sps:$4 sm:$0xff]   ;;  %733 = vmatprep.subr.bf16.mxu0 %v3141_v19  ;;  %v3146_v22 = vld [vmem:[%s3477_s28 + $0x20] ss:$8 sps:$4 sm:$0xff]   ;;  %v3336_v23 = vmov 0   ;;  %s4735_s10 = sld [smem:[#allocation40_spill]] }
  0x29   : > { %734 = vmatpush1.bf16.msra.mxu0 %v3143_v20  ;;  %757 = vmatprep.mubr.bf16.mxu0 %v3336_v23  ;;  %v3147_v24 = vld [vmem:[%s3477_s28 + $0x14] ss:$8 sps:$4 sm:$0xff]   ;;  %v3149_v25 = vld [vmem:[%s3477_s28 + $0x10] ss:$8 sps:$4 sm:$0xff]   ;;  %v3150_v26 = vld [vmem:[%s3477_s28 + $0x4] ss:$8 sps:$4 sm:$0xff]  }
  0x2a   : > { %735 = vmatprep.subr.bf16.mxu0 %v3144_v21  ;;  %3110 = vset.pattern.permute.xlu0 %v3336_v23  ;;  %v3152_v27 = vld [vmem:[%s3477_s28] ss:$8 sps:$4 sm:$0xff]   ;;  %v909_v49 = vld [vmem:[%s3493_s16 + $0xf8] sm:$0xff]  ;;  %v908_v50 = vld [vmem:[%s3493_s16 + $0xf0] sm:$0xff]  ;;  %v778_v21 = vlaneseq  ;;  %vm797_vm4 = vcmask 1040384   ;;  %vm817_vm5 = vcmask 1041408  }
  0x2b   : > { %v620_v4 = vld [vmem:[#allocation2] sm:$0xff]  ;;  %v621_v6 = vld [vmem:[#allocation2 + $0x8] sm:$0xff]  ;;  %3109 = vset.pattern.permute.xlu1 %v3336_v23  ;;  %910 = vmatprep.subr.mxu1 %v909_v49  ;;  %v905_v53 = vld [vmem:[%s3493_s16 + $0xd8] sm:$0xff]  ;;  %vm837_vm6 = vcmask 1042432   ;;  %vm1083_vm9 = vcmask 261120   ;;  %vm1914_vm12 = vcmask 7168  }
  0x2c   : > { %v622_v9 = vld [vmem:[#allocation2 + $0x10] sm:$0xf]  ;;  %v625_v10 = vld [vmem:[#allocation3 + $0x10] sm:$0xf]  ;;  %911 = vmatpush1.msra.mxu1 %v908_v50  ;;  %v906_v52 = vld [vmem:[%s3493_s16 + $0xe0] sm:$0xff]  ;;  %vm1917_vm13 = vcmask 15360  }
  0x2d   : > { %v623_v5 = vld [vmem:[#allocation3] sm:$0xff]  ;;  %v624_v8 = vld [vmem:[#allocation3 + $0x8] sm:$0xff]  ;;  %v3524_v12 = vadd.f32 %v625_v10, %v622_v9  ;;  %736 = vmatpush1.bf16.msra.mxu0 %v3146_v22  ;;  %v907_v51 = vld [vmem:[%s3493_s16 + $0xe8] sm:$0xff]  ;;  %v3593_v22 = vshrl.u32 %v778_v21, 7  ;;  %vm1920_vm14 = vcmask 23552   ;;  %vm1923_vm15 = vcmask 31744  }
  0x2e   : > { %v3520_v7 = vadd.f32 %v623_v5, %v620_v4  ;;  %v3522_v11 = vadd.f32 %v624_v8, %v621_v6  ;;  %737 = vmatprep.subr.bf16.mxu0 %v3147_v24  ;;  %s4736_s28 = scalar_lea.vmem %s4735_s10, %s3464_s15  ;;  %912 = vmatprep.subr.mxu1 %v907_v51  ;;  %v904_v54 = vld [vmem:[%s3493_s16 + $0xd0] sm:$0xff]  ;;  %v903_v55 = vld [vmem:[%s3493_s16 + $0xc8] sm:$0xff]  ;;  %v902_v56 = vld [vmem:[%s3493_s16 + $0xc0] sm:$0xff]  ;;  %vm1926_vm0 = vcmask 39936   ;;  %vm1929_vm1 = vcmask 48128   ;;  %s3338_s30 = smov 16  }
  0x2f   : > { %4734 = vst [vmem:[#allocation13_spill] sm:$0xff] %v3524_v12  ;;  %v636_v15 = vmul.f32 %v3524_v12, %v3524_v12  ;;  %633 = vst.msk [vmem:[#allocation3 + $0x10] sm:$0xf] %vm4717_vm3, %v3524_v12  ;;  %v2957_v41 = vld [vmem:[%s4736_s28] ss:$0 sm:$0xff]  ;;  %913 = vmatpush1.msra.mxu1 %v906_v52  ;;  %v901_v57 = vld [vmem:[%s3493_s16 + $0xb8] sm:$0xff] }
  0x30   : > { %4732 = vst [vmem:[#allocation11_spill] sm:$0xff] %v3520_v7  ;;  %4733 = vst [vmem:[#allocation12_spill] sm:$0xff] %v3522_v11  ;;  %v634_v13 = vmul.f32 %v3520_v7, %v3520_v7  ;;  %v635_v14 = vmul.f32 %v3522_v11, %v3522_v11  ;;  %914 = vmatprep.subr.mxu1 %v905_v53  ;;  %v900_v58 = vld [vmem:[%s3493_s16 + $0xb0] sm:$0xff]  ;;  %v899_v59 = vld [vmem:[%s3493_s16 + $0xa8] sm:$0xff]  ;;  %p2983_p8 = scmp.ne.s32.totalorder %s3317_s25, 3 }
  0x31   : > { %630 = vst.msk [vmem:[#allocation3] sm:$0xff] %vm4716_vm2, %v3520_v7  ;;  %631 = vst.msk [vmem:[#allocation3 + $0x8] sm:$0xff] %vm4716_vm2, %v3522_v11  ;;  %v643_v18 = vsel %vm4717_vm3, %v636_v15, 0.0  ;;  %738 = vmatpush1.bf16.msra.mxu0 %v3149_v25  ;;  %915 = vmatpush1.msra.mxu1 %v904_v54  ;;  %v898_v60 = vld [vmem:[%s3493_s16 + $0xa0] sm:$0xff]  ;;  %v897_v61 = vld [vmem:[%s3493_s16 + $0x98] sm:$0xff]  ;;  %v3600_v25 = vsub.s32 2, %v3593_v22 }
  0x32   : > { %v637_v16 = vsel %vm4716_vm2, %v634_v13, 0.0  ;;  %v640_v17 = vsel %vm4716_vm2, %v635_v14, 0.0  ;;  %644 = vadd.xlane.f32.xlu1 %v643_v18  ;;  %739 = vmatprep.subr.bf16.mxu0 %v3150_v26  ;;  %v896_v62 = vld [vmem:[%s3493_s16 + $0x90] sm:$0xff]  ;;  %v895_v63 = vld [vmem:[%s3493_s16 + $0x88] sm:$0xff]  ;;  %v894_v0 = vld [vmem:[%s3493_s16 + $0x80] sm:$0xff]  ;;  %vm1950_vm3 = vcmask 105472  }
  0x33   : > { %638 = vadd.xlane.f32.xlu0 %v637_v16  ;;  %916 = vmatprep.subr.mxu1 %v903_v55  ;;  %v893_v1 = vld [vmem:[%s3493_s16 + $0x78] sm:$0xff]  ;;  %v892_v2 = vld [vmem:[%s3493_s16 + $0x70] sm:$0xff]  ;;  %v891_v3 = vld [vmem:[%s3493_s16 + $0x68] sm:$0xff]  ;;  %4738 = vst [vmem:[#allocation15_spill] sm:$0xff] %v3600_v25  ;;  %s4797_s2 = sld [smem:[#allocation42_spill]] (!%p2983_p8) }
  0x34   : > { %917 = vmatpush1.msra.mxu1 %v902_v56  ;;  %v890_v4 = vld [vmem:[%s3493_s16 + $0x60] sm:$0xff]  ;;  %v889_v5 = vld [vmem:[%s3493_s16 + $0x58] sm:$0xff]  ;;  %v888_v6 = vld [vmem:[%s3493_s16 + $0x50] sm:$0xff]  ;;  %s4799_s17 = sld [smem:[#allocation44_spill]] (!%p2983_p8) }
  0x35   : > { %740 = vmatpush1.bf16.msra.mxu0 %v3152_v27  ;;  %918 = vmatprep.subr.mxu1 %v901_v57  ;;  %v887_v8 = vld [vmem:[%s3493_s16 + $0x48] sm:$0xff]  ;;  %v886_v9 = vld [vmem:[%s3493_s16 + $0x40] sm:$0xff]  ;;  %v885_v10 = vld [vmem:[%s3493_s16 + $0x38] sm:$0xff]  ;;  %v3604_v27 = vsub.s32 1, %v3593_v22 }
  0x36   : > { %919 = vmatpush1.msra.mxu1 %v900_v58  ;;  %v884_v13 = vld [vmem:[%s3493_s16 + $0x30] sm:$0xff]  ;;  %v883_v14 = vld [vmem:[%s3493_s16 + $0x28] sm:$0xff]  ;;  %v882_v15 = vld [vmem:[%s3493_s16 + $0x20] sm:$0xff] }
  0x37   : > { %641 = vadd.xlane.f32.xlu0 %v640_v17  ;;  %920 = vmatprep.subr.mxu1 %v899_v59  ;;  %v881_v16 = vld [vmem:[%s3493_s16 + $0x18] sm:$0xff]  ;;  %v3337_v17 = vmov 0.0   ;;  %v880_v18 = vld [vmem:[%s3493_s16 + $0x10] sm:$0xff]  ;;  %v879_v19 = vld [vmem:[%s3493_s16 + $0x8] sm:$0xff]  ;;  %4739 = vst [vmem:[#allocation16_spill] sm:$0xff] %v3604_v27 }
  0x38   : > { %921 = vmatpush1.msra.mxu1 %v898_v60  ;;  %974 = vmatprep.mubr.f32.mxu1 %v3337_v17  ;;  %v878_v20 = vld [vmem:[%s3493_s16] sm:$0xff] }
  0x39   : > { %922 = vmatprep.subr.mxu1 %v897_v61  ;;  %v776_v24 = vld [vmem:[%s3487_s18] sm:$0xf] }
  0x3a   : > { %923 = vmatpush1.msra.mxu1 %v896_v62 }
  0x3b   : > { %924 = vmatprep.subr.mxu1 %v895_v63 }
  0x3c   : > { %925 = vmatpush1.msra.mxu1 %v894_v0 }
  0x3d   : > { %926 = vmatprep.subr.mxu1 %v893_v1 }
  0x3e   : > { %927 = vmatpush1.msra.mxu1 %v892_v2 }
  0x3f   : > { %928 = vmatprep.subr.mxu1 %v891_v3 }
  0x40   : > { %929 = vmatpush1.msra.mxu1 %v890_v4 }
  0x41   : > { %930 = vmatprep.subr.mxu1 %v889_v5 }
  0x42   : > { %931 = vmatpush1.msra.mxu1 %v888_v6 }
  0x43   : > { %932 = vmatprep.subr.mxu1 %v887_v8 }
  0x44   : > { %933 = vmatpush1.msra.mxu1 %v886_v9 }
  0x45   : > { %934 = vmatprep.subr.mxu1 %v885_v10 }
  0x46   : > { %935 = vmatpush1.msra.mxu1 %v884_v13 }
  0x47   : > { %936 = vmatprep.subr.mxu1 %v883_v14 }
  0x48   : > { %937 = vmatpush1.msra.mxu1 %v882_v15 }
  0x49   : > { %938 = vmatprep.subr.mxu1 %v881_v16 }
  0x4a   : > { %939 = vmatpush1.msra.mxu1 %v880_v18 }
  0x4b   : > { %940 = vmatprep.subr.mxu1 %v879_v19 }
  0x4c   : > { %941 = vmatpush1.msra.mxu1 %v878_v20 }
  0xbb   : > { %v645_v30 = vpop.xlane.xlu1 %644 }
  0xbc   : > { %v639_v28 = vpop.xlane.xlu0 %638  ;;  %v649_v31 = vmul.f32 0.015625, %v645_v30  ;;  %v810_v30 = vrot.slane %v776_v24, %v3600_v25 }
  0xbd   : > { %v647_v29 = vmul.f32 0.015625, %v639_v28 }
  0xbe   : > { %v652_v34 = vadd.f32 1e-05, %v649_v31  ;;  %v3613_v31 = vsub.s32 0, %v3593_v22 }
  0xbf   : > { %v650_v32 = vadd.f32 1e-05, %v647_v29  ;;  %v2968_v29 = vld [vmem:[%s4740_s24] ss:$0 sm:$0xff] }
  0xc0   : > { %v642_v33 = vpop.xlane.xlu0 %641 }
  0xc1   : > { %3161 = vrsqrt.f32 %v650_v32  ;;  %v648_v35 = vmul.f32 0.015625, %v642_v33 }
  0xc2   : > { %3163 = vrsqrt.f32 %v652_v34 }
  0xc3   : > { %v651_v36 = vadd.f32 1e-05, %v648_v35 }
  0xc5   : > { %3165 = vrsqrt.f32 %v651_v36  ;;  %v830_v36 = vrot.slane %v776_v24, %v3604_v27 }
  0xce   : > { %v3162_v37 = vpop.eup %3161 }
  0xcf   : > { %v3164_v38 = vpop.eup %3163  ;;  %v656_v39 = vmul.f32 %v3162_v37, %v3520_v7 }
  0xd0   : > { %v658_v45 = vmul.f32 %v3164_v38, %v3524_v12 }
  0xd1   : > { %v666_v43 = vmul.f32 %v2957_v41, %v656_v39 }
  0xd2   : > { %v3166_v40 = vpop.eup %3165  ;;  %v668_v47 = vmul.f32 %v2957_v41, %v658_v45 }
  0xd3   : > { %v657_v42 = vmul.f32 %v3166_v40, %v3522_v11 }
  0xd4   : > { %v670_v48 = vpack.c.bf16 %v668_v47, %v668_v47 }
  0xd5   : > { %v667_v44 = vmul.f32 %v2957_v41, %v657_v42 }
  0xd7   : > { %v669_v46 = vpack.c.bf16 %v667_v44, %v666_v43  ;;  %v850_v43 = vrot.slane %v776_v24, %v3613_v31 }
  0xd9   : > { %2966 = vmatmul.mubr.msk.bf16.vlgmr.msra.gmra.mxu0 %vm4716_vm2, %v669_v46 }
  0xda   : > { %767 = vmatprep.mubr.bf16.mxu0 %v3336_v23  ;;  %v3596_v23 = vsub.s32 3, %v3593_v22 }
  0xdc   : > { %4737 = vst [vmem:[#allocation14_spill] sm:$0xff] %v3596_v23  ;;  %v781_v26 = vrot.slane %v776_v24, %v3596_v23 }
  0xe1   : > { %2967 = vmatmul.mubr.msk.bf16.gmra.mxu0 %vm4716_vm2, %v670_v48  ;;  %vm1947_vm2 = vcmask 97280  }
 0x199   : > { %v759_v28 = vpop.f32.mrf.mxu0 }
 0x19a   : > { %v782_v32 = vmul.f32 %v781_v26, %v759_v28  ;;  %v798_v33 = vrot.slane %v759_v28, 7  ;;  %v818_v34 = vrot.slane %v759_v28, 6  ;;  %v838_v35 = vrot.slane %v759_v28, 5 }
 0x19b   : > { %v3616_v37 = vpop.f32.mrf.mxu0 }
 0x19c   : > { %4741 = vst [vmem:[#allocation17_spill] sm:$0xff] %v3616_v37  ;;  %v791_v38 = vadd.f32 %v2968_v29, %v782_v32  ;;  %v806_v39 = vsel %vm797_vm4, 0.0, %v798_v33  ;;  %v826_v40 = vsel %vm817_vm5, 0.0, %v818_v34  ;;  %v846_v44 = vsel %vm837_vm6, 0.0, %v838_v35 }
 0x19d   : > { %v811_v41 = vmul.f32 %v810_v30, %v806_v39  ;;  %v763_v42 = vpop.f32.mrf.mxu0  ;;  %v831_v49 = vmul.f32 %v830_v36, %v826_v40  ;;  %v851_v58 = vmul.f32 %v850_v43, %v846_v44 }
 0x19e   : > { %v783_v45 = vmul.f32 %v781_v26, %v763_v42  ;;  %v799_v46 = vrot.slane %v763_v42, 7  ;;  %v819_v47 = vrot.slane %v763_v42, 6  ;;  %v839_v50 = vrot.slane %v763_v42, 5 }
 0x19f   : > { %v814_v48 = vadd.f32 %v811_v41, %v791_v38  ;;  %v3622_v51 = vpop.f32.mrf.mxu0 }
 0x1a0   : > { %4742 = vst [vmem:[#allocation18_spill] sm:$0xff] %v3622_v51  ;;  %v792_v52 = vadd.f32 %v2968_v29, %v783_v45  ;;  %v800_v53 = vsel %vm797_vm4, %v798_v33, %v799_v46  ;;  %v820_v54 = vsel %vm817_vm5, %v818_v34, %v819_v47  ;;  %v840_v2 = vsel %vm837_vm6, %v838_v35, %v839_v50 }
 0x1a1   : > { %v812_v55 = vmul.f32 %v810_v30, %v800_v53  ;;  %v769_v56 = vpop.f32.mrf.mxu0  ;;  %v834_v57 = vadd.f32 %v831_v49, %v814_v48  ;;  %v832_v62 = vmul.f32 %v830_v36, %v820_v54  ;;  %v852_v13 = vmul.f32 %v850_v43, %v840_v2 }
 0x1a2   : > { %v784_v59 = vmul.f32 %v781_v26, %v769_v56  ;;  %v801_v60 = vrot.slane %v769_v56, 7  ;;  %v821_v61 = vrot.slane %v769_v56, 6  ;;  %v841_v0 = vrot.slane %v769_v56, 5 }
 0x1a3   : > { %v815_v63 = vadd.f32 %v812_v55, %v792_v52  ;;  %v854_v1 = vadd.f32 %v851_v58, %v834_v57  ;;  %v3627_v3 = vpop.f32.mrf.mxu0  ;;  %v1059_v48 = vadd.s32 16, %v3593_v22  ;;  %v1060_v49 = vadd.s32 24, %v3593_v22 }
 0x1a4   : > { %4743 = vst [vmem:[#allocation19_spill] sm:$0xff] %v3627_v3  ;;  %v793_v4 = vadd.f32 %v2968_v29, %v784_v59  ;;  %v802_v5 = vsel %vm797_vm4, %v799_v46, %v801_v60  ;;  %v822_v6 = vsel %vm817_vm5, %v819_v47, %v821_v61  ;;  %v842_v15 = vsel %vm837_vm6, %v839_v50, %v841_v0 }
 0x1a5   : > { %v813_v8 = vmul.f32 %v810_v30, %v802_v5  ;;  %v857_v9 = vsub.f32 0.0, %v854_v1  ;;  %v835_v10 = vadd.f32 %v832_v62, %v815_v63  ;;  %v773_v14 = vpop.f32.mrf.mxu0  ;;  %v833_v20 = vmul.f32 %v830_v36, %v822_v6 }
 0x1a6   : > { %v853_v29 = vmul.f32 %v850_v43, %v842_v15  ;;  %v1062_v50 = vand.u32 127, %v778_v21  ;;  %v1058_v2 = vadd.s32 8, %v3593_v22  ;;  %v3682_v6 = vsub.s32 4, %v3593_v22 }
 0x1a7   : > { %v816_v16 = vadd.f32 %v813_v8, %v793_v4  ;;  %v860_v18 = vmul.f32 1.442695, %v857_v9  ;;  %v855_v19 = vadd.f32 %v852_v13, %v835_v10  ;;  %v774_v24 = vpop.f32.mrf.mxu0  ;;  %v3679_v4 = vld [vmem:[%s586_s14] ss:$0 sm:$0xff]  ;;  %v3691_v10 = vsub.s32 5, %v3593_v22 }
 0x1a8   : > { %vm1065_vm7 = vcmp.eq.s32.totalorder %v1059_v48, %v1062_v50  ;;  %vm1066_vm8 = vcmp.eq.s32.totalorder %v1060_v49, %v1062_v50  ;;  %4748 = vst [vmem:[#allocation24_spill] sm:$0xff] %v3682_v6  ;;  %vm1064_vm10 = vcmp.eq.s32.totalorder %v1058_v2, %v1062_v50  ;;  %v3707_v24 = vsub.s32 7, %v3593_v22 }
 0x1a9   : > { %3167 = vpow2.f32 %v860_v18  ;;  %v858_v26 = vsub.f32 0.0, %v855_v19  ;;  %v836_v28 = vadd.f32 %v833_v20, %v816_v16  ;;  %v3649_v53 = vsel %vm1065_vm7, 1.0, %v3337_v17  ;;  %4749 = vst [vmem:[#allocation25_spill] sm:$0xff] %v3691_v10 }
 0x1aa   : > { %v3652_v54 = vsel %vm1066_vm8, 1.0, %v3337_v17  ;;  %4751 = vst [vmem:[#allocation27_spill] sm:$0xff] %v3707_v24  ;;  %vm1063_vm11 = vcmp.eq.s32.totalorder %v3593_v22, %v1062_v50  ;;  %vm1932_vm7 = vcmask 56320   ;;  %vm1935_vm8 = vcmask 64512  }
 0x1ab   : > { %v862_v32 = vmul.f32 1.442695, %v858_v26  ;;  %v856_v33 = vadd.f32 %v853_v29, %v836_v28 }
 0x1ad   : > { %3169 = vpow2.f32 %v862_v32  ;;  %v859_v34 = vsub.f32 0.0, %v856_v33 }
 0x1af   : > { %v864_v30 = vmul.f32 1.442695, %v859_v34  ;;  %v3719_v34 = vsel %vm1064_vm10, 1.0, %v3337_v17  ;;  %vm1941_vm10 = vcmask 80896  }
 0x1b1   : > { %3171 = vpow2.f32 %v864_v30 }
 0x1b6   : > { %v3168_v35 = vpop.eup %3167 }
 0x1b7   : > { %v866_v38 = vadd.f32 1.0, %v3168_v35 }
 0x1b9   : > { %3173 = vrcp.f32 %v866_v38 }
 0x1ba   : > { %v3170_v39 = vpop.eup %3169 }
 0x1bb   : > { %v867_v40 = vadd.f32 1.0, %v3170_v39  ;;  %v3726_v39 = vsel %vm1063_vm11, 1.0, %v3337_v17  ;;  %vm1944_vm11 = vcmask 89088  }
 0x1bd   : > { %3175 = vrcp.f32 %v867_v40 }
 0x1be   : > { %v3172_v41 = vpop.eup %3171 }
 0x1bf   : > { %v868_v42 = vadd.f32 1.0, %v3172_v41 }
 0x1c1   : > { %3177 = vrcp.f32 %v868_v42 }
 0x1c6   : > { %v3174_v36 = vpop.eup %3173 }
 0x1c7   : > { %v3632_v44 = vmul.f32 %v3174_v36, %v854_v1 }
 0x1c9   : > { %4744 = vst [vmem:[#allocation20_spill] sm:$0xff] %v3632_v44  ;;  %975 = vmatmul.mubr.f32.vlgmr.msra.gmra.mxu1 %v3632_v44 }
 0x1ca   : > { %v3176_v43 = vpop.eup %3175  ;;  %980 = vmatprep.mubr.f32.mxu1 %v3337_v17 }
 0x1cb   : > { %v3636_v45 = vmul.f32 %v3176_v43, %v855_v19  ;;  %v3701_v19 = vsub.s32 6, %v3593_v22 }
 0x1cd   : > { %4745 = vst [vmem:[#allocation21_spill] sm:$0xff] %v3636_v45  ;;  %981 = vmatmul.mubr.f32.gmra.mxu1 %v3636_v45  ;;  %4750 = vst [vmem:[#allocation26_spill] sm:$0xff] %v3701_v19 }
 0x1ce   : > { %986 = vmatprep.mubr.f32.mxu1 %v3337_v17  ;;  %v3178_v46 = vpop.eup %3177 }
 0x1cf   : > { %v3640_v47 = vmul.f32 %v3178_v46, %v856_v33 }
 0x1d1   : > { %4746 = vst [vmem:[#allocation22_spill] sm:$0xff] %v3640_v47  ;;  %987 = vmatmul.mubr.f32.gmra.mxu1 %v3640_v47 }
 0x289   : > { %v3646_v52 = vpop.f32.mrf.mxu1 }
 0x28b   : > { %v978_v55 = vpop.f32.mrf.mxu1 }
 0x28c   : > { %v1078_v56 = vrot.slane %v978_v55, %v3613_v31  ;;  %v3656_v57 = vrot.slane %v978_v55, %v3604_v27  ;;  %v3668_v63 = vrot.slane %v978_v55, %v3600_v25  ;;  %v3688_v9 = vrot.slane %v978_v55, %v3596_v23 }
 0x28d   : > { %v3658_v58 = vpop.f32.mrf.mxu1  ;;  %v3704_v20 = vrot.slane %v978_v55, %v3682_v6  ;;  %v3713_v29 = vrot.slane %v978_v55, %v3691_v10  ;;  %v3723_v38 = vrot.slane %v978_v55, %v3701_v19  ;;  %v3733_v42 = vrot.slane %v978_v55, %v3707_v24 }
 0x28e   : > { %4747 = vst [vmem:[#allocation23_spill] sm:$0xff] %v3658_v58  ;;  %v1082_v21 = vmul.f32 %v3652_v54, %v1078_v56  ;;  %v1081_v59 = vmul.f32 %v3649_v53, %v1078_v56  ;;  %v1123_v62 = vmul.f32 %v3652_v54, %v3656_v57  ;;  %v1122_v1 = vmul.f32 %v3649_v53, %v3656_v57 }
 0x28f   : > { %v3662_v60 = vpop.f32.mrf.mxu1  ;;  %v1165_v14 = vmul.f32 %v3652_v54, %v3668_v63  ;;  %v1164_v18 = vmul.f32 %v3649_v53, %v3668_v63  ;;  %v1207_v28 = vmul.f32 %v3652_v54, %v3688_v9  ;;  %v1206_v33 = vmul.f32 %v3649_v53, %v3688_v9 }
 0x290   : > { %v1093_v61 = vsel %vm1083_vm9, %v1082_v21, 0.0  ;;  %v1090_v0 = vsel %vm1083_vm9, %v1081_v59, 0.0  ;;  %v1133_v13 = vsel %vm1083_vm9, %v1123_v62, 0.0  ;;  %v1130_v16 = vsel %vm1083_vm9, %v1122_v1, 0.0 }
 0x291   : > { %1094 = vadd.xlane.f32.xlu0 %v1093_v61  ;;  %1091 = vadd.xlane.f32.xlu1 %v1090_v0  ;;  %v988_v5 = vpop.f32.mrf.mxu1  ;;  %v1175_v32 = vsel %vm1083_vm9, %v1165_v14, 0.0  ;;  %v1172_v22 = vsel %vm1083_vm9, %v1164_v18, 0.0  ;;  %v1249_v40 = vmul.f32 %v3652_v54, %v3704_v20  ;;  %v1248_v41 = vmul.f32 %v3649_v53, %v3704_v20 }
 0x292   : > { %v3685_v8 = vadd.f32 %v3679_v4, %v988_v5  ;;  %v1217_v36 = vsel %vm1083_vm9, %v1207_v28, 0.0  ;;  %v1291_v43 = vmul.f32 %v3652_v54, %v3713_v29  ;;  %v1290_v17 = vmul.f32 %v3649_v53, %v3713_v29 }
 0x293   : > { %v990_v35 = vpop.f32.mrf.mxu1  ;;  %v1214_v49 = vsel %vm1083_vm9, %v1206_v33, 0.0  ;;  %v1080_v50 = vmul.f32 %v3719_v34, %v1078_v56  ;;  %v1333_v55 = vmul.f32 %v3652_v54, %v3723_v38  ;;  %v1332_v21 = vmul.f32 %v3649_v53, %v3723_v38 }
 0x294   : > { %v1008_v15 = vand.u32 2147483647, %v3685_v8  ;;  %v3742_v48 = vrot.slane %v990_v35, %v3613_v31  ;;  %v1079_v59 = vmul.f32 %v3726_v39, %v1078_v56  ;;  %v1121_v61 = vmul.f32 %v3719_v34, %v3656_v57 }
 0x295   : > { %1134 = vadd.xlane.f32.xlu0 %v1133_v13  ;;  %1131 = vadd.xlane.f32.xlu1 %v1130_v16  ;;  %v3754_v62 = vrot.slane %v990_v35, %v3604_v27  ;;  %v1375_v0 = vmul.f32 %v3652_v54, %v3733_v42  ;;  %v1374_v1 = vmul.f32 %v3649_v53, %v3733_v42  ;;  %v1259_v13 = vsel %vm1083_vm9, %v1249_v40, 0.0 }
 0x296   : > { %v1011_v26 = vsub.f32 0.0, %v1008_v15  ;;  %v1120_v2 = vmul.f32 %v3726_v39, %v3656_v57  ;;  %v3763_v5 = vrot.slane %v990_v35, %v3600_v25  ;;  %v3766_v56 = vrot.slane %v990_v35, %v3596_v23 }
 0x297   : > { %v1256_v14 = vsel %vm1083_vm9, %v1248_v41, 0.0  ;;  %v1301_v15 = vsel %vm1083_vm9, %v1291_v43, 0.0  ;;  %v1298_v16 = vsel %vm1083_vm9, %v1290_v17, 0.0  ;;  %v1087_v18 = vsel %vm1083_vm9, %v1080_v50, 0.0 }
 0x298   : > { %v1016_v30 = vmul.f32 1.442695, %v1011_v26  ;;  %v1163_v26 = vmul.f32 %v3719_v34, %v3668_v63  ;;  %v1343_v57 = vsel %vm1083_vm9, %v1333_v55, 0.0  ;;  %v1340_v28 = vsel %vm1083_vm9, %v1332_v21, 0.0 }
 0x299   : > { %1176 = vadd.xlane.f32.xlu0 %v1175_v32  ;;  %1173 = vadd.xlane.f32.xlu1 %v1172_v22  ;;  %v1084_v32 = vsel %vm1083_vm9, %v1079_v59, 0.0  ;;  %v3779_v33 = vsel %vm1083_vm9, %v1121_v61, 0.0  ;;  %v3785_v35 = vsel %vm1083_vm9, %v1374_v1, 0.0  ;;  %v3788_v22 = vsel %vm1083_vm9, %v1120_v2, 0.0 }
 0x29a   : > { %3179 = vpow2.f32 %v1016_v30  ;;  %v3782_v30 = vsel %vm1083_vm9, %v1375_v0, 0.0  ;;  %v1413_v40 = vrot.slane %v3662_v60, %v3613_v31  ;;  %v1162_v41 = vmul.f32 %v3726_v39, %v3668_v63 }
 0x29b   : > { %v1455_v43 = vrot.slane %v3662_v60, %v3604_v27  ;;  %v1497_v17 = vrot.slane %v3662_v60, %v3600_v25  ;;  %v3807_v50 = vmul.f32 %v3726_v39, %v3688_v9  ;;  %v3811_v63 = vmul.f32 %v3719_v34, %v3704_v20 }
 0x29c   : > { %v1417_v55 = vmul.f32 %v3652_v54, %v1413_v40  ;;  %v1416_v21 = vmul.f32 %v3649_v53, %v1413_v40 }
 0x29d   : > { %1218 = vadd.xlane.f32.xlu0 %v1217_v36  ;;  %1215 = vadd.xlane.f32.xlu1 %v1214_v49  ;;  %v3796_v36 = vmul.f32 %v3719_v34, %v3688_v9  ;;  %v3803_v49 = vsel %vm1083_vm9, %v1163_v26, 0.0  ;;  %v1459_v59 = vmul.f32 %v3652_v54, %v1455_v43  ;;  %v1458_v61 = vmul.f32 %v3649_v53, %v1455_v43 }
 0x29e   : > { %v1501_v0 = vmul.f32 %v3652_v54, %v1497_v17  ;;  %v3820_v9 = vmul.f32 %v3726_v39, %v3704_v20  ;;  %v3823_v1 = vsel %vm1083_vm9, %v1417_v55, 0.0  ;;  %v1500_v2 = vmul.f32 %v3649_v53, %v1497_v17 }
 0x2a0   : > { %v3838_v20 = vsel %vm1083_vm9, %v1501_v0, 0.0  ;;  %v3841_v55 = vsel %vm1083_vm9, %v1500_v2, 0.0  ;;  %v3855_v0 = vrot.slane %v3662_v60, %v3707_v24 }
 0x2a1   : > { %1260 = vadd.xlane.f32.xlu0 %v1259_v13  ;;  %1257 = vadd.xlane.f32.xlu1 %v1256_v14  ;;  %v1539_v13 = vrot.slane %v3662_v60, %v3596_v23  ;;  %v3829_v14 = vsel %vm1083_vm9, %v1416_v21, 0.0  ;;  %v1581_v21 = vrot.slane %v3662_v60, %v3682_v6  ;;  %v1498_v6 = vmul.f32 %v3726_v39, %v1497_v17 }
 0x2a2   : > { %v1711_v37 = vmul.f32 %v3652_v54, %v3855_v0 }
 0x2a3   : > { %v1543_v46 = vmul.f32 %v3652_v54, %v1539_v13  ;;  %v1542_v12 = vmul.f32 %v3649_v53, %v1539_v13 }
 0x2a4   : > { %v3894_v24 = vsel %vm1083_vm9, %v1711_v37, 0.0 }
 0x2a5   : > { %1302 = vadd.xlane.f32.xlu0 %v1301_v15  ;;  %1299 = vadd.xlane.f32.xlu1 %v1298_v16  ;;  %v3832_v15 = vsel %vm1083_vm9, %v1459_v59, 0.0  ;;  %v3835_v16 = vsel %vm1083_vm9, %v1458_v61, 0.0  ;;  %v1623_v59 = vrot.slane %v3662_v60, %v3691_v10  ;;  %v3851_v61 = vrot.slane %v3662_v60, %v3701_v19 }
 0x2a6   : > { %v3858_v2 = vsel %vm1083_vm9, %v1543_v46, 0.0  ;;  %v3861_v7 = vsel %vm1083_vm9, %v1542_v12, 0.0  ;;  %v1456_v19 = vmul.f32 %v3726_v39, %v1455_v43  ;;  %v1499_v10 = vmul.f32 %v3719_v34, %v1497_v17 }
 0x2a7   : > { %v3180_v26 = vpop.eup %3179  ;;  %v1627_v3 = vmul.f32 %v3652_v54, %v1623_v59  ;;  %v1626_v51 = vmul.f32 %v3649_v53, %v1623_v59  ;;  %v1669_v60 = vmul.f32 %v3652_v54, %v3851_v61  ;;  %v1668_v12 = vmul.f32 %v3649_v53, %v3851_v61 }
 0x2a8   : > { %v1020_v11 = vadd.f32 1.0, %v3180_v26  ;;  %v1584_v26 = vmul.f32 %v3649_v53, %v1581_v21  ;;  %v3927_v17 = vsel %vm1083_vm9, %v1498_v6, 0.0  ;;  %v1624_v44 = vmul.f32 %v3726_v39, %v1623_v59 }
 0x2a9   : > { %1344 = vadd.xlane.f32.xlu0 %v1343_v57  ;;  %1341 = vadd.xlane.f32.xlu1 %v1340_v28  ;;  %v1585_v57 = vmul.f32 %v3652_v54, %v1581_v21  ;;  %v3883_v47 = vsel %vm1083_vm9, %v1626_v51, 0.0  ;;  %v3886_v45 = vsel %vm1083_vm9, %v1669_v60, 0.0  ;;  %v1457_v60 = vmul.f32 %v3719_v34, %v1455_v43 }
 0x2aa   : > { %3181 = vlog2.f32 %v1020_v11  ;;  %v3873_v46 = vsel %vm1083_vm9, %v1584_v26, 0.0  ;;  %v3880_v11 = vsel %vm1083_vm9, %v1627_v3, 0.0  ;;  %v3891_v26 = vsel %vm1083_vm9, %v1668_v12, 0.0 }
 0x2ab   : > { %v3870_v28 = vsel %vm1083_vm9, %v1585_v57, 0.0  ;;  %v1710_v57 = vmul.f32 %v3649_v53, %v3855_v0  ;;  %v1414_v3 = vmul.f32 %v3726_v39, %v1413_v40  ;;  %v3920_v43 = vsel %vm1083_vm9, %v1499_v10, 0.0 }
 0x2ac   : > { %v1582_v10 = vmul.f32 %v3726_v39, %v1581_v21 }
 0x2ad   : > { %1088 = vadd.xlane.f32.xlu0 %v1087_v18  ;;  %1085 = vadd.xlane.f32.xlu1 %v1084_v32  ;;  %v1415_v18 = vmul.f32 %v3719_v34, %v1413_v40  ;;  %v3899_v51 = vsel %vm1083_vm9, %v1710_v57, 0.0  ;;  %v1166_v32 = vsel %vm1083_vm9, %v1162_v41, 0.0  ;;  %v3909_v37 = vsel %vm1083_vm9, %v1414_v3, 0.0 }
 0x2ae   : > { %v3914_v40 = vsel %vm1083_vm9, %v1457_v60, 0.0  ;;  %v3917_v57 = vsel %vm1083_vm9, %v1456_v19, 0.0  ;;  %v1541_v41 = vmul.f32 %v3719_v34, %v1539_v13  ;;  %v1583_v3 = vmul.f32 %v3719_v34, %v1581_v21 }
 0x2af   : > { %v3906_v12 = vsel %vm1083_vm9, %v1415_v18, 0.0  ;;  %v1211_v18 = vsel %vm1083_vm9, %v3796_v36, 0.0  ;;  %v1625_v60 = vmul.f32 %v3719_v34, %v1623_v59  ;;  %v3951_v21 = vsel %vm1083_vm9, %v1582_v10, 0.0 }
 0x2b0   : > { %v3932_v19 = vsel %vm1083_vm9, %v1541_v41, 0.0  ;;  %v3945_v36 = vsel %vm1083_vm9, %v1583_v3, 0.0  ;;  %4752 = vst [vmem:[#allocation28_spill] sm:$0xff] %v3951_v21  ;;  %v3957_v41 = vsel %vm1083_vm9, %v1624_v44, 0.0  ;;  %v3964_v3 = vmul.f32 %v3726_v39, %v3713_v29 }
 0x2b1   : > { %1386 = vadd.xlane.f32.xlu0 %v3782_v30  ;;  %1383 = vadd.xlane.f32.xlu1 %v3785_v35  ;;  %v1540_v30 = vmul.f32 %v3726_v39, %v1539_v13  ;;  %v3939_v35 = vmul.f32 %v3719_v34, %v3713_v29  ;;  %v1666_v13 = vmul.f32 %v3726_v39, %v3851_v61  ;;  %v3954_v59 = vsel %vm1083_vm9, %v1625_v60, 0.0 }
 0x2b2   : > { %4753 = vst [vmem:[#allocation29_spill] sm:$0xff] %v3954_v59  ;;  %4754 = vst [vmem:[#allocation30_spill] sm:$0xff] %v3957_v41  ;;  %v1795_v10 = vmul.f32 %v3652_v54, %v3754_v62  ;;  %v1752_v60 = vmul.f32 %v3649_v53, %v3742_v48  ;;  %v1837_v41 = vmul.f32 %v3652_v54, %v3763_v5 }
 0x2b3   : > { %v3942_v6 = vsel %vm1083_vm9, %v1540_v30, 0.0  ;;  %v1753_v30 = vmul.f32 %v3652_v54, %v3742_v48  ;;  %v1879_v29 = vmul.f32 %v3652_v54, %v3766_v56 }
 0x2b4   : > { %v3986_v59 = vsel %vm1083_vm9, %v1752_v60, 0.0  ;;  %v3994_v21 = vsel %vm1083_vm9, %v1837_v41, 0.0  ;;  %v4758_v41 = vmax.f32 %v3685_v8, 0.0 }
 0x2b5   : > { %1128 = vadd.xlane.f32.xlu0 %v3779_v33  ;;  %1125 = vadd.xlane.f32.xlu1 %v3788_v22  ;;  %v3967_v33 = vsel %vm1083_vm9, %v1666_v13, 0.0  ;;  %v3974_v44 = vsel %vm1083_vm9, %v1753_v30, 0.0  ;;  %v1794_v22 = vmul.f32 %v3649_v53, %v3754_v62  ;;  %4757 = vst [vmem:[#allocation33_spill] sm:$0xff] %v3986_v59  ;;  %v1836_v30 = vmul.f32 %v3649_v53, %v3763_v5 }
 0x2b6   : > { %4755 = vst [vmem:[#allocation31_spill] sm:$0xff] %v3967_v33  ;;  %4756 = vst [vmem:[#allocation32_spill] sm:$0xff] %v3974_v44  ;;  %v3983_v33 = vsel %vm1083_vm9, %v1795_v10, 0.0  ;;  %v1667_v44 = vmul.f32 %v3719_v34, %v3851_v61  ;;  %v4000_v10 = vsel %vm1083_vm9, %v1879_v29, 0.0  ;;  %v1709_v61 = vmul.f32 %v3719_v34, %v3855_v0 }
 0x2b7   : > { %v3182_v13 = vpop.eup %3181  ;;  %v3997_v54 = vsel %vm1083_vm9, %v1794_v22, 0.0  ;;  %v4003_v60 = vsel %vm1083_vm9, %v1836_v30, 0.0  ;;  %v1708_v29 = vmul.f32 %v3726_v39, %v3855_v0 }
 0x2b8   : > { %v1026_v58 = vmul.f32 0.6931472, %v3182_v13  ;;  %v4006_v59 = vsel %vm1083_vm9, %v1667_v44, 0.0  ;;  %v1751_v44 = vmul.f32 %v3719_v34, %v3742_v48  ;;  %v4028_v30 = vsel %vm1083_vm9, %v1709_v61, 0.0  ;;  %v4044_v61 = vld [vmem:[%s3507_s11 + $0x8] sm:$0xff] }
 0x2b9   : > { %1170 = vadd.xlane.f32.xlu0 %v3803_v49  ;;  %1167 = vadd.xlane.f32.xlu1 %v1166_v32  ;;  %v1878_v49 = vmul.f32 %v3649_v53, %v3766_v56  ;;  %v1208_v32 = vsel %vm1083_vm9, %v3807_v50, 0.0  ;;  %v1253_v53 = vsel %vm1083_vm9, %v3811_v63, 0.0 }
 0x2ba   : > { %v4014_v22 = vadd.f32 %v1026_v58, %v4758_v41  ;;  %v1750_v58 = vmul.f32 %v3726_v39, %v3742_v48  ;;  %v4047_v48 = vsel %vm1083_vm9, %v1708_v29, 0.0  ;;  %v4050_v41 = vsel %vm1083_vm9, %v1751_v44, 0.0 }
 0x2bb   : > { %v4025_v13 = vsel %vm1083_vm9, %v1878_v49, 0.0  ;;  %v4041_v49 = vld [vmem:[%s3507_s11] sm:$0xff] }
 0x2bc   : > { %4759 = vst [vmem:[#allocation34_spill] sm:$0xff] %v4014_v22  ;;  %v1769_v8 = vrot.slane %v4014_v22, %v3613_v31  ;;  %v1811_v50 = vrot.slane %v4014_v22, %v3604_v27  ;;  %v1853_v0 = vrot.slane %v4014_v22, %v3600_v25  ;;  %v1895_v63 = vrot.slane %v4014_v22, %v3596_v23 }
 0x2bd   : > { %1212 = vadd.xlane.f32.xlu0 %v1211_v18  ;;  %1209 = vadd.xlane.f32.xlu1 %v1208_v32  ;;  %v4053_v27 = vsel %vm1083_vm9, %v1750_v58, 0.0  ;;  %v1793_v25 = vmul.f32 %v3719_v34, %v3754_v62 }
 0x2be   : > { %v4058_v22 = vmul.f32 %v1769_v8, %v4041_v49  ;;  %v4061_v18 = vmul.f32 %v1769_v8, %v4044_v61  ;;  %v4064_v32 = vmul.f32 %v1811_v50, %v4041_v49  ;;  %v4067_v29 = vmul.f32 %v1811_v50, %v4044_v61 }
 0x2bf   : > { %v4070_v44 = vmul.f32 %v1853_v0, %v4041_v49  ;;  %v4073_v58 = vmul.f32 %v1853_v0, %v4044_v61  ;;  %v4076_v23 = vmul.f32 %v1895_v63, %v4041_v49  ;;  %v1250_v8 = vsel %vm1083_vm9, %v3820_v9, 0.0 }
 0x2c0   : > { %4760 = vst [vmem:[#allocation35_spill] sm:$0xff] %v4058_v22  ;;  %4761 = vst [vmem:[#allocation36_spill] sm:$0xff] %v4064_v32  ;;  %v4079_v22 = vmul.f32 %v1895_v63, %v4044_v61  ;;  %v4084_v32 = vsel %vm1083_vm9, %v1793_v25, 0.0  ;;  %v1792_v50 = vmul.f32 %v3726_v39, %v3754_v62  ;;  %v1835_v0 = vmul.f32 %v3719_v34, %v3763_v5 }
 0x2c1   : > { %4762 = vst [vmem:[#allocation37_spill] sm:$0xff] %v4076_v23  ;;  %1254 = vadd.xlane.f32.xlu0 %v1253_v53  ;;  %1251 = vadd.xlane.f32.xlu1 %v1250_v8  ;;  %v1834_v23 = vmul.f32 %v3726_v39, %v3763_v5  ;;  %v1877_v63 = vmul.f32 %v3719_v34, %v3766_v56  ;;  %v1295_v25 = vsel %vm1083_vm9, %v3939_v35, 0.0  ;;  %v1292_v35 = vsel %vm1083_vm9, %v3964_v3, 0.0 }
 0x2c2   : > { %4763 = vst [vmem:[#allocation38_spill] sm:$0xff] %v4079_v22  ;;  %v1876_v53 = vmul.f32 %v3726_v39, %v3766_v56  ;;  %v4099_v9 = vsel %vm1083_vm9, %v1792_v50, 0.0  ;;  %v4102_v62 = vsel %vm1083_vm9, %v1835_v0, 0.0  ;;  %v1331_v8 = vmul.f32 %v3719_v34, %v3723_v38 }
 0x2c3   : > { %v4107_v5 = vsel %vm1083_vm9, %v1834_v23, 0.0  ;;  %v4110_v22 = vsel %vm1083_vm9, %v1877_v63, 0.0  ;;  %v1330_v50 = vmul.f32 %v3726_v39, %v3723_v38  ;;  %v1373_v23 = vmul.f32 %v3719_v34, %v3733_v42 }
 0x2c4   : > { %v4113_v56 = vsel %vm1083_vm9, %v1876_v53, 0.0  ;;  %v1337_v0 = vsel %vm1083_vm9, %v1331_v8, 0.0  ;;  %v1372_v53 = vmul.f32 %v3726_v39, %v3733_v42  ;;  %v1000_v34 = vadd.f32 %v3679_v4, %v3646_v52  ;;  %v4765_v52 = vld [vmem:[#allocation23_spill] sm:$0xff] }
 0x2c5   : > { %1296 = vadd.xlane.f32.xlu0 %v1295_v25  ;;  %1293 = vadd.xlane.f32.xlu1 %v1292_v35  ;;  %v1334_v63 = vsel %vm1083_vm9, %v1330_v50, 0.0  ;;  %v1379_v25 = vsel %vm1083_vm9, %v1373_v23, 0.0 }
 0x2c6   : > { %v1376_v3 = vsel %vm1083_vm9, %v1372_v53, 0.0  ;;  %v1006_v38 = vand.u32 2147483647, %v1000_v34  ;;  %vm1938_vm9 = vcmask 72704  }
 0x2c8   : > { %v1009_v39 = vsub.f32 0.0, %v1006_v38 }
 0x2c9   : > { %1338 = vadd.xlane.f32.xlu0 %v1337_v0  ;;  %1335 = vadd.xlane.f32.xlu1 %v1334_v63  ;;  %v4773_v63 = vld [vmem:[#allocation14_spill] sm:$0xff] }
 0x2ca   : > { %v1012_v42 = vmul.f32 1.442695, %v1009_v39  ;;  %v4774_v39 = vld [vmem:[#allocation20_spill] sm:$0xff] }
 0x2cc   : > { %3183 = vpow2.f32 %v1012_v42 }
 0x2cd   : > { %1380 = vadd.xlane.f32.xlu0 %v1379_v25  ;;  %1377 = vadd.xlane.f32.xlu1 %v1376_v3 }
 0x2d1   : > { %1428 = vadd.xlane.f32.xlu0 %v3823_v1  ;;  %1425 = vadd.xlane.f32.xlu1 %v3829_v14  ;;  %v4766_v1 = vld [vmem:[#allocation29_spill] sm:$0xff]  ;;  %v4767_v14 = vld [vmem:[#allocation30_spill] sm:$0xff] }
 0x2d5   : > { %1470 = vadd.xlane.f32.xlu0 %v3832_v15  ;;  %1467 = vadd.xlane.f32.xlu1 %v3835_v16  ;;  %v4768_v16 = vld [vmem:[#allocation32_spill] sm:$0xff] }
 0x2d9   : > { %1512 = vadd.xlane.f32.xlu0 %v3838_v20  ;;  %1509 = vadd.xlane.f32.xlu1 %v3841_v55  ;;  %v4769_v20 = vld [vmem:[#allocation31_spill] sm:$0xff] }
 0x2dd   : > { %1554 = vadd.xlane.f32.xlu0 %v3858_v2  ;;  %1551 = vadd.xlane.f32.xlu1 %v3861_v7  ;;  %v3184_v7 = vpop.eup %3183  ;;  %v4770_v2 = vld [vmem:[#allocation33_spill] sm:$0xff] }
 0x2e1   : > { %1596 = vadd.xlane.f32.xlu0 %v3870_v28  ;;  %1593 = vadd.xlane.f32.xlu1 %v3873_v46 }
 0x2e5   : > { %1638 = vadd.xlane.f32.xlu0 %v3880_v11  ;;  %1635 = vadd.xlane.f32.xlu1 %v3883_v47  ;;  %v4764_v47 = vld [vmem:[#allocation28_spill] sm:$0xff]  ;;  %v1003_v11 = vmax.f32 %v1000_v34, 0.0 }
 0x2e9   : > { %1680 = vadd.xlane.f32.xlu0 %v3886_v45  ;;  %1677 = vadd.xlane.f32.xlu1 %v3891_v26  ;;  %v1018_v45 = vadd.f32 1.0, %v3184_v7 }
 0x2eb   : > { %3185 = vlog2.f32 %v1018_v45  ;;  %v4775_v45 = vld [vmem:[#allocation24_spill] sm:$0xff] }
 0x2ed   : > { %1722 = vadd.xlane.f32.xlu0 %v3894_v24  ;;  %1719 = vadd.xlane.f32.xlu1 %v3899_v51  ;;  %v4157_v24 = vadd.f32 %v3679_v4, %v4765_v52 }
 0x2ef   : > { %v1007_v15 = vand.u32 2147483647, %v4157_v24 }
 0x2f1   : > { %1422 = vadd.xlane.f32.xlu0 %v3906_v12  ;;  %1419 = vadd.xlane.f32.xlu1 %v3909_v37  ;;  %v1010_v55 = vsub.f32 0.0, %v1007_v15 }
 0x2f3   : > { %v1014_v46 = vmul.f32 1.442695, %v1010_v55 }
 0x2f5   : > { %1464 = vadd.xlane.f32.xlu0 %v3914_v40  ;;  %1461 = vadd.xlane.f32.xlu1 %v3917_v57  ;;  %3187 = vpow2.f32 %v1014_v46  ;;  %v4776_v46 = vld [vmem:[#allocation25_spill] sm:$0xff] }
 0x2f8   : > { %v3186_v28 = vpop.eup %3185 }
 0x2f9   : > { %1506 = vadd.xlane.f32.xlu0 %v3920_v43  ;;  %1503 = vadd.xlane.f32.xlu1 %v3927_v17  ;;  %v1022_v4 = vmul.f32 0.6931472, %v3186_v28 }
 0x2fb   : > { %v4170_v26 = vadd.f32 %v1022_v4, %v1003_v11 }
 0x2fd   : > { %1548 = vadd.xlane.f32.xlu0 %v3932_v19  ;;  %1545 = vadd.xlane.f32.xlu1 %v3942_v6  ;;  %v1099_v37 = vrot.slane %v4170_v26, %v3613_v31  ;;  %v4771_v19 = vld [vmem:[#allocation16_spill] sm:$0xff]  ;;  %v1223_v53 = vrot.slane %v4170_v26, %v4773_v63  ;;  %v1307_v4 = vrot.slane %v4170_v26, %v4776_v46 }
 0x2fe   : > { %v1139_v6 = vrot.slane %v4170_v26, %v4771_v19 }
 0x2ff   : > { %v1101_v43 = vmul.f32 %v1099_v37, %v4044_v61  ;;  %v1225_v7 = vmul.f32 %v1223_v53, %v4044_v61 }
 0x300   : > { %v1140_v50 = vmul.f32 %v1139_v6, %v4041_v49 }
 0x301   : > { %1590 = vadd.xlane.f32.xlu0 %v3945_v36  ;;  %1587 = vadd.xlane.f32.xlu1 %v4764_v47  ;;  %v1265_v47 = vrot.slane %v4170_v26, %v4775_v45 }
 0x302   : > { %v3188_v17 = vpop.eup %3187  ;;  %v1142_v25 = vmul.f32 1.442695, %v1140_v50 }
 0x303   : > { %v1267_v28 = vmul.f32 %v1265_v47, %v4044_v61 }
 0x305   : > { %1632 = vadd.xlane.f32.xlu0 %v4766_v1  ;;  %1629 = vadd.xlane.f32.xlu1 %v4767_v14  ;;  %v1224_v1 = vmul.f32 %v1223_v53, %v4041_v49 }
 0x309   : > { %1764 = vadd.xlane.f32.xlu0 %v4768_v16  ;;  %1671 = vadd.xlane.f32.xlu1 %v4769_v20 }
 0x30d   : > { %1806 = vadd.xlane.f32.xlu0 %v3983_v33  ;;  %1761 = vadd.xlane.f32.xlu1 %v4770_v2  ;;  %v1104_v33 = vmul.f32 1.442695, %v1101_v43  ;;  %v1228_v2 = vmul.f32 1.442695, %v1225_v7  ;;  %v1004_v43 = vmax.f32 %v4157_v24, 0.0 }
 0x30f   : > { %3189 = vpow2.f32 %v1104_v33 }
 0x311   : > { %1848 = vadd.xlane.f32.xlu0 %v3994_v21  ;;  %1803 = vadd.xlane.f32.xlu1 %v3997_v54  ;;  %v1100_v21 = vmul.f32 %v1099_v37, %v4041_v49  ;;  %v1019_v54 = vadd.f32 1.0, %v3188_v17  ;;  %v1266_v37 = vmul.f32 %v1265_v47, %v4041_v49 }
 0x313   : > { %3191 = vlog2.f32 %v1019_v54  ;;  %v4777_v54 = vld [vmem:[#allocation26_spill] sm:$0xff]  ;;  %v1268_v24 = vmul.f32 1.442695, %v1266_v37 }
 0x315   : > { %1890 = vadd.xlane.f32.xlu0 %v4000_v10  ;;  %1845 = vadd.xlane.f32.xlu1 %v4003_v60  ;;  %v1141_v10 = vmul.f32 %v1139_v6, %v4044_v61 }
 0x319   : > { %1674 = vadd.xlane.f32.xlu0 %v4006_v59  ;;  %1887 = vadd.xlane.f32.xlu1 %v4025_v13  ;;  %v1102_v13 = vmul.f32 1.442695, %v1100_v21 }
 0x31a   : > { %v1095_v51 = vpop.xlane.xlu0 %1094  ;;  %v4174_v12 = vpop.xlane.xlu1 %1091 }
 0x31b   : > { %3193 = vpow2.f32 %v1102_v13  ;;  %v1270_v13 = vmul.f32 1.442695, %v1267_v28 }
 0x31c   : > { %v3190_v16 = vpop.eup %3189 }
 0x31d   : > { %1716 = vadd.xlane.f32.xlu0 %v4028_v30  ;;  %1713 = vadd.xlane.f32.xlu1 %v4047_v48  ;;  %v1979_v17 = vmul.f32 0.0, %v3190_v16 }
 0x31e   : > { %v1135_v40 = vpop.xlane.xlu0 %1134  ;;  %v4180_v57 = vpop.xlane.xlu1 %1131 }
 0x320   : > { %v3192_v55 = vpop.eup %3191 }
 0x321   : > { %1758 = vadd.xlane.f32.xlu0 %v4050_v41  ;;  %1755 = vadd.xlane.f32.xlu1 %v4053_v27  ;;  %v1916_v27 = vsel %vm1914_vm12, %v1095_v51, %v1135_v40  ;;  %v1144_v41 = vmul.f32 1.442695, %v1141_v10  ;;  %v1226_v51 = vmul.f32 1.442695, %v1224_v1  ;;  %v1024_v21 = vmul.f32 0.6931472, %v3192_v55 }
 0x322   : > { %v1177_v36 = vpop.xlane.xlu0 %1176  ;;  %v4188_v59 = vpop.xlane.xlu1 %1173  ;;  %v1349_v10 = vrot.slane %v4170_v26, %v4777_v54 }
 0x323   : > { %v1919_v48 = vsel %vm1917_vm13, %v1916_v27, %v1177_v36  ;;  %3195 = vpow2.f32 %v1144_v41  ;;  %v1309_v27 = vmul.f32 %v1307_v4, %v4044_v61 }
 0x324   : > { %3197 = vpow2.f32 %v1142_v25 }
 0x325   : > { %1800 = vadd.xlane.f32.xlu0 %v4084_v32  ;;  %1797 = vadd.xlane.f32.xlu1 %v4099_v9  ;;  %v4772_v32 = vld [vmem:[#allocation15_spill] sm:$0xff] }
 0x326   : > { %v1219_v60 = vpop.xlane.xlu0 %1218  ;;  %v4193_v30 = vpop.xlane.xlu1 %1215  ;;  %v1181_v8 = vrot.slane %v4170_v26, %v4772_v32 }
 0x327   : > { %v1922_v9 = vsel %vm1920_vm14, %v1919_v48, %v1219_v60 }
 0x328   : > { %v1182_v3 = vmul.f32 %v1181_v8, %v4041_v49  ;;  %v3194_v40 = vpop.eup %3193 }
 0x329   : > { %1842 = vadd.xlane.f32.xlu0 %v4102_v62  ;;  %1839 = vadd.xlane.f32.xlu1 %v4107_v5  ;;  %v1183_v62 = vmul.f32 %v1181_v8, %v4044_v61  ;;  %v1978_v41 = vmul.f32 0.0, %v3194_v40 }
 0x32a   : > { %v1261_v35 = vpop.xlane.xlu0 %1260  ;;  %v4204_v23 = vpop.xlane.xlu1 %1257  ;;  %v1184_v52 = vmul.f32 1.442695, %v1182_v3  ;;  %v1312_v3 = vmul.f32 1.442695, %v1309_v27 }
 0x32b   : > { %v1925_v0 = vsel %vm1923_vm15, %v1922_v9, %v1261_v35  ;;  %v1186_v42 = vmul.f32 1.442695, %v1183_v62  ;;  %v1308_v9 = vmul.f32 %v1307_v4, %v4041_v49  ;;  %v4245_v62 = vadd.f32 %v1024_v21, %v1004_v43 }
 0x32d   : > { %1884 = vadd.xlane.f32.xlu0 %v4110_v22  ;;  %1881 = vadd.xlane.f32.xlu1 %v4113_v56  ;;  %v4217_v22 = vmul.f32 %v4170_v26, %v4774_v39  ;;  %3199 = vpow2.f32 %v1186_v42  ;;  %v1310_v47 = vmul.f32 1.442695, %v1308_v9  ;;  %v1433_v4 = vrot.slane %v4245_v62, %v3613_v31 }
 0x32e   : > { %v1303_v5 = vpop.xlane.xlu0 %1302  ;;  %v4213_v38 = vpop.xlane.xlu1 %1299  ;;  %3201 = vpow2.f32 %v1184_v52 }
 0x32f   : > { %v1928_v34 = vsel %vm1926_vm0, %v1925_v0, %v1303_v5  ;;  %v1111_v20 = vrot.slane %v4217_v22, %v3613_v31  ;;  %3203 = vpow2.f32 %v1228_v2  ;;  %v1351_v5 = vmul.f32 %v1349_v10, %v4044_v61 }
 0x330   : > { %v3196_v48 = vpop.eup %3195  ;;  %3205 = vpow2.f32 %v1226_v51  ;;  %v1152_v25 = vrot.slane %v4217_v22, %v4771_v19  ;;  %v1194_v55 = vrot.slane %v4217_v22, %v4772_v32 }
 0x331   : > { %3207 = vpow2.f32 %v1270_v13  ;;  %v3198_v52 = vpop.eup %3197  ;;  %v1354_v2 = vmul.f32 1.442695, %v1351_v5  ;;  %v1236_v13 = vrot.slane %v4217_v22, %v4773_v63  ;;  %v1434_v5 = vmul.f32 %v1433_v4, %v4041_v49 }
 0x332   : > { %v1345_v56 = vpop.xlane.xlu0 %1344  ;;  %v4224_v15 = vpop.xlane.xlu1 %1341  ;;  %3209 = vpow2.f32 %v1268_v24 }
 0x333   : > { %v1931_v14 = vsel %vm1929_vm1, %v1928_v34, %v1345_v56  ;;  %v4778_v34 = vld [vmem:[#allocation27_spill] sm:$0xff]  ;;  %v1350_v56 = vmul.f32 %v1349_v10, %v4041_v49  ;;  %3211 = vpow2.f32 %v1312_v3 }
 0x334   : > { %v1391_v42 = vrot.slane %v4170_v26, %v4778_v34  ;;  %3213 = vpow2.f32 %v1310_v47 }
 0x335   : > { %v1352_v40 = vmul.f32 1.442695, %v1350_v56  ;;  %3215 = vpow2.f32 %v1354_v2  ;;  %v1436_v2 = vmul.f32 1.442695, %v1434_v5  ;;  %v1362_v5 = vrot.slane %v4217_v22, %v4777_v54 }
 0x336   : > { %v1089_v11 = vpop.xlane.xlu0 %1088  ;;  %v1086_v36 = vpop.xlane.xlu1 %1085  ;;  %v1393_v26 = vmul.f32 %v1391_v42, %v4044_v61  ;;  %v1392_v43 = vmul.f32 %v1391_v42, %v4041_v49 }
 0x337   : > { %v1113_v6 = vmul.f32 %v1111_v20, %v1089_v11  ;;  %v1112_v33 = vmul.f32 %v1111_v20, %v1086_v36  ;;  %3217 = vpow2.f32 %v1352_v40 }
 0x339   : > { %v4235_v60 = vadd.f32 %v1979_v17, %v1113_v6  ;;  %v4247_v53 = vadd.f32 %v1978_v41, %v1112_v33  ;;  %v1435_v41 = vmul.f32 %v1433_v4, %v4044_v61 }
 0x33a   : > { %v1387_v8 = vpop.xlane.xlu0 %1386  ;;  %v4242_v50 = vpop.xlane.xlu1 %1383 }
 0x33b   : > { %v4240_v35 = vsel %vm1932_vm7, %v1931_v14, %v1387_v8  ;;  %v2006_v0 = vmul.f32 %v3196_v48, %v4235_v60  ;;  %v2005_v16 = vmul.f32 %v3198_v52, %v4247_v53  ;;  %v3200_v11 = vpop.eup %3199  ;;  %v1396_v48 = vmul.f32 1.442695, %v1393_v26 }
 0x33c   : > { %v3202_v17 = vpop.eup %3201 }
 0x33d   : > { %v3204_v8 = vpop.eup %3203  ;;  %3219 = vpow2.f32 %v1396_v48 }
 0x33e   : > { %v1129_v7 = vpop.xlane.xlu0 %1128  ;;  %v1126_v14 = vpop.xlane.xlu1 %1125 }
 0x33f   : > { %v1154_v1 = vmul.f32 %v1152_v25, %v1129_v7  ;;  %v1153_v20 = vmul.f32 %v1152_v25, %v1126_v14  ;;  %v3206_v25 = vpop.eup %3205  ;;  %v1438_v14 = vmul.f32 1.442695, %v1435_v41 }
 0x341   : > { %v4258_v28 = vadd.f32 %v2006_v0, %v1154_v1  ;;  %v4263_v51 = vadd.f32 %v2005_v16, %v1153_v20  ;;  %v1394_v0 = vmul.f32 1.442695, %v1392_v43  ;;  %v1278_v1 = vrot.slane %v4217_v22, %v4775_v45  ;;  %v3208_v16 = vpop.eup %3207 }
 0x342   : > { %v1171_v37 = vpop.xlane.xlu0 %1170  ;;  %v1168_v21 = vpop.xlane.xlu1 %1167 }
 0x343   : > { %v2031_v6 = vmul.f32 %v3200_v11, %v4258_v28  ;;  %v1196_v36 = vmul.f32 %v1194_v55, %v1171_v37  ;;  %v2030_v33 = vmul.f32 %v3202_v17, %v4263_v51  ;;  %v1195_v10 = vmul.f32 %v1194_v55, %v1168_v21  ;;  %v3210_v26 = vpop.eup %3209 }
 0x344   : > { %3221 = vpow2.f32 %v1394_v0 }
 0x345   : > { %v4270_v27 = vadd.f32 %v2031_v6, %v1196_v36  ;;  %v4273_v24 = vadd.f32 %v2030_v33, %v1195_v10  ;;  %v1320_v6 = vrot.slane %v4217_v22, %v4776_v46  ;;  %3223 = vpow2.f32 %v1438_v14  ;;  %v3212_v36 = vpop.eup %3211 }
 0x346   : > { %v1213_v9 = vpop.xlane.xlu0 %1212  ;;  %v1210_v7 = vpop.xlane.xlu1 %1209  ;;  %3225 = vpow2.f32 %v1436_v2  ;;  %v1404_v2 = vrot.slane %v4217_v22, %v4778_v34 }
 0x347   : > { %v2056_v3 = vmul.f32 %v3204_v8, %v4270_v27  ;;  %v1238_v42 = vmul.f32 %v1236_v13, %v1213_v9  ;;  %v2055_v47 = vmul.f32 %v3206_v25, %v4273_v24  ;;  %v1237_v56 = vmul.f32 %v1236_v13, %v1210_v7  ;;  %v3214_v10 = vpop.eup %3213 }
 0x348   : > { %v3216_v25 = vpop.eup %3215 }
 0x349   : > { %v4278_v52 = vadd.f32 %v2056_v3, %v1238_v42  ;;  %v4282_v20 = vadd.f32 %v2055_v47, %v1237_v56  ;;  %v3218_v7 = vpop.eup %3217 }
 0x34a   : > { %v1255_v55 = vpop.xlane.xlu0 %1254  ;;  %v1252_v37 = vpop.xlane.xlu1 %1251 }
 0x34b   : > { %v2081_v4 = vmul.f32 %v3208_v16, %v4278_v52  ;;  %v1280_v11 = vmul.f32 %v1278_v1, %v1255_v55  ;;  %v2080_v40 = vmul.f32 %v3210_v26, %v4282_v20  ;;  %v1279_v43 = vmul.f32 %v1278_v1, %v1252_v37  ;;  %v3220_v26 = vpop.eup %3219 }
 0x34d   : > { %v4286_v17 = vadd.f32 %v2081_v4, %v1280_v11  ;;  %v4290_v21 = vadd.f32 %v2080_v40, %v1279_v43 }
 0x34e   : > { %v1297_v33 = vpop.xlane.xlu0 %1296  ;;  %v1294_v41 = vpop.xlane.xlu1 %1293 }
 0x34f   : > { %v2106_v13 = vmul.f32 %v3212_v36, %v4286_v17  ;;  %v1322_v48 = vmul.f32 %v1320_v6, %v1297_v33  ;;  %v2105_v8 = vmul.f32 %v3214_v10, %v4290_v21  ;;  %v1321_v9 = vmul.f32 %v1320_v6, %v1294_v41 }
 0x351   : > { %v4294_v0 = vadd.f32 %v2106_v13, %v1322_v48  ;;  %v4298_v3 = vadd.f32 %v2105_v8, %v1321_v9  ;;  %v3222_v37 = vpop.eup %3221 }
 0x352   : > { %v1339_v42 = vpop.xlane.xlu0 %1338  ;;  %v1336_v1 = vpop.xlane.xlu1 %1335 }
 0x353   : > { %v2131_v47 = vmul.f32 %v3216_v25, %v4294_v0  ;;  %v1364_v56 = vmul.f32 %v1362_v5, %v1339_v42  ;;  %v2130_v14 = vmul.f32 %v3218_v7, %v4298_v3  ;;  %v1363_v16 = vmul.f32 %v1362_v5, %v1336_v1  ;;  %v3224_v13 = vpop.eup %3223 }
 0x354   : > { %v3226_v22 = vpop.eup %3225 }
 0x355   : > { %v4302_v55 = vadd.f32 %v2131_v47, %v1364_v56  ;;  %v4306_v4 = vadd.f32 %v2130_v14, %v1363_v16 }
 0x356   : > { %v1381_v11 = vpop.xlane.xlu0 %1380  ;;  %v1378_v6 = vpop.xlane.xlu1 %1377 }
 0x357   : > { %v2156_v40 = vmul.f32 %v3220_v26, %v4302_v55  ;;  %v1406_v43 = vmul.f32 %v1404_v2, %v1381_v11  ;;  %v2155_v36 = vmul.f32 %v3222_v37, %v4306_v4  ;;  %v1405_v33 = vmul.f32 %v1404_v2, %v1378_v6 }
 0x358   : > { %v1915_v2 = vsel %vm1914_vm12, %v4174_v12, %v4180_v57 }
 0x359   : > { %v4310_v10 = vadd.f32 %v2156_v40, %v1406_v43  ;;  %v4312_v48 = vadd.f32 %v2155_v36, %v1405_v33  ;;  %v1918_v37 = vsel %vm1917_vm13, %v1915_v2, %v4188_v59  ;;  %v1517_v40 = vrot.slane %v4245_v62, %v4772_v32 }
 0x35a   : > { %v1429_v41 = vpop.xlane.xlu0 %1428  ;;  %v1426_v9 = vpop.xlane.xlu1 %1425  ;;  %v1921_v43 = vsel %vm1920_vm14, %v1918_v37, %v4193_v30 }
 0x35b   : > { %v1937_v8 = vsel %vm1935_vm8, %v4240_v35, %v1429_v41  ;;  %v4317_v5 = vmul.f32 %v3224_v13, %v4310_v10  ;;  %v4320_v25 = vmul.f32 %v3226_v22, %v4312_v48  ;;  %v1475_v35 = vrot.slane %v4245_v62, %v4771_v19 }
 0x35c   : > { %v1924_v36 = vsel %vm1923_vm15, %v1921_v43, %v4204_v23  ;;  %v1519_v30 = vmul.f32 %v1517_v40, %v4044_v61  ;;  %v1559_v23 = vrot.slane %v4245_v62, %v4773_v63  ;;  %vm1953_vm15 = vcmask 113664  }
 0x35d   : > { %v1477_v6 = vmul.f32 %v1475_v35, %v4044_v61  ;;  %v1476_v12 = vmul.f32 %v1475_v35, %v4041_v49  ;;  %v1927_v57 = vsel %vm1926_vm0, %v1924_v36, %v4213_v38  ;;  %vm1956_vm0 = vcmask 121856  }
 0x35e   : > { %v1471_v42 = vpop.xlane.xlu0 %1470  ;;  %v1468_v47 = vpop.xlane.xlu1 %1467  ;;  %v1930_v41 = vsel %vm1929_vm1, %v1927_v57, %v4224_v15  ;;  %v1522_v2 = vmul.f32 1.442695, %v1519_v30  ;;  %v1560_v43 = vmul.f32 %v1559_v23, %v4041_v49  ;;  %v1643_v57 = vrot.slane %v4245_v62, %v4776_v46 }
 0x35f   : > { %v1940_v7 = vsel %vm1938_vm9, %v1937_v8, %v1471_v42  ;;  %v1933_v22 = vsel %vm1932_vm7, %v1930_v41, %v4242_v50  ;;  %v1480_v8 = vmul.f32 1.442695, %v1477_v6  ;;  %v1478_v38 = vmul.f32 1.442695, %v1476_v12 }
 0x360   : > { %v1936_v42 = vsel %vm1935_vm8, %v1933_v22, %v1426_v9  ;;  %v1601_v9 = vrot.slane %v4245_v62, %v4775_v45  ;;  %v1562_v30 = vmul.f32 1.442695, %v1560_v43  ;;  %vm4789_vm1 = vcmask 519168  }
 0x361   : > { %3227 = vpow2.f32 %v1480_v8  ;;  %vm4790_vm7 = vcmask 523264  }
 0x362   : > { %v1513_v56 = vpop.xlane.xlu0 %1512  ;;  %v1510_v14 = vpop.xlane.xlu1 %1509  ;;  %3229 = vpow2.f32 %v1478_v38  ;;  %v1602_v22 = vmul.f32 %v1601_v9, %v4041_v49  ;;  %v1645_v38 = vmul.f32 %v1643_v57, %v4044_v61  ;;  %vm4791_vm8 = vmmov %vm4790_vm7 }
 0x363   : > { %v1943_v1 = vsel %vm1941_vm10, %v1940_v7, %v1513_v56  ;;  %v1518_v56 = vmul.f32 %v1517_v40, %v4041_v49  ;;  %3231 = vpow2.f32 %v1522_v2 }
 0x366   : > { %v1555_v16 = vpop.xlane.xlu0 %1554  ;;  %v1552_v11 = vpop.xlane.xlu1 %1551 }
 0x367   : > { %v1946_v26 = vsel %vm1944_vm11, %v1943_v1, %v1555_v16  ;;  %v1939_v1 = vsel %vm1938_vm9, %v1936_v42, %v1468_v47  ;;  %v1520_v47 = vmul.f32 1.442695, %v1518_v56 }
 0x368   : > { %v1942_v16 = vsel %vm1941_vm10, %v1939_v1, %v1510_v14  ;;  %v1644_v1 = vmul.f32 %v1643_v57, %v4041_v49  ;;  %v1727_v57 = vrot.slane %v4245_v62, %v4778_v34 }
 0x369   : > { %v1945_v50 = vsel %vm1944_vm11, %v1942_v16, %v1552_v11  ;;  %v4779_v11 = vld [vmem:[#allocation21_spill] sm:$0xff]  ;;  %3233 = vpow2.f32 %v1520_v47  ;;  %v1604_v16 = vmul.f32 1.442695, %v1602_v22 }
 0x36a   : > { %v1597_v33 = vpop.xlane.xlu0 %1596  ;;  %v1594_v13 = vpop.xlane.xlu1 %1593  ;;  %v4364_v12 = vmul.f32 %v4245_v62, %v4779_v11  ;;  %v1646_v47 = vmul.f32 1.442695, %v1644_v1 }
 0x36b   : > { %v1949_v59 = vsel %vm1947_vm2, %v1946_v26, %v1597_v33  ;;  %v1561_v26 = vmul.f32 %v1559_v23, %v4044_v61  ;;  %v1948_v37 = vsel %vm1947_vm2, %v1945_v50, %v1594_v13  ;;  %v1603_v13 = vmul.f32 %v1601_v9, %v4044_v61 }
 0x36c   : > { %v1488_v9 = vrot.slane %v4364_v12, %v4771_v19  ;;  %vm1973_vm2 = vcmask 130048  }
 0x36d   : > { %v1606_v56 = vmul.f32 1.442695, %v1603_v13 }
 0x36e   : > { %v1639_v7 = vpop.xlane.xlu0 %1638  ;;  %v1636_v35 = vpop.xlane.xlu1 %1635 }
 0x36f   : > { %v1952_v15 = vsel %vm1950_vm3, %v1949_v59, %v1639_v7  ;;  %v1951_v6 = vsel %vm1950_vm3, %v1948_v37, %v1636_v35  ;;  %v1564_v59 = vmul.f32 1.442695, %v1561_v26  ;;  %v1446_v7 = vrot.slane %v4364_v12, %v3613_v31 }
 0x370   : > { %v1648_v37 = vmul.f32 1.442695, %v1645_v38  ;;  %vm2481_vm3 = vcmask 1043456  }
 0x371   : > { %3235 = vpow2.f32 %v1564_v59 }
 0x372   : > { %v1681_v40 = vpop.xlane.xlu0 %1680  ;;  %v1678_v36 = vpop.xlane.xlu1 %1677  ;;  %3237 = vpow2.f32 %v1562_v30 }
 0x373   : > { %v1955_v14 = vsel %vm1953_vm15, %v1952_v15, %v1681_v40  ;;  %v1954_v33 = vsel %vm1953_vm15, %v1951_v6, %v1678_v36  ;;  %v1685_v15 = vrot.slane %v4245_v62, %v4777_v54  ;;  %3239 = vpow2.f32 %v1606_v56  ;;  %v3228_v6 = vpop.eup %3227 }
 0x374   : > { %3241 = vpow2.f32 %v1604_v16  ;;  %v3230_v59 = vpop.eup %3229 }
 0x375   : > { %v1687_v43 = vmul.f32 %v1685_v15, %v4044_v61  ;;  %3243 = vpow2.f32 %v1648_v37  ;;  %v3232_v38 = vpop.eup %3231  ;;  %v1572_v37 = vrot.slane %v4364_v12, %v4773_v63 }
 0x376   : > { %v1723_v41 = vpop.xlane.xlu0 %1722  ;;  %v1720_v23 = vpop.xlane.xlu1 %1719  ;;  %3245 = vpow2.f32 %v1646_v47 }
 0x377   : > { %v4370_v8 = vsel %vm1956_vm0, %v1955_v14, %v1723_v41  ;;  %v4372_v42 = vsel %vm1956_vm0, %v1954_v33, %v1720_v23  ;;  %v1686_v33 = vmul.f32 %v1685_v15, %v4041_v49  ;;  %v1728_v15 = vmul.f32 %v1727_v57, %v4041_v49 }
 0x379   : > { %v1688_v62 = vmul.f32 1.442695, %v1686_v33  ;;  %v1730_v49 = vmul.f32 1.442695, %v1728_v15 }
 0x37a   : > { %v1423_v35 = vpop.xlane.xlu0 %1422  ;;  %v1420_v50 = vpop.xlane.xlu1 %1419 }
 0x37b   : > { %v1448_v2 = vmul.f32 %v1446_v7, %v1423_v35  ;;  %v1447_v26 = vmul.f32 %v1446_v7, %v1420_v50  ;;  %v1690_v7 = vmul.f32 1.442695, %v1687_v43  ;;  %v3234_v35 = vpop.eup %3233 }
 0x37d   : > { %v4383_v40 = vadd.f32 %v4317_v5, %v1448_v2  ;;  %v4387_v14 = vadd.f32 %v4320_v25, %v1447_v26  ;;  %v1530_v25 = vrot.slane %v4364_v12, %v4772_v32  ;;  %3247 = vpow2.f32 %v1690_v7 }
 0x37e   : > { %v1465_v36 = vpop.xlane.xlu0 %1464  ;;  %v1462_v41 = vpop.xlane.xlu1 %1461  ;;  %3249 = vpow2.f32 %v1688_v62 }
 0x37f   : > { %v2206_v13 = vmul.f32 %v3228_v6, %v4383_v40  ;;  %v1490_v5 = vmul.f32 %v1488_v9, %v1465_v36  ;;  %v2205_v30 = vmul.f32 %v3230_v59, %v4387_v14  ;;  %v1489_v22 = vmul.f32 %v1488_v9, %v1462_v41  ;;  %v3236_v43 = vpop.eup %3235 }
 0x380   : > { %v3238_v33 = vpop.eup %3237  ;;  %3251 = vpow2.f32 %v1730_v49 }
 0x381   : > { %v4394_v23 = vadd.f32 %v2206_v13, %v1490_v5  ;;  %v4398_v56 = vadd.f32 %v2205_v30, %v1489_v22  ;;  %v3240_v7 = vpop.eup %3239 }
 0x382   : > { %v1507_v1 = vpop.xlane.xlu0 %1506  ;;  %v1504_v50 = vpop.xlane.xlu1 %1503 }
 0x383   : > { %v2231_v16 = vmul.f32 %v3232_v38, %v4394_v23  ;;  %v1532_v2 = vmul.f32 %v1530_v25, %v1507_v1  ;;  %v2230_v26 = vmul.f32 %v3234_v35, %v4398_v56  ;;  %v1531_v9 = vmul.f32 %v1530_v25, %v1504_v50  ;;  %v3242_v62 = vpop.eup %3241 }
 0x384   : > { %v1614_v25 = vrot.slane %v4364_v12, %v4775_v45 }
 0x385   : > { %v4403_v6 = vadd.f32 %v2231_v16, %v1532_v2  ;;  %v4407_v36 = vadd.f32 %v2230_v26, %v1531_v9  ;;  %v1656_v9 = vrot.slane %v4364_v12, %v4776_v46  ;;  %v1698_v46 = vrot.slane %v4364_v12, %v4777_v54 }
 0x386   : > { %v1549_v47 = vpop.xlane.xlu0 %1548  ;;  %v1546_v5 = vpop.xlane.xlu1 %1545 }
 0x387   : > { %v2256_v59 = vmul.f32 %v3236_v43, %v4403_v6  ;;  %v1574_v13 = vmul.f32 %v1572_v37, %v1549_v47  ;;  %v2255_v41 = vmul.f32 %v3238_v33, %v4407_v36  ;;  %v1573_v30 = vmul.f32 %v1572_v37, %v1546_v5  ;;  %v3244_v37 = vpop.eup %3243 }
 0x388   : > { %v3246_v47 = vpop.eup %3245 }
 0x389   : > { %v4411_v22 = vadd.f32 %v2256_v59, %v1574_v13  ;;  %v4415_v38 = vadd.f32 %v2255_v41, %v1573_v30  ;;  %v1729_v30 = vmul.f32 %v1727_v57, %v4044_v61 }
 0x38a   : > { %v1591_v1 = vpop.xlane.xlu0 %1590  ;;  %v1588_v16 = vpop.xlane.xlu1 %1587 }
 0x38b   : > { %v2281_v15 = vmul.f32 %v3240_v7, %v4411_v22  ;;  %v1616_v35 = vmul.f32 %v1614_v25, %v1591_v1  ;;  %v2280_v2 = vmul.f32 %v3242_v62, %v4415_v38  ;;  %v1615_v50 = vmul.f32 %v1614_v25, %v1588_v16  ;;  %v3248_v25 = vpop.eup %3247 }
 0x38c   : > { %v3250_v62 = vpop.eup %3249 }
 0x38d   : > { %v4419_v26 = vadd.f32 %v2281_v15, %v1616_v35  ;;  %v4423_v45 = vadd.f32 %v2280_v2, %v1615_v50  ;;  %v1732_v50 = vmul.f32 1.442695, %v1729_v30 }
 0x38e   : > { %v1633_v43 = vpop.xlane.xlu0 %1632  ;;  %v1630_v59 = vpop.xlane.xlu1 %1629 }
 0x38f   : > { %v2306_v49 = vmul.f32 %v3244_v37, %v4419_v26  ;;  %v1658_v33 = vmul.f32 %v1656_v9, %v1633_v43  ;;  %v2305_v13 = vmul.f32 %v3246_v47, %v4423_v45  ;;  %v1657_v5 = vmul.f32 %v1656_v9, %v1630_v59  ;;  %v3252_v43 = vpop.eup %3251 }
 0x390   : > { %3253 = vpow2.f32 %v1732_v50  ;;  %v1774_v47 = vmul.f32 1.442695, %v4061_v18  ;;  %v1858_v18 = vmul.f32 1.442695, %v4073_v58  ;;  %v4783_v58 = vld [vmem:[#allocation34_spill] sm:$0xff] }
 0x391   : > { %v4427_v41 = vadd.f32 %v2306_v49, %v1658_v33  ;;  %v4430_v7 = vadd.f32 %v2305_v13, %v1657_v5  ;;  %v4780_v49 = vld [vmem:[#allocation35_spill] sm:$0xff]  ;;  %v1816_v5 = vmul.f32 1.442695, %v4067_v29  ;;  %v1856_v29 = vmul.f32 1.442695, %v4070_v44 }
 0x392   : > { %v1765_v1 = vpop.xlane.xlu0 %1764  ;;  %v1672_v15 = vpop.xlane.xlu1 %1671  ;;  %v1772_v33 = vmul.f32 1.442695, %v4780_v49  ;;  %3255 = vpow2.f32 %v1774_v47  ;;  %v1740_v49 = vrot.slane %v4364_v12, %v4778_v34 }
 0x393   : > { %v2331_v35 = vmul.f32 %v3248_v25, %v4427_v41  ;;  %v2330_v16 = vmul.f32 %v3250_v62, %v4430_v7  ;;  %v1699_v2 = vmul.f32 %v1698_v46, %v1672_v15  ;;  %v4781_v62 = vld [vmem:[#allocation36_spill] sm:$0xff] }
 0x394   : > { %3257 = vpow2.f32 %v1772_v33  ;;  %v1814_v15 = vmul.f32 1.442695, %v4781_v62 }
 0x395   : > { %v4436_v9 = vadd.f32 %v2330_v16, %v1699_v2  ;;  %3259 = vpow2.f32 %v1816_v5 }
 0x396   : > { %v1807_v37 = vpop.xlane.xlu0 %1806  ;;  %v1762_v61 = vpop.xlane.xlu1 %1761  ;;  %3261 = vpow2.f32 %v1814_v15 }
 0x397   : > { %v2355_v57 = vmul.f32 %v3252_v43, %v4436_v9  ;;  %v1960_v13 = vsel %vm1914_vm12, %v1765_v1, %v1807_v37  ;;  %3263 = vpow2.f32 %v1858_v18 }
 0x398   : > { %3265 = vpow2.f32 %v1856_v29 }
 0x39a   : > { %v1849_v54 = vpop.xlane.xlu0 %1848  ;;  %v1804_v59 = vpop.xlane.xlu1 %1803 }
 0x39b   : > { %v1962_v30 = vsel %vm1917_vm13, %v1960_v13, %v1849_v54  ;;  %v1959_v50 = vsel %vm1914_vm12, %v1762_v61, %v1804_v59  ;;  %v4782_v13 = vld [vmem:[#allocation22_spill] sm:$0xff]  ;;  %vm2483_vm12 = vcmask 1044480  }
 0x39c   : > { %v1032_v5 = vmul.f32 %v4783_v58, %v4782_v13  ;;  %v4784_v61 = vld [vmem:[#allocation38_spill] sm:$0xff] }
 0x39d   : > { %v1900_v59 = vmul.f32 1.442695, %v4784_v61 }
 0x39e   : > { %v1891_v25 = vpop.xlane.xlu0 %1890  ;;  %v1846_v16 = vpop.xlane.xlu1 %1845  ;;  %v1782_v12 = vrot.slane %v1032_v5, %v3613_v31 }
 0x39f   : > { %v1964_v2 = vsel %vm1920_vm14, %v1962_v30, %v1891_v25  ;;  %v1961_v37 = vsel %vm1917_vm13, %v1959_v50, %v1846_v16  ;;  %v3254_v30 = vpop.eup %3253  ;;  %v4785_v25 = vld [vmem:[#allocation37_spill] sm:$0xff]  ;;  %3267 = vpow2.f32 %v1900_v59  ;;  %vm2485_vm13 = vcmask 1045504  }
 0x3a0   : > { %1969 = vrot.lane.b32.xlu0 %v1964_v2, %s3338_s30 }
 0x3a2   : > { %v1675_v1 = vpop.xlane.xlu0 %1674  ;;  %v1888_v47 = vpop.xlane.xlu1 %1887 }
 0x3a3   : > { %v1700_v43 = vmul.f32 %v1698_v46, %v1675_v1  ;;  %v1963_v54 = vsel %vm1920_vm14, %v1961_v37, %v1888_v47  ;;  %v1898_v46 = vmul.f32 1.442695, %v4785_v25  ;;  %vm2487_vm14 = vcmask 1046528  }
 0x3a4   : > { %1967 = vrot.lane.b32.xlu1 %v1963_v54, %s3338_s30 }
 0x3a5   : > { %v4453_v33 = vadd.f32 %v2331_v35, %v1700_v43  ;;  %v3256_v35 = vpop.eup %3255  ;;  %3269 = vpow2.f32 %v1898_v46 }
 0x3a6   : > { %v1717_v44 = vpop.xlane.xlu0 %1716  ;;  %v1714_v16 = vpop.xlane.xlu1 %1713 }
 0x3a7   : > { %v2356_v62 = vmul.f32 %v3254_v30, %v4453_v33  ;;  %v1742_v15 = vmul.f32 %v1740_v49, %v1717_v44  ;;  %v1741_v2 = vmul.f32 %v1740_v49, %v1714_v16  ;;  %v3258_v1 = vpop.eup %3257  ;;  %v1824_v49 = vrot.slane %v1032_v5, %v4771_v19 }
 0x3a8   : > { %v3260_v61 = vpop.eup %3259 }
 0x3a9   : > { %v4460_v34 = vadd.f32 %v2356_v62, %v1742_v15  ;;  %v4463_v50 = vadd.f32 %v2355_v57, %v1741_v2  ;;  %v3262_v57 = vpop.eup %3261  ;;  %v1866_v15 = vrot.slane %v1032_v5, %v4772_v32 }
 0x3aa   : > { %v1759_v18 = vpop.xlane.xlu0 %1758  ;;  %v1756_v43 = vpop.xlane.xlu1 %1755 }
 0x3ab   : > { %v2381_v29 = vmul.f32 %v3256_v35, %v4460_v34  ;;  %v1784_v37 = vmul.f32 %v1782_v12, %v1759_v18  ;;  %v1783_v47 = vmul.f32 %v1782_v12, %v1756_v43  ;;  %v2380_v54 = vmul.f32 %v3258_v1, %v4463_v50  ;;  %v3264_v2 = vpop.eup %3263 }
 0x3ac   : > { %v3266_v19 = vpop.eup %3265 }
 0x3ad   : > { %v4467_v58 = vadd.f32 %v2381_v29, %v1784_v37  ;;  %v4470_v59 = vadd.f32 %v2380_v54, %v1783_v47  ;;  %v1908_v47 = vrot.slane %v1032_v5, %v4773_v63 }
 0x3ae   : > { %v1801_v31 = vpop.xlane.xlu0 %1800  ;;  %v1798_v44 = vpop.xlane.xlu1 %1797 }
 0x3af   : > { %v1826_v30 = vmul.f32 %v1824_v49, %v1801_v31  ;;  %v2406_v25 = vmul.f32 %v3260_v61, %v4467_v58  ;;  %v1825_v46 = vmul.f32 %v1824_v49, %v1798_v44  ;;  %v2405_v62 = vmul.f32 %v3262_v57, %v4470_v59  ;;  %v3268_v49 = vpop.eup %3267 }
 0x3b1   : > { %v4475_v16 = vadd.f32 %v2406_v25, %v1826_v30  ;;  %v4477_v35 = vadd.f32 %v2405_v62, %v1825_v46 }
 0x3b2   : > { %v1843_v12 = vpop.xlane.xlu0 %1842  ;;  %v1840_v1 = vpop.xlane.xlu1 %1839 }
 0x3b3   : > { %v1868_v18 = vmul.f32 %v1866_v15, %v1843_v12  ;;  %v2431_v29 = vmul.f32 %v3264_v2, %v4475_v16  ;;  %v1867_v37 = vmul.f32 %v1866_v15, %v1840_v1  ;;  %v2430_v43 = vmul.f32 %v3266_v19, %v4477_v35  ;;  %v3270_v31 = vpop.eup %3269 }
 0x3b4   : > { %v3339_v19 = vmov 10   ;;  %v3341_v1 = vmov 3  }
 0x3b5   : > { %v4482_v54 = vadd.f32 %v2431_v29, %v1868_v18  ;;  %v4484_v61 = vadd.f32 %v2430_v43, %v1867_v37  ;;  %v3340_v18 = vmov 1   ;;  %v3344_v29 = vmov 12  }
 0x3b6   : > { %v1885_v32 = vpop.xlane.xlu0 %1884  ;;  %v1882_v30 = vpop.xlane.xlu1 %1881  ;;  %v3345_v37 = vmov 13   ;;  %v3346_v43 = vmov 9  }
 0x3b7   : > { %v1910_v57 = vmul.f32 %v1908_v47, %v1885_v32  ;;  %v2456_v44 = vmul.f32 %v3268_v49, %v4482_v54  ;;  %v1909_v25 = vmul.f32 %v1908_v47, %v1882_v30  ;;  %v2455_v46 = vmul.f32 %v3270_v31, %v4484_v61 }
 0x3b8   : > { %v3347_v47 = vmov 6   ;;  %v3348_v49 = vmov 16   ;;  %v3349_v32 = vmov 2   ;;  %v3350_v31 = vmov 17  }
 0x3b9   : > { %v4488_v62 = vadd.f32 %v2456_v44, %v1910_v57  ;;  %v4490_v15 = vadd.f32 %v2455_v46, %v1909_v25  ;;  %v3351_v57 = vmov 15   ;;  %v3352_v30 = vmov 18  }
 0x3ba   : > { %v3353_v44 = vmov 19   ;;  %v3354_v25 = vmov 11   ;;  %v3355_v46 = vmov 5  }
 0x412   : > { %v1970_v63 = vpop.permute.xlu0 %1969 }
 0x413   : > { %v4493_v5 = vsel %vm1973_vm2, %v4370_v8, %v1970_v63  ;;  %v3342_v8 = vmov 4   ;;  %v3356_v63 = vmov 14  }
 0x414   : > { %1991 = vperm.xlu0 %3110, %v4493_v5  }
 0x416   : > { %v1968_v2 = vpop.permute.xlu1 %1967 }
 0x417   : > { %v4497_v12 = vsel %vm1973_vm2, %v4372_v42, %v1968_v2  ;;  %v3343_v42 = vmov 8   ;;  %v3357_v2 = vmov 7  }
 0x418   : > { %3115 = vset.pattern.permute.xlu0 %v3339_v19  ;;  %1986 = vperm.xlu1 %3109, %v4497_v12  }
 0x419   : > { %2237 = vperm.xlu0 %3115, %v4497_v12  }
 0x41c   : > { %3111 = vset.pattern.permute.xlu1 %v3340_v18 }
 0x41d   : > { %3118 = vset.pattern.permute.xlu0 %v3341_v1  ;;  %2012 = vperm.xlu1 %3111, %v4497_v12  }
 0x41e   : > { %2066 = vperm.xlu0 %3118, %v4493_v5  }
 0x421   : > { %2016 = vperm.xlu1 %3111, %v4493_v5  }
 0x422   : > { %3120 = vset.pattern.permute.xlu0 %v3342_v8 }
 0x423   : > { %2087 = vperm.xlu0 %3120, %v4497_v12  }
 0x425   : > { %3112 = vset.pattern.permute.xlu1 %v3343_v42 }
 0x426   : > { %2187 = vperm.xlu1 %3112, %v4497_v12  }
 0x427   : > { %3123 = vset.pattern.permute.xlu0 %v3344_v29 }
 0x428   : > { %2291 = vperm.xlu0 %3123, %v4493_v5  }
 0x42a   : > { %2191 = vperm.xlu1 %3112, %v4493_v5  }
 0x42c   : > { %3125 = vset.pattern.permute.xlu0 %v3345_v37 }
 0x42d   : > { %2312 = vperm.xlu0 %3125, %v4497_v12  }
 0x42e   : > { %3113 = vset.pattern.permute.xlu1 %v3346_v43 }
 0x42f   : > { %2212 = vperm.xlu1 %3113, %v4497_v12  }
 0x431   : > { %3128 = vset.pattern.permute.xlu0 %v3347_v47 }
 0x432   : > { %2141 = vperm.xlu0 %3128, %v4493_v5  }
 0x433   : > { %2216 = vperm.xlu1 %3113, %v4493_v5  }
 0x436   : > { %3130 = vset.pattern.permute.xlu0 %v3348_v49 }
 0x437   : > { %2387 = vperm.xlu0 %3130, %v4497_v12   ;;  %3114 = vset.pattern.permute.xlu1 %v3349_v32 }
 0x438   : > { %2037 = vperm.xlu1 %3114, %v4497_v12  }
 0x43b   : > { %3133 = vset.pattern.permute.xlu0 %v3350_v31 }
 0x43c   : > { %2416 = vperm.xlu0 %3133, %v4493_v5   ;;  %2041 = vperm.xlu1 %3114, %v4493_v5  }
 0x440   : > { %3135 = vset.pattern.permute.xlu0 %v3351_v57  ;;  %3116 = vset.pattern.permute.xlu1 %v3339_v19 }
 0x441   : > { %2362 = vperm.xlu0 %3135, %v4497_v12   ;;  %2241 = vperm.xlu1 %3116, %v4493_v5  }
 0x445   : > { %3138 = vset.pattern.permute.xlu0 %v3352_v30  ;;  %3117 = vset.pattern.permute.xlu1 %v3341_v1 }
 0x446   : > { %2441 = vperm.xlu0 %3138, %v4493_v5   ;;  %2062 = vperm.xlu1 %3117, %v4497_v12  }
 0x44a   : > { %3140 = vset.pattern.permute.xlu0 %v3353_v44  ;;  %3119 = vset.pattern.permute.xlu1 %v3354_v25  ;;  %v3155_v25 = vld [vmem:[%s3512_s1 + $0x28] sm:$0xff]  }
 0x44b   : > { %2262 = vperm.xlu1 %3119, %v4497_v12  }
 0x44f   : > { %2266 = vperm.xlu1 %3119, %v4493_v5  }
 0x453   : > { %3121 = vset.pattern.permute.xlu1 %v3342_v8 }
 0x454   : > { %2091 = vperm.xlu1 %3121, %v4493_v5  }
 0x458   : > { %3122 = vset.pattern.permute.xlu1 %v3344_v29 }
 0x459   : > { %2287 = vperm.xlu1 %3122, %v4497_v12  }
 0x45d   : > { %3124 = vset.pattern.permute.xlu1 %v3355_v46 }
 0x45e   : > { %2112 = vperm.xlu1 %3124, %v4497_v12  }
 0x462   : > { %2116 = vperm.xlu1 %3124, %v4493_v5  }
 0x466   : > { %3126 = vset.pattern.permute.xlu1 %v3345_v37 }
 0x467   : > { %2316 = vperm.xlu1 %3126, %v4493_v5  }
 0x46b   : > { %3127 = vset.pattern.permute.xlu1 %v3347_v47 }
 0x46c   : > { %2137 = vperm.xlu1 %3127, %v4497_v12  }
 0x470   : > { %3129 = vset.pattern.permute.xlu1 %v3356_v63 }
 0x471   : > { %2337 = vperm.xlu1 %3129, %v4497_v12  }
 0x475   : > { %2341 = vperm.xlu1 %3129, %v4493_v5  }
 0x479   : > { %3131 = vset.pattern.permute.xlu1 %v3348_v49 }
 0x47a   : > { %2391 = vperm.xlu1 %3131, %v4493_v5  }
 0x47e   : > { %3132 = vset.pattern.permute.xlu1 %v3350_v31  ;;  %v3153_v31 = vld [vmem:[%s3512_s1 + $0x38] sm:$0xff]  }
 0x47f   : > { %2412 = vperm.xlu1 %3132, %v4497_v12   ;;  %3011 = vmatprep.subr.bf16.mxu0 %v3153_v31 }
 0x480   : > { %3012 = vmatpush3.bf16.msra.mxu0 %v3153_v31  ;;  %v3158_v31 = vld [vmem:[%s3512_s1 + $0x10] sm:$0xff]  }
 0x483   : > { %3134 = vset.pattern.permute.xlu1 %v3357_v2 }
 0x484   : > { %2162 = vperm.xlu1 %3134, %v4497_v12  }
 0x488   : > { %2166 = vperm.xlu1 %3134, %v4493_v5  }
 0x48c   : > { %3136 = vset.pattern.permute.xlu1 %v3351_v57  ;;  %v3154_v57 = vld [vmem:[%s3512_s1 + $0x30] sm:$0xff]  }
 0x48d   : > { %2366 = vperm.xlu1 %3136, %v4493_v5   ;;  %3013 = vmatprep.subr.bf16.mxu0 %v3154_v57 }
 0x48e   : > { %3014 = vmatpush3.bf16.msra.mxu0 %v3154_v57 }
 0x48f   : > { %v1992_v19 = vpop.permute.xlu0 %1991  ;;  %3015 = vmatprep.subr.bf16.mxu0 %v3155_v25 }
 0x490   : > { %v1995_v1 = vmul.f32 %v1992_v19, %v4235_v60 }
 0x491   : > { %3137 = vset.pattern.permute.xlu1 %v3352_v30 }
 0x492   : > { %2437 = vperm.xlu1 %3137, %v4497_v12   ;;  %3016 = vmatpush3.bf16.msra.mxu0 %v3155_v25 }
 0x493   : > { %v1987_v18 = vpop.permute.xlu1 %1986 }
 0x494   : > { %v1994_v8 = vmul.f32 %v1987_v18, %v4247_v53 }
 0x496   : > { %v1996_v42 = vadd.f32 %v1995_v1, %v1994_v8  ;;  %3139 = vset.pattern.permute.xlu1 %v3353_v44  ;;  %v3156_v1 = vld [vmem:[%s3512_s1 + $0x20] sm:$0xff]  }
 0x497   : > { %2462 = vperm.xlu1 %3139, %v4497_v12   ;;  %3017 = vmatprep.subr.bf16.mxu0 %v3156_v1 }
 0x498   : > { %v1997_v29 = vrot.slane %v1996_v42, 4  ;;  %v2013_v37 = vpop.permute.xlu1 %2012  ;;  %3018 = vmatpush3.bf16.msra.mxu0 %v3156_v1 }
 0x499   : > { %v2019_v43 = vmul.f32 %v2013_v37, %v4263_v51 }
 0x49a   : > { %v1998_v47 = vadd.f32 %v1997_v29, %v1996_v42  ;;  %v3157_v29 = vld [vmem:[%s3512_s1 + $0x18] sm:$0xff]  }
 0x49b   : > { %2466 = vperm.xlu1 %3139, %v4493_v5   ;;  %3019 = vmatprep.subr.bf16.mxu0 %v3157_v29 }
 0x49c   : > { %v2017_v49 = vpop.permute.xlu1 %2016  ;;  %v1999_v60 = vrot.slane %v1998_v47, 2  ;;  %3020 = vmatpush3.bf16.msra.mxu0 %v3157_v29 }
 0x49d   : > { %v2020_v32 = vmul.f32 %v2017_v49, %v4258_v28  ;;  %3021 = vmatprep.subr.bf16.mxu0 %v3158_v31 }
 0x49e   : > { %v2000_v51 = vadd.f32 %v1999_v60, %v1998_v47 }
 0x49f   : > { %v2021_v30 = vadd.f32 %v2020_v32, %v2019_v43 }
 0x4a0   : > { %v2001_v2 = vrot.slane %v2000_v51, 1  ;;  %3022 = vmatpush3.bf16.msra.mxu0 %v3158_v31 }
 0x4a1   : > { %v2022_v53 = vrot.slane %v2021_v30, 4  ;;  %v2188_v44 = vpop.permute.xlu1 %2187 }
 0x4a2   : > { %v2194_v12 = vmul.f32 %v2188_v44, %v4387_v14  ;;  %v2002_v37 = vadd.f32 %v2001_v2, %v2000_v51  ;;  %v2238_v2 = vpop.permute.xlu0 %2237 }
 0x4a3   : > { %v2023_v46 = vadd.f32 %v2022_v53, %v2021_v30  ;;  %v3159_v53 = vld [vmem:[%s3512_s1 + $0x8] sm:$0xff]  }
 0x4a4   : > { %3023 = vmatprep.subr.bf16.mxu0 %v3159_v53 }
 0x4a5   : > { %v2024_v5 = vrot.slane %v2023_v46, 2  ;;  %v2192_v63 = vpop.permute.xlu1 %2191  ;;  %3024 = vmatpush3.bf16.msra.mxu0 %v3159_v53 }
 0x4a6   : > { %v2195_v28 = vmul.f32 %v2192_v63, %v4383_v40 }
 0x4a7   : > { %v2025_v19 = vadd.f32 %v2024_v5, %v2023_v46  ;;  %v3160_v46 = vld [vmem:[%s3512_s1] sm:$0xff]  }
 0x4a8   : > { %v2196_v18 = vadd.f32 %v2195_v28, %v2194_v12  ;;  %3025 = vmatprep.subr.bf16.mxu0 %v3160_v46 }
 0x4a9   : > { %v2026_v8 = vrot.slane %v2025_v19, 1  ;;  %3026 = vmatpush3.bf16.msra.mxu0 %v3160_v46 }
 0x4aa   : > { %v2197_v42 = vrot.slane %v2196_v18, 4  ;;  %v2213_v14 = vpop.permute.xlu1 %2212 }
 0x4ab   : > { %v2027_v43 = vadd.f32 %v2026_v8, %v2025_v19  ;;  %v2219_v47 = vmul.f32 %v2213_v14, %v4398_v56 }
 0x4ac   : > { %v2198_v40 = vadd.f32 %v2197_v42, %v2196_v18 }
 0x4ad   : > { %v2478_v49 = vsel %vm797_vm4, %v2002_v37, %v2027_v43 }
 0x4ae   : > { %v2217_v32 = vpop.permute.xlu1 %2216  ;;  %v2199_v60 = vrot.slane %v2198_v40, 2 }
 0x4af   : > { %v2220_v57 = vmul.f32 %v2217_v32, %v4394_v23 }
 0x4b0   : > { %v2200_v56 = vadd.f32 %v2199_v60, %v2198_v40 }
 0x4b1   : > { %v2221_v30 = vadd.f32 %v2220_v57, %v2219_v47  ;;  %v2067_v47 = vpop.permute.xlu0 %2066 }
 0x4b2   : > { %v2201_v23 = vrot.slane %v2200_v56, 1  ;;  %v2070_v60 = vmul.f32 %v2067_v47, %v4278_v52 }
 0x4b3   : > { %v2222_v44 = vrot.slane %v2221_v30, 4  ;;  %v2038_v12 = vpop.permute.xlu1 %2037 }
 0x4b4   : > { %v2044_v25 = vmul.f32 %v2038_v12, %v4273_v24  ;;  %v2244_v24 = vmul.f32 %v2238_v2, %v4407_v36  ;;  %v2202_v14 = vadd.f32 %v2201_v23, %v2200_v56 }
 0x4b5   : > { %v2223_v51 = vadd.f32 %v2222_v44, %v2221_v30 }
 0x4b7   : > { %v2224_v5 = vrot.slane %v2223_v51, 2  ;;  %v2042_v63 = vpop.permute.xlu1 %2041 }
 0x4b8   : > { %v2045_v28 = vmul.f32 %v2042_v63, %v4270_v27 }
 0x4b9   : > { %v2225_v19 = vadd.f32 %v2224_v5, %v2223_v51 }
 0x4ba   : > { %v2046_v18 = vadd.f32 %v2045_v28, %v2044_v25 }
 0x4bb   : > { %v2226_v1 = vrot.slane %v2225_v19, 1 }
 0x4bc   : > { %v2047_v8 = vrot.slane %v2046_v18, 4  ;;  %v2242_v42 = vpop.permute.xlu1 %2241 }
 0x4bd   : > { %v2227_v29 = vadd.f32 %v2226_v1, %v2225_v19  ;;  %v2245_v37 = vmul.f32 %v2242_v42, %v4403_v6 }
 0x4be   : > { %v2048_v43 = vadd.f32 %v2047_v8, %v2046_v18 }
 0x4bf   : > { %v2489_v27 = vsel %vm797_vm4, %v2202_v14, %v2227_v29  ;;  %v2246_v40 = vadd.f32 %v2245_v37, %v2244_v24 }
 0x4c0   : > { %v2049_v32 = vrot.slane %v2048_v43, 2 }
 0x4c1   : > { %v2247_v31 = vrot.slane %v2246_v40, 4  ;;  %v2063_v57 = vpop.permute.xlu1 %2062 }
 0x4c2   : > { %v2050_v30 = vadd.f32 %v2049_v32, %v2048_v43  ;;  %v2069_v53 = vmul.f32 %v2063_v57, %v4282_v20  ;;  %v2088_v20 = vpop.permute.xlu0 %2087 }
 0x4c3   : > { %v2248_v44 = vadd.f32 %v2247_v31, %v2246_v40  ;;  %v2094_v37 = vmul.f32 %v2088_v20, %v4290_v21 }
 0x4c4   : > { %v2051_v36 = vrot.slane %v2050_v30, 1  ;;  %v2071_v12 = vadd.f32 %v2070_v60, %v2069_v53 }
 0x4c5   : > { %v2249_v25 = vrot.slane %v2248_v44, 2 }
 0x4c6   : > { %v2052_v56 = vadd.f32 %v2051_v36, %v2050_v30  ;;  %v2072_v6 = vrot.slane %v2071_v12, 4  ;;  %v2263_v51 = vpop.permute.xlu1 %2262  ;;  %v2292_v40 = vpop.permute.xlu0 %2291 }
 0x4c7   : > { %v2250_v46 = vadd.f32 %v2249_v25, %v2248_v44  ;;  %v2269_v52 = vmul.f32 %v2263_v51, %v4415_v38  ;;  %v2295_v60 = vmul.f32 %v2292_v40, %v4419_v26 }
 0x4c8   : > { %v2479_v5 = vsel %vm817_vm5, %v2478_v49, %v2052_v56  ;;  %v2073_v63 = vadd.f32 %v2072_v6, %v2071_v12 }
 0x4c9   : > { %v2251_v28 = vrot.slane %v2250_v46, 1 }
 0x4ca   : > { %v2074_v2 = vrot.slane %v2073_v63, 2  ;;  %v2267_v23 = vpop.permute.xlu1 %2266 }
 0x4cb   : > { %v2252_v19 = vadd.f32 %v2251_v28, %v2250_v46  ;;  %v2270_v18 = vmul.f32 %v2267_v23, %v4411_v22 }
 0x4cc   : > { %v2075_v1 = vadd.f32 %v2074_v2, %v2073_v63  ;;  %v2313_v2 = vpop.permute.xlu0 %2312 }
 0x4cd   : > { %v2490_v8 = vsel %vm817_vm5, %v2489_v27, %v2252_v19  ;;  %v2271_v42 = vadd.f32 %v2270_v18, %v2269_v52 }
 0x4ce   : > { %v2076_v24 = vrot.slane %v2075_v1, 1 }
 0x4cf   : > { %v2272_v14 = vrot.slane %v2271_v42, 4  ;;  %v2092_v29 = vpop.permute.xlu1 %2091 }
 0x4d0   : > { %v2077_v49 = vadd.f32 %v2076_v24, %v2075_v1  ;;  %v2095_v43 = vmul.f32 %v2092_v29, %v4286_v17  ;;  %v2142_v29 = vpop.permute.xlu0 %2141 }
 0x4d1   : > { %v2273_v47 = vadd.f32 %v2272_v14, %v2271_v42 }
 0x4d2   : > { %v2480_v32 = vsel %vm837_vm6, %v2479_v5, %v2077_v49  ;;  %v2096_v38 = vadd.f32 %v2095_v43, %v2094_v37 }
 0x4d3   : > { %v2274_v31 = vrot.slane %v2273_v47, 2 }
 0x4d4   : > { %v2097_v22 = vrot.slane %v2096_v38, 4  ;;  %v2288_v57 = vpop.permute.xlu1 %2287 }
 0x4d5   : > { %v2275_v27 = vadd.f32 %v2274_v31, %v2273_v47  ;;  %v2294_v30 = vmul.f32 %v2288_v57, %v4423_v45  ;;  %v2145_v47 = vmul.f32 %v2142_v29, %v4302_v55 }
 0x4d6   : > { %v2098_v53 = vadd.f32 %v2097_v22, %v2096_v38  ;;  %v4786_v38 = vld [vmem:[#allocation17_spill] sm:$0xff] }
 0x4d7   : > { %v2276_v44 = vrot.slane %v2275_v27, 1  ;;  %v2296_v36 = vadd.f32 %v2295_v60, %v2294_v30  ;;  %v1033_v31 = vsub.f32 0.0, %v4786_v38 }
 0x4d8   : > { %v2099_v21 = vrot.slane %v2098_v53, 2 }
 0x4d9   : > { %v2277_v12 = vadd.f32 %v2276_v44, %v2275_v27  ;;  %v2297_v25 = vrot.slane %v2296_v36, 4  ;;  %v2113_v17 = vpop.permute.xlu1 %2112 }
 0x4da   : > { %v2100_v56 = vadd.f32 %v2099_v21, %v2098_v53  ;;  %v2119_v26 = vmul.f32 %v2113_v17, %v4298_v3  ;;  %v1036_v53 = vmul.f32 1.442695, %v1033_v31 }
 0x4db   : > { %v2491_v6 = vsel %vm837_vm6, %v2490_v8, %v2277_v12  ;;  %v2298_v51 = vadd.f32 %v2297_v25, %v2296_v36  ;;  %v2319_v8 = vmul.f32 %v2313_v2, %v4430_v7  ;;  %v4787_v36 = vld [vmem:[#allocation18_spill] sm:$0xff] }
 0x4dc   : > { %v2101_v46 = vrot.slane %v2100_v56, 1  ;;  %v1034_v21 = vsub.f32 0.0, %v4787_v36  ;;  %3271 = vpow2.f32 %v1036_v53 }
 0x4dd   : > { %v2299_v5 = vrot.slane %v2298_v51, 2  ;;  %v2117_v63 = vpop.permute.xlu1 %2116 }
 0x4de   : > { %v2102_v28 = vadd.f32 %v2101_v46, %v2100_v56  ;;  %v2120_v45 = vmul.f32 %v2117_v63, %v4294_v0  ;;  %v1038_v46 = vmul.f32 1.442695, %v1034_v21 }
 0x4df   : > { %v2300_v23 = vadd.f32 %v2299_v5, %v2298_v51  ;;  %v2388_v5 = vpop.permute.xlu0 %2387 }
 0x4e0   : > { %v2482_v19 = vsel %vm2481_vm3, %v2480_v32, %v2102_v28  ;;  %v2121_v52 = vadd.f32 %v2120_v45, %v2119_v26  ;;  %3273 = vpow2.f32 %v1038_v46 }
 0x4e1   : > { %v2301_v18 = vrot.slane %v2300_v23, 1 }
 0x4e2   : > { %v2122_v20 = vrot.slane %v2121_v52, 4  ;;  %v2317_v1 = vpop.permute.xlu1 %2316 }
 0x4e3   : > { %v2302_v42 = vadd.f32 %v2301_v18, %v2300_v23  ;;  %v2320_v24 = vmul.f32 %v2317_v1, %v4427_v41 }
 0x4e4   : > { %v2123_v14 = vadd.f32 %v2122_v20, %v2121_v52 }
 0x4e5   : > { %v2492_v37 = vsel %vm2481_vm3, %v2491_v6, %v2302_v42  ;;  %v2321_v3 = vadd.f32 %v2320_v24, %v2319_v8 }
 0x4e6   : > { %v2124_v49 = vrot.slane %v2123_v14, 2 }
 0x4e7   : > { %v2322_v0 = vrot.slane %v2321_v3, 4  ;;  %v2138_v43 = vpop.permute.xlu1 %2137 }
 0x4e8   : > { %v2125_v40 = vadd.f32 %v2124_v49, %v2123_v14  ;;  %v2144_v32 = vmul.f32 %v2138_v43, %v4306_v4 }
 0x4e9   : > { %v2323_v22 = vadd.f32 %v2322_v0, %v2321_v3  ;;  %v4788_v3 = vld [vmem:[#allocation19_spill] sm:$0xff] }
 0x4ea   : > { %v2126_v7 = vrot.slane %v2125_v40, 1  ;;  %v2146_v57 = vadd.f32 %v2145_v47, %v2144_v32  ;;  %v1035_v49 = vsub.f32 0.0, %v4788_v3 }
 0x4eb   : > { %v2324_v41 = vrot.slane %v2323_v22, 2 }
 0x4ec   : > { %v2127_v60 = vadd.f32 %v2126_v7, %v2125_v40  ;;  %v2147_v27 = vrot.slane %v2146_v57, 4  ;;  %v2338_v30 = vpop.permute.xlu1 %2337 }
 0x4ed   : > { %v2325_v44 = vadd.f32 %v2324_v41, %v2323_v22  ;;  %v2344_v6 = vmul.f32 %v2338_v30, %v4436_v9  ;;  %v2417_v9 = vpop.permute.xlu0 %2416  ;;  %v1040_v22 = vmul.f32 1.442695, %v1035_v49 }
 0x4ee   : > { %v2484_v12 = vsel %vm2483_vm12, %v2482_v19, %v2127_v60  ;;  %v2148_v55 = vadd.f32 %v2147_v27, %v2146_v57  ;;  %v2394_v19 = vmul.f32 %v2388_v5, %v4470_v59  ;;  %v2420_v14 = vmul.f32 %v2417_v9, %v4475_v16 }
 0x4ef   : > { %v2326_v25 = vrot.slane %v2325_v44, 1  ;;  %3275 = vpow2.f32 %v1040_v22 }
 0x4f0   : > { %v2149_v17 = vrot.slane %v2148_v55, 2  ;;  %v2342_v4 = vpop.permute.xlu1 %2341 }
 0x4f1   : > { %v2327_v56 = vadd.f32 %v2326_v25, %v2325_v44  ;;  %v2345_v51 = vmul.f32 %v2342_v4, %v4453_v33  ;;  %v2363_v44 = vpop.permute.xlu0 %2362 }
 0x4f2   : > { %v2150_v63 = vadd.f32 %v2149_v17, %v2148_v55 }
 0x4f3   : > { %v2493_v28 = vsel %vm2483_vm12, %v2492_v37, %v2327_v56  ;;  %v2346_v26 = vadd.f32 %v2345_v51, %v2344_v6  ;;  %v2369_v6 = vmul.f32 %v2363_v44, %v4463_v50 }
 0x4f4   : > { %v2151_v45 = vrot.slane %v2150_v63, 1 }
 0x4f5   : > { %v2347_v2 = vrot.slane %v2346_v26, 4  ;;  %v2392_v23 = vpop.permute.xlu1 %2391 }
 0x4f6   : > { %v2152_v52 = vadd.f32 %v2151_v45, %v2150_v63  ;;  %v2395_v18 = vmul.f32 %v2392_v23, %v4467_v58  ;;  %v3272_v58 = vpop.eup %3271  ;;  %v2442_v63 = vpop.permute.xlu0 %2441 }
 0x4f7   : > { %v2348_v20 = vadd.f32 %v2347_v2, %v2346_v26  ;;  %v1042_v7 = vadd.f32 1.0, %v3272_v58  ;;  %v3274_v16 = vpop.eup %3273  ;;  %v2445_v23 = vmul.f32 %v2442_v63, %v4482_v54 }
 0x4f8   : > { %v2396_v1 = vadd.f32 %v2395_v18, %v2394_v19  ;;  %v4589_v33 = vsel %vm2485_vm13, %v2484_v12, %v2152_v52  ;;  %v1043_v55 = vadd.f32 1.0, %v3274_v16 }
 0x4f9   : > { %v2349_v8 = vrot.slane %v2348_v20, 2  ;;  %3277 = vrcp.f32 %v1042_v7 }
 0x4fa   : > { %v2397_v42 = vrot.slane %v2396_v1, 4  ;;  %v2413_v24 = vpop.permute.xlu1 %2412  ;;  %3279 = vrcp.f32 %v1043_v55 }
 0x4fb   : > { %v2350_v29 = vadd.f32 %v2349_v8, %v2348_v20  ;;  %v2419_v37 = vmul.f32 %v2413_v24, %v4477_v35 }
 0x4fc   : > { %v2398_v59 = vadd.f32 %v2397_v42, %v2396_v1  ;;  %v3276_v9 = vpop.eup %3275 }
 0x4fd   : > { %v2351_v0 = vrot.slane %v2350_v29, 1  ;;  %v2421_v43 = vadd.f32 %v2420_v14, %v2419_v37  ;;  %v1044_v37 = vadd.f32 1.0, %v3276_v9 }
 0x4fe   : > { %v2399_v47 = vrot.slane %v2398_v59, 2 }
 0x4ff   : > { %v2352_v40 = vadd.f32 %v2351_v0, %v2350_v29  ;;  %v2422_v32 = vrot.slane %v2421_v43, 4  ;;  %v2163_v31 = vpop.permute.xlu1 %2162  ;;  %3281 = vrcp.f32 %v1044_v37 }
 0x500   : > { %v2400_v57 = vadd.f32 %v2399_v47, %v2398_v59  ;;  %v2169_v35 = vmul.f32 %v2163_v31, %v4312_v48 }
 0x501   : > { %v2423_v41 = vadd.f32 %v2422_v32, %v2421_v43  ;;  %v2494_v60 = vsel %vm2485_vm13, %v2493_v28, %v2352_v40 }
 0x502   : > { %v2401_v21 = vrot.slane %v2400_v57, 1 }
 0x503   : > { %v2424_v27 = vrot.slane %v2423_v41, 2  ;;  %v2167_v30 = vpop.permute.xlu1 %2166 }
 0x504   : > { %v2170_v53 = vmul.f32 %v2167_v30, %v4310_v10  ;;  %v2402_v51 = vadd.f32 %v2401_v21, %v2400_v57 }
 0x505   : > { %v2425_v12 = vadd.f32 %v2424_v27, %v2423_v41 }
 0x506   : > { %v2171_v25 = vadd.f32 %v2170_v53, %v2169_v35  ;;  %v3278_v8 = vpop.eup %3277 }
 0x507   : > { %v2426_v17 = vrot.slane %v2425_v12, 1  ;;  %v1051_v59 = vmul.f32 %v3278_v8, %v4786_v38  ;;  %v3280_v40 = vpop.eup %3279 }
 0x508   : > { %v2172_v4 = vrot.slane %v2171_v25, 4  ;;  %v2367_v56 = vpop.permute.xlu1 %2366  ;;  %v1052_v38 = vmul.f32 %v3280_v40, %v4787_v36 }
 0x509   : > { %v2427_v46 = vadd.f32 %v2426_v17, %v2425_v12  ;;  %v2370_v5 = vmul.f32 %v2367_v56, %v4460_v34  ;;  %v2974_v34 = vld [vmem:[%s594_s12] ss:$0 sm:$0xff]  ;;  %s4796_s12 = sld [smem:[#allocation43_spill]] (!%p2983_p8) }
 0x50a   : > { %v2173_v48 = vadd.f32 %v2172_v4, %v2171_v25  ;;  %v2506_v54 = vmul.f32 %v2974_v34, %v4774_v39  ;;  %v2507_v39 = vmul.f32 %v2974_v34, %v4779_v11  ;;  %v2508_v17 = vmul.f32 %v2974_v34, %v4782_v13 }
 0x50b   : > { %v2496_v10 = vsel %vm797_vm4, %v2402_v51, %v2427_v46  ;;  %v2371_v28 = vadd.f32 %v2370_v5, %v2369_v6 }
 0x50c   : > { %v2174_v26 = vrot.slane %v2173_v48, 2  ;;  %v3282_v55 = vpop.eup %3281 }
 0x50d   : > { %v2372_v45 = vrot.slane %v2371_v28, 4  ;;  %v2438_v2 = vpop.permute.xlu1 %2437  ;;  %v1053_v36 = vmul.f32 %v3282_v55, %v4788_v3 }
 0x50e   : > { %v2175_v19 = vadd.f32 %v2174_v26, %v2173_v48  ;;  %v2444_v52 = vmul.f32 %v2438_v2, %v4484_v61 }
 0x50f   : > { %v2373_v50 = vadd.f32 %v2372_v45, %v2371_v28 }
 0x510   : > { %v2176_v18 = vrot.slane %v2175_v19, 1  ;;  %v2446_v20 = vadd.f32 %v2445_v23, %v2444_v52 }
 0x511   : > { %v2374_v1 = vrot.slane %v2373_v50, 2 }
 0x512   : > { %v2177_v42 = vadd.f32 %v2176_v18, %v2175_v19  ;;  %v2447_v24 = vrot.slane %v2446_v20, 4  ;;  %v2463_v14 = vpop.permute.xlu1 %2462 }
 0x513   : > { %v2375_v29 = vadd.f32 %v2374_v1, %v2373_v50  ;;  %v2469_v31 = vmul.f32 %v2463_v14, %v4490_v15 }
 0x514   : > { %v2448_v61 = vadd.f32 %v2447_v24, %v2446_v20  ;;  %v2488_v49 = vsel %vm2487_vm14, %v4589_v33, %v2177_v42 }
 0x515   : > { %v2376_v0 = vrot.slane %v2375_v29, 1  ;;  %v2509_v43 = vadd.f32 %v2506_v54, %v2488_v49 }
 0x516   : > { %v2449_v58 = vrot.slane %v2448_v61, 2  ;;  %v2467_v47 = vpop.permute.xlu1 %2466 }
 0x517   : > { %v2377_v32 = vadd.f32 %v2376_v0, %v2375_v29  ;;  %v2470_v22 = vmul.f32 %v2467_v47, %v4488_v62  ;;  %v2512_v7 = vmul.f32 %v2509_v43, %v1051_v59 }
 0x518   : > { %v2450_v57 = vadd.f32 %v2449_v58, %v2448_v61 }
 0x519   : > { %v2471_v41 = vadd.f32 %v2470_v22, %v2469_v31  ;;  %v2495_v33 = vsel %vm2487_vm14, %v2494_v60, %v2377_v32 }
 0x51a   : > { %v2451_v16 = vrot.slane %v2450_v57, 1  ;;  %v2510_v27 = vadd.f32 %v2507_v39, %v2495_v33 }
 0x51b   : > { %v2472_v30 = vrot.slane %v2471_v41, 4 }
 0x51c   : > { %v2452_v35 = vadd.f32 %v2451_v16, %v2450_v57  ;;  %v2513_v53 = vmul.f32 %v2510_v27, %v1052_v38 }
 0x51d   : > { %v2473_v44 = vadd.f32 %v2472_v30, %v2471_v41 }
 0x51e   : > { %v2497_v15 = vsel %vm817_vm5, %v2496_v10, %v2452_v35  ;;  %v2515_v21 = vpack.c.bf16 %v2513_v53, %v2512_v7 }
 0x51f   : > { %v2474_v62 = vrot.slane %v2473_v44, 2 }
 0x520   : > { %3027 = vmatprep.mubr.bf16.mxu0 %v2515_v21 }
 0x521   : > { %v2475_v12 = vadd.f32 %v2474_v62, %v2473_v44 }
 0x523   : > { %v2476_v11 = vrot.slane %v2475_v12, 1 }
 0x525   : > { %v2477_v25 = vadd.f32 %v2476_v11, %v2475_v12 }
 0x527   : > { %v2498_v60 = vsel %vm837_vm6, %v2497_v15, %v2477_v25 }
 0x528   : > { %v2511_v4 = vadd.f32 %v2508_v17, %v2498_v60 }
 0x52a   : > { %v2514_v56 = vmul.f32 %v2511_v4, %v1053_v36 }
 0x52c   : > { %v2516_v6 = vpack.c.bf16 %v2514_v56, %v2514_v56 }
 0x52e   : > { %3028 = vmatmul.mubr.bf16.vlgmr.msra.gmra.mxu0 %v2516_v6 }
 0x5ee   : > { %v3029_v51 = vpop.f32.mrf.mxu0 }
 0x5ef   : > { %2631 = vst.msk [vmem:[#allocation2 + $0x10] sm:$0xf] %vm4789_vm1, %v3029_v51 }
 0x5f0   : > { %v2615_v46 = vpop.f32.mrf.mxu0 }
 0x5f1   : > { %2629 = vst.msk [vmem:[#allocation2] sm:$0xff] %vm4790_vm7, %v2615_v46  ;;  %2635 = sbr.rel (%p2983_p8) target bundleno = 2259 (0x8d3), region = 80 }
 0x5f2   : > { %v3030_v5 = vpop.f32.mrf.mxu0 }
 0x5f4   : > { %v2618_v48 = vpop.f32.mrf.mxu0 }
 0x5f5   : > { %2630 = vst.msk [vmem:[#allocation2 + $0x8] sm:$0xff] %vm4791_vm8, %v2618_v48 }
 0x5f6   : > { %v4792_v13 = vld [vmem:[#allocation11_spill] sm:$0xff]  ;;  %v4793_v3 = vld [vmem:[#allocation12_spill] sm:$0xff]  ;;  %v4794_v28 = vld [vmem:[#allocation13_spill] sm:$0xff]  ;;  %vm4795_vm9 = vcmask 519168   ;;  %v3358_v20 = vmov 0.0   ;;  %vm3359_vm10 = vmmov 0  }
 0x5f7   : > { %v2636_v63 = vadd.f32 %v2615_v46, %v4792_v13  ;;  %v2637_v10 = vadd.f32 %v2618_v48, %v4793_v3  ;;  %v2638_v26 = vadd.f32 %v3029_v51, %v4794_v28  ;;  %v3283_v18 = vld [vmem:[%s4796_s12 + $0x18] sm:$0xff]   ;;  %3031 = vmatprep.subr.bf16.mxu0 %v3358_v20  ;;  %3039 = vmatprep.mubr.msk.bf16.mxu0 %vm3359_vm10, %v3358_v20  ;;  %v3284_v9 = vld [vmem:[%s4796_s12 + $0x10] sm:$0xff]   ;;  %v3285_v1 = vld [vmem:[%s4796_s12 + $0x8] sm:$0xff]  }
 0x5f8   : > { %3032 = vmatpush3.bf16.msra.mxu0 %v3283_v18  ;;  %v3286_v8 = vld [vmem:[%s4796_s12] sm:$0xff]  }
 0x5f9   : > { %v2640_v45 = vrot.slane %v2636_v63, 4  ;;  %v2643_v2 = vrot.slane %v2637_v10, 4  ;;  %3033 = vmatprep.subr.bf16.mxu0 %v3358_v20  ;;  %v2984_v29 = vld [vmem:[%s4797_s2] ss:$0 sm:$0xff] }
 0x5fa   : > { %v2756_v30 = vld [vmem:[%s4799_s17] sm:$0xf] }
 0x5fb   : > { %v2645_v23 = vsel %vm797_vm4, %v2640_v45, %v2637_v10  ;;  %vm4798_vm4 = vcmask 523264  }
 0x5fc   : > { %v2646_v19 = vsel %vm817_vm5, %v2645_v23, %v2643_v2  ;;  %3034 = vmatpush3.bf16.msra.mxu0 %v3284_v9  ;;  %vm2741_vm5 = vcmask 125952  }
 0x5fd   : > { %v2647_v52 = vsel %vm837_vm6, %v2646_v19, %v2638_v26  ;;  %3035 = vmatprep.subr.bf16.mxu0 %v3358_v20 }
 0x5fe   : > { %v2648_v50 = vmul.f32 %v2647_v52, %v2647_v52 }
 0x600   : > { %v2649_v34 = vsel %vm4795_vm9, %v2648_v50, 0.0  ;;  %3036 = vmatpush3.bf16.msra.mxu0 %v3285_v1 }
 0x601   : > { %2650 = vadd.xlane.f32.xlu0 %v2649_v34  ;;  %3037 = vmatprep.subr.bf16.mxu0 %v3358_v20 }
 0x604   : > { %3038 = vmatpush3.bf16.msra.mxu0 %v3286_v8 }
 0x68a   : > { %v2651_v42 = vpop.xlane.xlu0 %2650 }
 0x68b   : > { %v2652_v24 = vmul.f32 0.015625, %v2651_v42 }
 0x68d   : > { %v2653_v14 = vadd.f32 1e-05, %v2652_v24 }
 0x68f   : > { %3287 = vrsqrt.f32 %v2653_v14 }
 0x69c   : > { %v3288_v54 = vpop.eup %3287 }
 0x69d   : > { %v2655_v37 = vmul.f32 %v3288_v54, %v2647_v52 }
 0x69f   : > { %v2663_v61 = vmul.f32 %v2984_v29, %v2655_v37 }
 0x6a1   : > { %v2664_v49 = vpack.c.bf16 %v2663_v61, %v2663_v61 }
 0x6a3   : > { %3040 = vmatmul.mubr.msk.bf16.vlgmr.msra.gmra.mxu0 %vm4798_vm4, %v2664_v49 }
 0x763   : > { %v2734_v59 = vpop.f32.mrf.mxu0 }
 0x764   : > { %v2740_v0 = vmul.f32 %v2734_v59, %v2734_v59 }
 0x765   : > { %v3041_v43 = vpop.f32.mrf.mxu0 }
 0x766   : > { %v2742_v58 = vsel %vm2741_vm5, %v2740_v0, 0.0 }
 0x767   : > { %2743 = vadd.xlane.f32.xlu0 %v2742_v58  ;;  %v2737_v47 = vpop.f32.mrf.mxu0 }
 0x769   : > { %v3042_v40 = vpop.f32.mrf.mxu0 }
 0x7f0   : > { %v2744_v32 = vpop.xlane.xlu0 %2743 }
 0x7f1   : > { %v2745_v31 = vsel %vm2481_vm3, %v2744_v32, 0.0 }
 0x7f2   : > { %v2746_v22 = vrot.slane %v2745_v31, 4 }
 0x7f4   : > { %v2747_v7 = vadd.f32 %v2746_v22, %v2745_v31 }
 0x7f6   : > { %v2748_v39 = vrot.slane %v2747_v7, 2 }
 0x7f8   : > { %v2749_v57 = vadd.f32 %v2748_v39, %v2747_v7 }
 0x7fa   : > { %v2750_v41 = vrot.slane %v2749_v57, 1 }
 0x7fc   : > { %v2751_v33 = vadd.f32 %v2750_v41, %v2749_v57 }
 0x7fe   : > { %v2752_v38 = vmul.f32 0.015625, %v2751_v33 }
 0x800   : > { %v2753_v16 = vadd.f32 1e-05, %v2752_v38 }
 0x802   : > { %3289 = vrsqrt.f32 %v2753_v16 }
 0x80f   : > { %v3290_v27 = vpop.eup %3289 }
 0x810   : > { %v2755_v35 = vmul.f32 %v3290_v27, %v2734_v59 }
 0x812   : > { %v2757_v53 = vmul.f32 %v2756_v30, %v2755_v35 }
 0x814   : > { %v2758_v44 = vmul.f32 %v2757_v53, %v2757_v53 }
 0x816   : > { %v2759_v15 = vsel %vm2741_vm5, %v2758_v44, 0.0 }
 0x817   : > { %2760 = vadd.xlane.f32.xlu1 %v2759_v15 }
 0x8a0   : > { %v2761_v21 = vpop.xlane.xlu1 %2760 }
 0x8a1   : > { %v2762_v62 = vsel %vm2481_vm3, %v2761_v21, 0.0 }
 0x8a2   : > { %v2763_v12 = vrot.slane %v2762_v62, 4 }
 0x8a4   : > { %v2764_v11 = vadd.f32 %v2763_v12, %v2762_v62 }
 0x8a6   : > { %v2765_v55 = vrot.slane %v2764_v11, 2 }
 0x8a8   : > { %v2766_v25 = vadd.f32 %v2765_v55, %v2764_v11 }
 0x8aa   : > { %v2767_v17 = vrot.slane %v2766_v25, 1 }
 0x8ac   : > { %v2768_v60 = vadd.f32 %v2767_v17, %v2766_v25 }
 0x8ae   : > { %3291 = vrsqrt.f32 %v2768_v60  ;;  %vm2771_vm6 = vcmp.eq.f32.partialorder %v2768_v60, inf  ;;  %v2774_v56 = vand.u32 2147483648, %v2768_v60  ;;  %vm2773_vm11 = vcmp.eq.f32.partialorder %v2768_v60, 0.0 }
 0x8bb   : > { %v3292_v36 = vpop.eup %3291 }
 0x8bc   : > { %v2770_v4 = vmul.f32 %v3292_v36, %v2768_v60 }
 0x8be   : > { %v2772_v6 = vsel %vm2771_vm6, %v2768_v60, %v2770_v4 }
 0x8bf   : > { %v2775_v51 = vsel %vm2773_vm11, %v2774_v56, %v2772_v6 }
 0x8c0   : > { %v2776_v46 = vmax.f32 %v2775_v51, 1e-12 }
 0x8c2   : > { %3293 = vrcp.f32 %v2776_v46 }
 0x8cf   : > { %v3294_v5 = vpop.eup %3293 }
 0x8d0   : > { %v2778_v48 = vmul.f32 %v3294_v5, %v2757_v53 }
 0x8d2   : > { %2779 = vst.msk [vmem:[%s3517_s22] sm:$0xf] %vm2741_vm5, %v2778_v48 }
 0x8d3 PF: > { %s4800_s21 = sld [smem:[#allocation8_spill]] }
 0x8d4   : > { %s4801_s25 = sld [smem:[#allocation6_spill]] }
 0x8d5   : > { %s4802_s26 = sld [smem:[#allocation7_spill]] }
 0x8d6   : > { %s4803_s27 = sld [smem:[#allocation9_spill]] }
 0x8d7   : > { %s4804_s28 = sld [smem:[#allocation10_spill]] }
 0x8d9   : > { %s23_s29 = sadd.s32 1, %s4800_s21  }
 0x8da   : > { %p20_p9 = scmp.ge.s32.totalorder %s23_s29, 10  }
 0x8dc   :  { %22 = sbr.rel (!%p20_p9) target bundleno = 7 (0x7), region = 175 }

</bundles_post_ra>
